<compile_context>
chip_gen: v7x
topology: tpu7x:2x2x1
jax: 0.10.0
libtpu: 0.0.40
codegen_flags: <defaults>
</compile_context>

<pallas_src>
import functools

import jax
import jax.numpy as jnp
from jax import lax
from jax.experimental import pallas as pl
from jax.experimental.pallas import tpu as pltpu

BN_EPS = 1e-5


# ----------------------------------------------------------------------------
# In-kernel helpers
# ----------------------------------------------------------------------------
def _shift2d(img, dy, dx):
    """shifted[y, x, :] = img[y+dy, x+dx, :] if in-bounds else 0 (static dy/dx)."""
    H, W, _ = img.shape

    def shift(arr, d, axis, size):
        if d == 0:
            return arr
        if abs(d) >= size:
            return jnp.zeros_like(arr)
        zshape = list(arr.shape)
        zshape[axis] = abs(d)
        zeros = jnp.zeros(zshape, arr.dtype)
        if d > 0:
            kept = lax.slice_in_dim(arr, d, size, axis=axis)
            return jnp.concatenate([kept, zeros], axis=axis)
        kept = lax.slice_in_dim(arr, 0, size + d, axis=axis)
        return jnp.concatenate([zeros, kept], axis=axis)

    return shift(shift(img, dy, 0, H), dx, 1, W)


def _dconv3x3_accum(img_bf16, w_ref, rate, H, W):
    """Dilated 3x3 conv (padding == rate, no bias) via per-tap MXU accumulation.

    img_bf16: (H, W, C) bf16 resident activation
    w_ref   : Ref of (9, C, Cout) bf16 weights, taps ordered tap = 3*ky + kx
    returns : (H*W, Cout) float32 accumulator
    """
    HW = H * W
    C = img_bf16.shape[-1]
    Cout = w_ref.shape[-1]
    acc = jnp.zeros((HW, Cout), jnp.float32)
    for ky in range(3):
        dy = (ky - 1) * rate
        if abs(dy) >= H:          # tap reads only zero padding -> skip at trace time
            continue
        for kx in range(3):
            dx = (kx - 1) * rate
            if abs(dx) >= W:
                continue
            tap = 3 * ky + kx
            shifted = _shift2d(img_bf16, dy, dx).reshape(HW, C)   # bf16 shift, no f32 copy
            acc = acc + jnp.dot(shifted, w_ref[tap],
                                preferred_element_type=jnp.float32)
    return acc


# ----------------------------------------------------------------------------
# Fused ASPPHead kernel (one batch image per grid step)
# ----------------------------------------------------------------------------
def _aspp_head_kernel(x_ref, w0_ref, w1_ref, w2_ref, w3_ref, w4_ref,
                      wpm_ref, wpp_ref, wblk_ref, wclsT_ref, bcls_ref,
                      scale_ref, shift_ref, o_ref, *, H, W, rates):
    f32, bf16 = jnp.float32, jnp.bfloat16
    HW = H * W
    Cin = x_ref.shape[1]
    Cout = w0_ref.shape[-1]
    ncls = wclsT_ref.shape[0]

    scales = scale_ref[...]            # (7, Cout) folded-BN scale, f32
    shifts = shift_ref[...]            # (7, Cout) folded-BN shift, f32

    def bn_relu(y, i):                 # y: (rows, Cout) f32
        return jnp.maximum(y * scales[i:i + 1, :] + shifts[i:i + 1, :], 0.0)

    # Input arrives in its native NCHW layout ((Cin, H*W) slab); the NHWC
    # relayout + bf16 cast happen once on-chip instead of a separate HBM pass.
    x_chw = x_ref[0]                                        # (Cin, HW) f32
    x_flat = jnp.transpose(x_chw, (1, 0)).astype(bf16)      # (HW, Cin) bf16
    xb = x_flat.reshape(H, W, Cin)                          # free view split

    # Each ASPP branch is folded straight into the 1x1 projection so only one
    # (HW, Cout) branch activation is ever live (no 5*Cout concat).
    def proj_contrib(z_f32, bn_i, proj_i):
        z = bn_relu(z_f32, bn_i).astype(bf16)
        return jnp.dot(z, wpm_ref[proj_i], preferred_element_type=f32)

    # --- branch 0: 1x1 conv + BN + ReLU -------------------------------------
    proj = proj_contrib(jnp.dot(x_flat, w0_ref[...], preferred_element_type=f32),
                        0, 0)
    # --- branches 1-3: dilated 3x3 conv + BN + ReLU (per-tap accumulation) ---
    proj = proj + proj_contrib(_dconv3x3_accum(xb, w1_ref, rates[0], H, W), 1, 1)
    proj = proj + proj_contrib(_dconv3x3_accum(xb, w2_ref, rates[1], H, W), 2, 2)
    proj = proj + proj_contrib(_dconv3x3_accum(xb, w3_ref, rates[2], H, W), 3, 3)

    # --- branch 4: GAP + 1x1 conv + BN + ReLU (spatially constant) -----------
    # MXU reduction over HW; its projection contribution is a per-image row
    # bias (the bilinear upsample of a 1x1 map is an exact broadcast).
    ones_row = jnp.ones((1, HW), bf16)
    mean = jnp.dot(ones_row, x_flat, preferred_element_type=f32) * (1.0 / HW)
    z4 = bn_relu(jnp.dot(mean.astype(bf16), w4_ref[...],
                         preferred_element_type=f32), 4)              # (1, Cout)
    proj = proj + jnp.dot(z4.astype(bf16), wpp_ref[...],
                          preferred_element_type=f32)

    proj = bn_relu(proj, 5)            # Dropout2d(0.5) == identity in eval

    # --- classifier block: 3x3 conv (pad=1) + BN + ReLU ----------------------
    proj_hwc = proj.astype(bf16).reshape(H, W, Cout)
    h = bn_relu(_dconv3x3_accum(proj_hwc, wblk_ref, 1, H, W), 6)

    # Dropout(0.1) == identity in eval.  Final 1x1 conv (with bias), emitted
    # transposed so H*W sits on the lane axis (lane-dense store, NCHW layout).
    logits_t = lax.dot_general(wclsT_ref[...], h.astype(bf16),
                               (((1,), (1,)), ((), ())),
                               preferred_element_type=f32)            # (ncls, HW)
    logits_t = logits_t + bcls_ref[...]                               # (ncls, 1)
    o_ref[...] = logits_t.reshape(1, ncls, HW)


# ----------------------------------------------------------------------------
# Parameter construction (deterministic, PyTorch-default BN stats)
# ----------------------------------------------------------------------------
def _bn_fold(c):
    gamma = jnp.ones((c,), jnp.float32)          # nn.BatchNorm2d default init
    beta = jnp.zeros((c,), jnp.float32)
    running_mean = jnp.zeros((c,), jnp.float32)
    running_var = jnp.ones((c,), jnp.float32)
    scale = gamma / jnp.sqrt(running_var + BN_EPS)
    shift = beta - running_mean * scale
    return scale.reshape(1, c), shift.reshape(1, c)


def init_aspp_head_params(key, in_channels, num_classes):
    cout = in_channels // 8
    ks = jax.random.split(key, 8)

    def w(k, shape):
        return jax.random.normal(k, shape, jnp.float32) * 0.05

    return {
        "w_b0": w(ks[0], (in_channels, cout)),               # 1x1 conv
        "w_b1": w(ks[1], (3, 3, in_channels, cout)),         # dilated 3x3
        "w_b2": w(ks[2], (3, 3, in_channels, cout)),
        "w_b3": w(ks[3], (3, 3, in_channels, cout)),
        "w_b4": w(ks[4], (in_channels, cout)),               # pooling branch 1x1
        "w_proj": w(ks[5], (5 * cout, cout)),                # project 1x1 (pool LAST)
        "w_blk3": w(ks[6], (3, 3, cout, cout)),              # block 3x3 (pad=1)
        "w_cls": w(ks[7], (cout, num_classes)),              # final 1x1 (with bias)
        "b_cls": jnp.zeros((num_classes,), jnp.float32),
        "bn_b0": _bn_fold(cout),
        "bn_b1": _bn_fold(cout),
        "bn_b2": _bn_fold(cout),
        "bn_b3": _bn_fold(cout),
        "bn_b4": _bn_fold(cout),
        "bn_proj": _bn_fold(cout),
        "bn_blk": _bn_fold(cout),
    }


# ----------------------------------------------------------------------------
# ASPPHead forward
# ----------------------------------------------------------------------------
def aspp_head_forward(inputs, params, *, atrous_rates=(12, 24, 36), in_index=3):
    # _transform_inputs: select the feature map at in_index
    x_nchw = inputs[in_index] if isinstance(in_index, int) else inputs[in_index[0]]
    N, Cin, H, W = x_nchw.shape
    HW = H * W
    Cout = params["w_b0"].shape[-1]
    ncls = params["w_cls"].shape[-1]
    bf16 = jnp.bfloat16

    # Native NCHW layout: only a free trailing-dim merge.  The NHWC relayout
    # and bf16 cast happen inside the kernel (no extra HBM transpose pass).
    x = x_nchw.reshape(N, Cin, HW)

    # Weight packing (tiny, one-time, XLA-side): 3x3 weights as per-tap slabs,
    # projection split into per-branch slabs + pooled slab, classifier weight
    # transposed so the kernel emits (ncls, H*W) directly.
    w0 = params["w_b0"].astype(bf16)                               # (Cin, Cout)
    w1 = params["w_b1"].reshape(9, Cin, Cout).astype(bf16)         # (9, Cin, Cout)
    w2 = params["w_b2"].reshape(9, Cin, Cout).astype(bf16)
    w3 = params["w_b3"].reshape(9, Cin, Cout).astype(bf16)
    w4 = params["w_b4"].astype(bf16)                               # (Cin, Cout)
    wpm = params["w_proj"][:4 * Cout, :].reshape(4, Cout, Cout).astype(bf16)
    wpp = params["w_proj"][4 * Cout:, :].astype(bf16)              # (Cout, Cout)
    wblk = params["w_blk3"].reshape(9, Cout, Cout).astype(bf16)
    wclsT = params["w_cls"].T.astype(bf16)                         # (ncls, Cout)
    bcls = params["b_cls"].reshape(ncls, 1).astype(jnp.float32)

    bn_keys = ("bn_b0", "bn_b1", "bn_b2", "bn_b3", "bn_b4", "bn_proj", "bn_blk")
    scales = jnp.concatenate([params[k][0] for k in bn_keys], axis=0)  # (7, Cout)
    shifts = jnp.concatenate([params[k][1] for k in bn_keys], axis=0)  # (7, Cout)

    # Explicit VMEM budget (v5e's scoped default is only 16 MiB).
    weight_bytes = 2 * sum(int(a.size) * a.dtype.itemsize for a in
                           (w0, w1, w2, w3, w4, wpm, wpp, wblk, wclsT, bcls,
                            scales, shifts))
    act_bytes = (2 * Cin * HW * 4            # double-buffered f32 input block
                 + 2 * ncls * HW * 4         # double-buffered f32 output block
                 + Cin * HW * 8              # x_flat + one shifted tap (bf16) + slack
                 + Cout * HW * 16)           # branch acc + proj + h (f32) + slack
    vmem_limit = int(min(max(weight_bytes + act_bytes, 32 * 1024 * 1024),
                         96 * 1024 * 1024))

    kernel = functools.partial(_aspp_head_kernel, H=H, W=W,
                               rates=tuple(atrous_rates))
    c2 = lambda n: (0, 0)
    c3 = lambda n: (0, 0, 0)
    out = pl.pallas_call(
        kernel,
        out_shape=jax.ShapeDtypeStruct((N, ncls, HW), jnp.float32),
        grid=(N,),
        in_specs=[
            pl.BlockSpec((1, Cin, HW), lambda n: (n, 0, 0)),
            pl.BlockSpec((Cin, Cout), c2),
            pl.BlockSpec((9, Cin, Cout), c3),
            pl.BlockSpec((9, Cin, Cout), c3),
            pl.BlockSpec((9, Cin, Cout), c3),
            pl.BlockSpec((Cin, Cout), c2),
            pl.BlockSpec((4, Cout, Cout), c3),
            pl.BlockSpec((Cout, Cout), c2),
            pl.BlockSpec((9, Cout, Cout), c3),
            pl.BlockSpec((ncls, Cout), c2),
            pl.BlockSpec((ncls, 1), c2),
            pl.BlockSpec((7, Cout), c2),
            pl.BlockSpec((7, Cout), c2),
        ],
        out_specs=pl.BlockSpec((1, ncls, HW), lambda n: (n, 0, 0)),
        compiler_params=pltpu.CompilerParams(
            dimension_semantics=("parallel",),   # batch axis -> both TCs on v7x
            vmem_limit_bytes=vmem_limit),
    )(x, w0, w1, w2, w3, w4, wpm, wpp, wblk, wclsT, bcls, scales, shifts)

    # (N, ncls, H*W) is already channels-first: just reshape to NCHW.
    return out.reshape(N, ncls, H, W)


# ----------------------------------------------------------------------------
if __name__ == "__main__":
    key = jax.random.PRNGKey(0)
    k_in, k_dummy, k_par = jax.random.split(key, 3)

    batch, in_channels, H, W = 2, 32, 16, 16
    num_classes = 5

    # ASPPHead consumes inputs[in_index=3]; earlier pyramid levels are unused.
    x3 = jax.random.normal(k_in, (batch, in_channels, H, W), jnp.float32)
    dummies = [jax.random.normal(k_dummy, (batch, 8, 4, 4), jnp.float32)] * 3
    inputs = dummies + [x3]

    params = init_aspp_head_params(k_par, in_channels, num_classes)

    out = aspp_head_forward(inputs, params, atrous_rates=(12, 24, 36), in_index=3)
    out = jax.block_until_ready(out)
    assert out.shape == (batch, num_classes, H, W), out.shape
    print("KERNEL_OK")
</pallas_src>

<mosaic_0001>
module attributes {stable_mosaic.version = 11 : i64} {
  func.func @_aspp_head_kernel(%arg0: i32, %arg1: memref<1x32x256xf32, #tpu.memory_space<vmem>>, %arg2: memref<32x4xbf16, #tpu.memory_space<vmem>>, %arg3: memref<9x32x4xbf16, #tpu.memory_space<vmem>>, %arg4: memref<9x32x4xbf16, #tpu.memory_space<vmem>>, %arg5: memref<9x32x4xbf16, #tpu.memory_space<vmem>>, %arg6: memref<32x4xbf16, #tpu.memory_space<vmem>>, %arg7: memref<4x4x4xbf16, #tpu.memory_space<vmem>>, %arg8: memref<4x4xbf16, #tpu.memory_space<vmem>>, %arg9: memref<9x4x4xbf16, #tpu.memory_space<vmem>>, %arg10: memref<5x4xbf16, #tpu.memory_space<vmem>>, %arg11: memref<5x1xf32, #tpu.memory_space<vmem>>, %arg12: memref<7x4xf32, #tpu.memory_space<vmem>>, %arg13: memref<7x4xf32, #tpu.memory_space<vmem>>, %arg14: memref<1x5x256xf32, #tpu.memory_space<vmem>>) attributes {dimension_semantics = [#tpu.dimension_semantics<parallel>], iteration_bounds = array<i64: 2>, scalar_prefetch = 0 : i64, scratch_operands = 0 : i64, tpu.core_type = #tpu.core_type<tc>, window_params = [{transform_indices = @transform_0, window_bounds = array<i64: 1, 32, 256>}, {pipeline_mode = #tpu.pipeline_mode<synchronous>, transform_indices = @transform_1, window_bounds = array<i64: 32, 4>}, {pipeline_mode = #tpu.pipeline_mode<synchronous>, transform_indices = @transform_2, window_bounds = array<i64: 9, 32, 4>}, {pipeline_mode = #tpu.pipeline_mode<synchronous>, transform_indices = @transform_3, window_bounds = array<i64: 9, 32, 4>}, {pipeline_mode = #tpu.pipeline_mode<synchronous>, transform_indices = @transform_4, window_bounds = array<i64: 9, 32, 4>}, {pipeline_mode = #tpu.pipeline_mode<synchronous>, transform_indices = @transform_5, window_bounds = array<i64: 32, 4>}, {pipeline_mode = #tpu.pipeline_mode<synchronous>, transform_indices = @transform_6, window_bounds = array<i64: 4, 4, 4>}, {pipeline_mode = #tpu.pipeline_mode<synchronous>, transform_indices = @transform_7, window_bounds = array<i64: 4, 4>}, {pipeline_mode = #tpu.pipeline_mode<synchronous>, transform_indices = @transform_8, window_bounds = array<i64: 9, 4, 4>}, {pipeline_mode = #tpu.pipeline_mode<synchronous>, transform_indices = @transform_9, window_bounds = array<i64: 5, 4>}, {pipeline_mode = #tpu.pipeline_mode<synchronous>, transform_indices = @transform_10, window_bounds = array<i64: 5, 1>}, {pipeline_mode = #tpu.pipeline_mode<synchronous>, transform_indices = @transform_11, window_bounds = array<i64: 7, 4>}, {pipeline_mode = #tpu.pipeline_mode<synchronous>, transform_indices = @transform_12, window_bounds = array<i64: 7, 4>}, {transform_indices = @transform_13, window_bounds = array<i64: 1, 5, 256>}]} {
    %c0 = arith.constant 0 : index
    %c0_0 = arith.constant 0 : index
    %0 = vector.load %arg12[%c0, %c0_0] : memref<7x4xf32, #tpu.memory_space<vmem>>, vector<7x4xf32>
    %c0_1 = arith.constant 0 : index
    %c0_2 = arith.constant 0 : index
    %1 = vector.load %arg13[%c0_1, %c0_2] : memref<7x4xf32, #tpu.memory_space<vmem>>, vector<7x4xf32>
    %c0_3 = arith.constant 0 : index
    %c0_4 = arith.constant 0 : index
    %c0_5 = arith.constant 0 : index
    %2 = vector.load %arg1[%c0_3, %c0_4, %c0_5] : memref<1x32x256xf32, #tpu.memory_space<vmem>>, vector<1x32x256xf32>
    %3 = vector.shape_cast %2 : vector<1x32x256xf32> to vector<32x256xf32>
    %4 = tpu.transpose %3, [1, 0] : vector<32x256xf32> -> vector<256x32xf32>
    %5 = arith.truncf %4 : vector<256x32xf32> to vector<256x32xbf16>
    %6 = vector.shape_cast %5 : vector<256x32xbf16> to vector<16x16x32xbf16>
    %c0_6 = arith.constant 0 : index
    %c0_7 = arith.constant 0 : index
    %7 = vector.load %arg2[%c0_6, %c0_7] : memref<32x4xbf16, #tpu.memory_space<vmem>>, vector<32x4xbf16>
    %cst = arith.constant dense<0.000000e+00> : vector<256x4xf32>
    %8 = tpu.matmul %5, %7, %cst {dimension_numbers = #tpu.dot_dimension_numbers<[1], [0], [0], [1], [0, 0, 1, 1], [], []>} : vector<256x32xbf16>, vector<32x4xbf16>, vector<256x4xf32> -> vector<256x4xf32>
    %9 = vector.extract_strided_slice %0 {offsets = [0, 0], sizes = [1, 4], strides = [1, 1]} : vector<7x4xf32> to vector<1x4xf32>
    %10 = vector.broadcast %9 : vector<1x4xf32> to vector<256x4xf32>
    %11 = arith.mulf %8, %10 : vector<256x4xf32>
    %12 = vector.extract_strided_slice %1 {offsets = [0, 0], sizes = [1, 4], strides = [1, 1]} : vector<7x4xf32> to vector<1x4xf32>
    %13 = vector.broadcast %12 : vector<1x4xf32> to vector<256x4xf32>
    %14 = arith.addf %11, %13 : vector<256x4xf32>
    %cst_8 = arith.constant 0.000000e+00 : f32
    %15 = vector.broadcast %cst_8 : f32 to vector<256x4xf32>
    %16 = arith.maximumf %14, %15 : vector<256x4xf32>
    %17 = arith.truncf %16 : vector<256x4xf32> to vector<256x4xbf16>
    %c0_9 = arith.constant 0 : index
    %c0_10 = arith.constant 0 : index
    %c0_11 = arith.constant 0 : index
    %18 = vector.load %arg7[%c0_9, %c0_10, %c0_11] : memref<4x4x4xbf16, #tpu.memory_space<vmem>>, vector<1x4x4xbf16>
    %19 = vector.shape_cast %18 : vector<1x4x4xbf16> to vector<4x4xbf16>
    %cst_12 = arith.constant dense<0.000000e+00> : vector<256x4xf32>
    %20 = tpu.matmul %17, %19, %cst_12 {dimension_numbers = #tpu.dot_dimension_numbers<[1], [0], [0], [1], [0, 0, 1, 1], [], []>} : vector<256x4xbf16>, vector<4x4xbf16>, vector<256x4xf32> -> vector<256x4xf32>
    %cst_13 = arith.constant 0.000000e+00 : f32
    %21 = vector.broadcast %cst_13 : f32 to vector<256x4xf32>
    %cst_14 = arith.constant 0.000000e+00 : bf16
    %22 = vector.broadcast %cst_14 : bf16 to vector<12x16x32xbf16>
    %23 = vector.extract_strided_slice %6 {offsets = [0, 0, 0], sizes = [4, 16, 32], strides = [1, 1, 1]} : vector<16x16x32xbf16> to vector<4x16x32xbf16>
    %24 = tpu.concatenate %22, %23 in 0 : vector<12x16x32xbf16>, vector<4x16x32xbf16> -> vector<16x16x32xbf16>
    %cst_15 = arith.constant 0.000000e+00 : bf16
    %25 = vector.broadcast %cst_15 : bf16 to vector<16x12x32xbf16>
    %26 = vector.extract_strided_slice %24 {offsets = [0, 0, 0], sizes = [16, 4, 32], strides = [1, 1, 1]} : vector<16x16x32xbf16> to vector<16x4x32xbf16>
    %27 = tpu.concatenate %25, %26 in 1 : vector<16x12x32xbf16>, vector<16x4x32xbf16> -> vector<16x16x32xbf16>
    %28 = vector.shape_cast %27 : vector<16x16x32xbf16> to vector<256x32xbf16>
    %c0_16 = arith.constant 0 : index
    %c0_17 = arith.constant 0 : index
    %c0_18 = arith.constant 0 : index
    %29 = vector.load %arg3[%c0_16, %c0_17, %c0_18] : memref<9x32x4xbf16, #tpu.memory_space<vmem>>, vector<1x32x4xbf16>
    %30 = vector.shape_cast %29 : vector<1x32x4xbf16> to vector<32x4xbf16>
    %cst_19 = arith.constant dense<0.000000e+00> : vector<256x4xf32>
    %31 = tpu.matmul %28, %30, %cst_19 {dimension_numbers = #tpu.dot_dimension_numbers<[1], [0], [0], [1], [0, 0, 1, 1], [], []>} : vector<256x32xbf16>, vector<32x4xbf16>, vector<256x4xf32> -> vector<256x4xf32>
    %32 = arith.addf %21, %31 : vector<256x4xf32>
    %cst_20 = arith.constant 0.000000e+00 : bf16
    %33 = vector.broadcast %cst_20 : bf16 to vector<12x16x32xbf16>
    %34 = vector.extract_strided_slice %6 {offsets = [0, 0, 0], sizes = [4, 16, 32], strides = [1, 1, 1]} : vector<16x16x32xbf16> to vector<4x16x32xbf16>
    %35 = tpu.concatenate %33, %34 in 0 : vector<12x16x32xbf16>, vector<4x16x32xbf16> -> vector<16x16x32xbf16>
    %36 = vector.shape_cast %35 : vector<16x16x32xbf16> to vector<256x32xbf16>
    %c1 = arith.constant 1 : index
    %c0_21 = arith.constant 0 : index
    %c0_22 = arith.constant 0 : index
    %37 = vector.load %arg3[%c1, %c0_21, %c0_22] : memref<9x32x4xbf16, #tpu.memory_space<vmem>>, vector<1x32x4xbf16>
    %38 = vector.shape_cast %37 : vector<1x32x4xbf16> to vector<32x4xbf16>
    %cst_23 = arith.constant dense<0.000000e+00> : vector<256x4xf32>
    %39 = tpu.matmul %36, %38, %cst_23 {dimension_numbers = #tpu.dot_dimension_numbers<[1], [0], [0], [1], [0, 0, 1, 1], [], []>} : vector<256x32xbf16>, vector<32x4xbf16>, vector<256x4xf32> -> vector<256x4xf32>
    %40 = arith.addf %32, %39 : vector<256x4xf32>
    %cst_24 = arith.constant 0.000000e+00 : bf16
    %41 = vector.broadcast %cst_24 : bf16 to vector<12x16x32xbf16>
    %42 = vector.extract_strided_slice %6 {offsets = [0, 0, 0], sizes = [4, 16, 32], strides = [1, 1, 1]} : vector<16x16x32xbf16> to vector<4x16x32xbf16>
    %43 = tpu.concatenate %41, %42 in 0 : vector<12x16x32xbf16>, vector<4x16x32xbf16> -> vector<16x16x32xbf16>
    %cst_25 = arith.constant 0.000000e+00 : bf16
    %44 = vector.broadcast %cst_25 : bf16 to vector<16x12x32xbf16>
    %45 = vector.extract_strided_slice %43 {offsets = [0, 12, 0], sizes = [16, 4, 32], strides = [1, 1, 1]} : vector<16x16x32xbf16> to vector<16x4x32xbf16>
    %46 = tpu.concatenate %45, %44 in 1 : vector<16x4x32xbf16>, vector<16x12x32xbf16> -> vector<16x16x32xbf16>
    %47 = vector.shape_cast %46 : vector<16x16x32xbf16> to vector<256x32xbf16>
    %c2 = arith.constant 2 : index
    %c0_26 = arith.constant 0 : index
    %c0_27 = arith.constant 0 : index
    %48 = vector.load %arg3[%c2, %c0_26, %c0_27] : memref<9x32x4xbf16, #tpu.memory_space<vmem>>, vector<1x32x4xbf16>
    %49 = vector.shape_cast %48 : vector<1x32x4xbf16> to vector<32x4xbf16>
    %cst_28 = arith.constant dense<0.000000e+00> : vector<256x4xf32>
    %50 = tpu.matmul %47, %49, %cst_28 {dimension_numbers = #tpu.dot_dimension_numbers<[1], [0], [0], [1], [0, 0, 1, 1], [], []>} : vector<256x32xbf16>, vector<32x4xbf16>, vector<256x4xf32> -> vector<256x4xf32>
    %51 = arith.addf %40, %50 : vector<256x4xf32>
    %cst_29 = arith.constant 0.000000e+00 : bf16
    %52 = vector.broadcast %cst_29 : bf16 to vector<16x12x32xbf16>
    %53 = vector.extract_strided_slice %6 {offsets = [0, 0, 0], sizes = [16, 4, 32], strides = [1, 1, 1]} : vector<16x16x32xbf16> to vector<16x4x32xbf16>
    %54 = tpu.concatenate %52, %53 in 1 : vector<16x12x32xbf16>, vector<16x4x32xbf16> -> vector<16x16x32xbf16>
    %55 = vector.shape_cast %54 : vector<16x16x32xbf16> to vector<256x32xbf16>
    %c3 = arith.constant 3 : index
    %c0_30 = arith.constant 0 : index
    %c0_31 = arith.constant 0 : index
    %56 = vector.load %arg3[%c3, %c0_30, %c0_31] : memref<9x32x4xbf16, #tpu.memory_space<vmem>>, vector<1x32x4xbf16>
    %57 = vector.shape_cast %56 : vector<1x32x4xbf16> to vector<32x4xbf16>
    %cst_32 = arith.constant dense<0.000000e+00> : vector<256x4xf32>
    %58 = tpu.matmul %55, %57, %cst_32 {dimension_numbers = #tpu.dot_dimension_numbers<[1], [0], [0], [1], [0, 0, 1, 1], [], []>} : vector<256x32xbf16>, vector<32x4xbf16>, vector<256x4xf32> -> vector<256x4xf32>
    %59 = arith.addf %51, %58 : vector<256x4xf32>
    %60 = vector.shape_cast %6 : vector<16x16x32xbf16> to vector<256x32xbf16>
    %c4 = arith.constant 4 : index
    %c0_33 = arith.constant 0 : index
    %c0_34 = arith.constant 0 : index
    %61 = vector.load %arg3[%c4, %c0_33, %c0_34] : memref<9x32x4xbf16, #tpu.memory_space<vmem>>, vector<1x32x4xbf16>
    %62 = vector.shape_cast %61 : vector<1x32x4xbf16> to vector<32x4xbf16>
    %cst_35 = arith.constant dense<0.000000e+00> : vector<256x4xf32>
    %63 = tpu.matmul %60, %62, %cst_35 {dimension_numbers = #tpu.dot_dimension_numbers<[1], [0], [0], [1], [0, 0, 1, 1], [], []>} : vector<256x32xbf16>, vector<32x4xbf16>, vector<256x4xf32> -> vector<256x4xf32>
    %64 = arith.addf %59, %63 : vector<256x4xf32>
    %cst_36 = arith.constant 0.000000e+00 : bf16
    %65 = vector.broadcast %cst_36 : bf16 to vector<16x12x32xbf16>
    %66 = vector.extract_strided_slice %6 {offsets = [0, 12, 0], sizes = [16, 4, 32], strides = [1, 1, 1]} : vector<16x16x32xbf16> to vector<16x4x32xbf16>
    %67 = tpu.concatenate %66, %65 in 1 : vector<16x4x32xbf16>, vector<16x12x32xbf16> -> vector<16x16x32xbf16>
    %68 = vector.shape_cast %67 : vector<16x16x32xbf16> to vector<256x32xbf16>
    %c5 = arith.constant 5 : index
    %c0_37 = arith.constant 0 : index
    %c0_38 = arith.constant 0 : index
    %69 = vector.load %arg3[%c5, %c0_37, %c0_38] : memref<9x32x4xbf16, #tpu.memory_space<vmem>>, vector<1x32x4xbf16>
    %70 = vector.shape_cast %69 : vector<1x32x4xbf16> to vector<32x4xbf16>
    %cst_39 = arith.constant dense<0.000000e+00> : vector<256x4xf32>
    %71 = tpu.matmul %68, %70, %cst_39 {dimension_numbers = #tpu.dot_dimension_numbers<[1], [0], [0], [1], [0, 0, 1, 1], [], []>} : vector<256x32xbf16>, vector<32x4xbf16>, vector<256x4xf32> -> vector<256x4xf32>
    %72 = arith.addf %64, %71 : vector<256x4xf32>
    %cst_40 = arith.constant 0.000000e+00 : bf16
    %73 = vector.broadcast %cst_40 : bf16 to vector<12x16x32xbf16>
    %74 = vector.extract_strided_slice %6 {offsets = [12, 0, 0], sizes = [4, 16, 32], strides = [1, 1, 1]} : vector<16x16x32xbf16> to vector<4x16x32xbf16>
    %75 = tpu.concatenate %74, %73 in 0 : vector<4x16x32xbf16>, vector<12x16x32xbf16> -> vector<16x16x32xbf16>
    %cst_41 = arith.constant 0.000000e+00 : bf16
    %76 = vector.broadcast %cst_41 : bf16 to vector<16x12x32xbf16>
    %77 = vector.extract_strided_slice %75 {offsets = [0, 0, 0], sizes = [16, 4, 32], strides = [1, 1, 1]} : vector<16x16x32xbf16> to vector<16x4x32xbf16>
    %78 = tpu.concatenate %76, %77 in 1 : vector<16x12x32xbf16>, vector<16x4x32xbf16> -> vector<16x16x32xbf16>
    %79 = vector.shape_cast %78 : vector<16x16x32xbf16> to vector<256x32xbf16>
    %c6 = arith.constant 6 : index
    %c0_42 = arith.constant 0 : index
    %c0_43 = arith.constant 0 : index
    %80 = vector.load %arg3[%c6, %c0_42, %c0_43] : memref<9x32x4xbf16, #tpu.memory_space<vmem>>, vector<1x32x4xbf16>
    %81 = vector.shape_cast %80 : vector<1x32x4xbf16> to vector<32x4xbf16>
    %cst_44 = arith.constant dense<0.000000e+00> : vector<256x4xf32>
    %82 = tpu.matmul %79, %81, %cst_44 {dimension_numbers = #tpu.dot_dimension_numbers<[1], [0], [0], [1], [0, 0, 1, 1], [], []>} : vector<256x32xbf16>, vector<32x4xbf16>, vector<256x4xf32> -> vector<256x4xf32>
    %83 = arith.addf %72, %82 : vector<256x4xf32>
    %cst_45 = arith.constant 0.000000e+00 : bf16
    %84 = vector.broadcast %cst_45 : bf16 to vector<12x16x32xbf16>
    %85 = vector.extract_strided_slice %6 {offsets = [12, 0, 0], sizes = [4, 16, 32], strides = [1, 1, 1]} : vector<16x16x32xbf16> to vector<4x16x32xbf16>
    %86 = tpu.concatenate %85, %84 in 0 : vector<4x16x32xbf16>, vector<12x16x32xbf16> -> vector<16x16x32xbf16>
    %87 = vector.shape_cast %86 : vector<16x16x32xbf16> to vector<256x32xbf16>
    %c7 = arith.constant 7 : index
    %c0_46 = arith.constant 0 : index
    %c0_47 = arith.constant 0 : index
    %88 = vector.load %arg3[%c7, %c0_46, %c0_47] : memref<9x32x4xbf16, #tpu.memory_space<vmem>>, vector<1x32x4xbf16>
    %89 = vector.shape_cast %88 : vector<1x32x4xbf16> to vector<32x4xbf16>
    %cst_48 = arith.constant dense<0.000000e+00> : vector<256x4xf32>
    %90 = tpu.matmul %87, %89, %cst_48 {dimension_numbers = #tpu.dot_dimension_numbers<[1], [0], [0], [1], [0, 0, 1, 1], [], []>} : vector<256x32xbf16>, vector<32x4xbf16>, vector<256x4xf32> -> vector<256x4xf32>
    %91 = arith.addf %83, %90 : vector<256x4xf32>
    %cst_49 = arith.constant 0.000000e+00 : bf16
    %92 = vector.broadcast %cst_49 : bf16 to vector<12x16x32xbf16>
    %93 = vector.extract_strided_slice %6 {offsets = [12, 0, 0], sizes = [4, 16, 32], strides = [1, 1, 1]} : vector<16x16x32xbf16> to vector<4x16x32xbf16>
    %94 = tpu.concatenate %93, %92 in 0 : vector<4x16x32xbf16>, vector<12x16x32xbf16> -> vector<16x16x32xbf16>
    %cst_50 = arith.constant 0.000000e+00 : bf16
    %95 = vector.broadcast %cst_50 : bf16 to vector<16x12x32xbf16>
    %96 = vector.extract_strided_slice %94 {offsets = [0, 12, 0], sizes = [16, 4, 32], strides = [1, 1, 1]} : vector<16x16x32xbf16> to vector<16x4x32xbf16>
    %97 = tpu.concatenate %96, %95 in 1 : vector<16x4x32xbf16>, vector<16x12x32xbf16> -> vector<16x16x32xbf16>
    %98 = vector.shape_cast %97 : vector<16x16x32xbf16> to vector<256x32xbf16>
    %c8 = arith.constant 8 : index
    %c0_51 = arith.constant 0 : index
    %c0_52 = arith.constant 0 : index
    %99 = vector.load %arg3[%c8, %c0_51, %c0_52] : memref<9x32x4xbf16, #tpu.memory_space<vmem>>, vector<1x32x4xbf16>
    %100 = vector.shape_cast %99 : vector<1x32x4xbf16> to vector<32x4xbf16>
    %cst_53 = arith.constant dense<0.000000e+00> : vector<256x4xf32>
    %101 = tpu.matmul %98, %100, %cst_53 {dimension_numbers = #tpu.dot_dimension_numbers<[1], [0], [0], [1], [0, 0, 1, 1], [], []>} : vector<256x32xbf16>, vector<32x4xbf16>, vector<256x4xf32> -> vector<256x4xf32>
    %102 = arith.addf %91, %101 : vector<256x4xf32>
    %103 = vector.extract_strided_slice %0 {offsets = [1, 0], sizes = [1, 4], strides = [1, 1]} : vector<7x4xf32> to vector<1x4xf32>
    %104 = vector.broadcast %103 : vector<1x4xf32> to vector<256x4xf32>
    %105 = arith.mulf %102, %104 : vector<256x4xf32>
    %106 = vector.extract_strided_slice %1 {offsets = [1, 0], sizes = [1, 4], strides = [1, 1]} : vector<7x4xf32> to vector<1x4xf32>
    %107 = vector.broadcast %106 : vector<1x4xf32> to vector<256x4xf32>
    %108 = arith.addf %105, %107 : vector<256x4xf32>
    %cst_54 = arith.constant 0.000000e+00 : f32
    %109 = vector.broadcast %cst_54 : f32 to vector<256x4xf32>
    %110 = arith.maximumf %108, %109 : vector<256x4xf32>
    %111 = arith.truncf %110 : vector<256x4xf32> to vector<256x4xbf16>
    %c1_55 = arith.constant 1 : index
    %c0_56 = arith.constant 0 : index
    %c0_57 = arith.constant 0 : index
    %112 = vector.load %arg7[%c1_55, %c0_56, %c0_57] : memref<4x4x4xbf16, #tpu.memory_space<vmem>>, vector<1x4x4xbf16>
    %113 = vector.shape_cast %112 : vector<1x4x4xbf16> to vector<4x4xbf16>
    %cst_58 = arith.constant dense<0.000000e+00> : vector<256x4xf32>
    %114 = tpu.matmul %111, %113, %cst_58 {dimension_numbers = #tpu.dot_dimension_numbers<[1], [0], [0], [1], [0, 0, 1, 1], [], []>} : vector<256x4xbf16>, vector<4x4xbf16>, vector<256x4xf32> -> vector<256x4xf32>
    %115 = arith.addf %20, %114 : vector<256x4xf32>
    %cst_59 = arith.constant 0.000000e+00 : f32
    %116 = vector.broadcast %cst_59 : f32 to vector<256x4xf32>
    %117 = vector.shape_cast %6 : vector<16x16x32xbf16> to vector<256x32xbf16>
    %c4_60 = arith.constant 4 : index
    %c0_61 = arith.constant 0 : index
    %c0_62 = arith.constant 0 : index
    %118 = vector.load %arg4[%c4_60, %c0_61, %c0_62] : memref<9x32x4xbf16, #tpu.memory_space<vmem>>, vector<1x32x4xbf16>
    %119 = vector.shape_cast %118 : vector<1x32x4xbf16> to vector<32x4xbf16>
    %cst_63 = arith.constant dense<0.000000e+00> : vector<256x4xf32>
    %120 = tpu.matmul %117, %119, %cst_63 {dimension_numbers = #tpu.dot_dimension_numbers<[1], [0], [0], [1], [0, 0, 1, 1], [], []>} : vector<256x32xbf16>, vector<32x4xbf16>, vector<256x4xf32> -> vector<256x4xf32>
    %121 = arith.addf %116, %120 : vector<256x4xf32>
    %122 = vector.extract_strided_slice %0 {offsets = [2, 0], sizes = [1, 4], strides = [1, 1]} : vector<7x4xf32> to vector<1x4xf32>
    %123 = vector.broadcast %122 : vector<1x4xf32> to vector<256x4xf32>
    %124 = arith.mulf %121, %123 : vector<256x4xf32>
    %125 = vector.extract_strided_slice %1 {offsets = [2, 0], sizes = [1, 4], strides = [1, 1]} : vector<7x4xf32> to vector<1x4xf32>
    %126 = vector.broadcast %125 : vector<1x4xf32> to vector<256x4xf32>
    %127 = arith.addf %124, %126 : vector<256x4xf32>
    %cst_64 = arith.constant 0.000000e+00 : f32
    %128 = vector.broadcast %cst_64 : f32 to vector<256x4xf32>
    %129 = arith.maximumf %127, %128 : vector<256x4xf32>
    %130 = arith.truncf %129 : vector<256x4xf32> to vector<256x4xbf16>
    %c2_65 = arith.constant 2 : index
    %c0_66 = arith.constant 0 : index
    %c0_67 = arith.constant 0 : index
    %131 = vector.load %arg7[%c2_65, %c0_66, %c0_67] : memref<4x4x4xbf16, #tpu.memory_space<vmem>>, vector<1x4x4xbf16>
    %132 = vector.shape_cast %131 : vector<1x4x4xbf16> to vector<4x4xbf16>
    %cst_68 = arith.constant dense<0.000000e+00> : vector<256x4xf32>
    %133 = tpu.matmul %130, %132, %cst_68 {dimension_numbers = #tpu.dot_dimension_numbers<[1], [0], [0], [1], [0, 0, 1, 1], [], []>} : vector<256x4xbf16>, vector<4x4xbf16>, vector<256x4xf32> -> vector<256x4xf32>
    %134 = arith.addf %115, %133 : vector<256x4xf32>
    %cst_69 = arith.constant 0.000000e+00 : f32
    %135 = vector.broadcast %cst_69 : f32 to vector<256x4xf32>
    %136 = vector.shape_cast %6 : vector<16x16x32xbf16> to vector<256x32xbf16>
    %c4_70 = arith.constant 4 : index
    %c0_71 = arith.constant 0 : index
    %c0_72 = arith.constant 0 : index
    %137 = vector.load %arg5[%c4_70, %c0_71, %c0_72] : memref<9x32x4xbf16, #tpu.memory_space<vmem>>, vector<1x32x4xbf16>
    %138 = vector.shape_cast %137 : vector<1x32x4xbf16> to vector<32x4xbf16>
    %cst_73 = arith.constant dense<0.000000e+00> : vector<256x4xf32>
    %139 = tpu.matmul %136, %138, %cst_73 {dimension_numbers = #tpu.dot_dimension_numbers<[1], [0], [0], [1], [0, 0, 1, 1], [], []>} : vector<256x32xbf16>, vector<32x4xbf16>, vector<256x4xf32> -> vector<256x4xf32>
    %140 = arith.addf %135, %139 : vector<256x4xf32>
    %141 = vector.extract_strided_slice %0 {offsets = [3, 0], sizes = [1, 4], strides = [1, 1]} : vector<7x4xf32> to vector<1x4xf32>
    %142 = vector.broadcast %141 : vector<1x4xf32> to vector<256x4xf32>
    %143 = arith.mulf %140, %142 : vector<256x4xf32>
    %144 = vector.extract_strided_slice %1 {offsets = [3, 0], sizes = [1, 4], strides = [1, 1]} : vector<7x4xf32> to vector<1x4xf32>
    %145 = vector.broadcast %144 : vector<1x4xf32> to vector<256x4xf32>
    %146 = arith.addf %143, %145 : vector<256x4xf32>
    %cst_74 = arith.constant 0.000000e+00 : f32
    %147 = vector.broadcast %cst_74 : f32 to vector<256x4xf32>
    %148 = arith.maximumf %146, %147 : vector<256x4xf32>
    %149 = arith.truncf %148 : vector<256x4xf32> to vector<256x4xbf16>
    %c3_75 = arith.constant 3 : index
    %c0_76 = arith.constant 0 : index
    %c0_77 = arith.constant 0 : index
    %150 = vector.load %arg7[%c3_75, %c0_76, %c0_77] : memref<4x4x4xbf16, #tpu.memory_space<vmem>>, vector<1x4x4xbf16>
    %151 = vector.shape_cast %150 : vector<1x4x4xbf16> to vector<4x4xbf16>
    %cst_78 = arith.constant dense<0.000000e+00> : vector<256x4xf32>
    %152 = tpu.matmul %149, %151, %cst_78 {dimension_numbers = #tpu.dot_dimension_numbers<[1], [0], [0], [1], [0, 0, 1, 1], [], []>} : vector<256x4xbf16>, vector<4x4xbf16>, vector<256x4xf32> -> vector<256x4xf32>
    %153 = arith.addf %134, %152 : vector<256x4xf32>
    %cst_79 = arith.constant 1.000000e+00 : bf16
    %154 = vector.broadcast %cst_79 : bf16 to vector<1x256xbf16>
    %cst_80 = arith.constant dense<0.000000e+00> : vector<1x32xf32>
    %155 = tpu.matmul %154, %5, %cst_80 {dimension_numbers = #tpu.dot_dimension_numbers<[1], [0], [0], [1], [0, 0, 1, 1], [], []>} : vector<1x256xbf16>, vector<256x32xbf16>, vector<1x32xf32> -> vector<1x32xf32>
    %cst_81 = arith.constant 3.906250e-03 : f32
    %156 = vector.broadcast %cst_81 : f32 to vector<1x32xf32>
    %157 = arith.mulf %155, %156 : vector<1x32xf32>
    %158 = arith.truncf %157 : vector<1x32xf32> to vector<1x32xbf16>
    %c0_82 = arith.constant 0 : index
    %c0_83 = arith.constant 0 : index
    %159 = vector.load %arg6[%c0_82, %c0_83] : memref<32x4xbf16, #tpu.memory_space<vmem>>, vector<32x4xbf16>
    %cst_84 = arith.constant dense<0.000000e+00> : vector<1x4xf32>
    %160 = tpu.matmul %158, %159, %cst_84 {dimension_numbers = #tpu.dot_dimension_numbers<[1], [0], [0], [1], [0, 0, 1, 1], [], []>} : vector<1x32xbf16>, vector<32x4xbf16>, vector<1x4xf32> -> vector<1x4xf32>
    %161 = vector.extract_strided_slice %0 {offsets = [4, 0], sizes = [1, 4], strides = [1, 1]} : vector<7x4xf32> to vector<1x4xf32>
    %162 = arith.mulf %160, %161 : vector<1x4xf32>
    %163 = vector.extract_strided_slice %1 {offsets = [4, 0], sizes = [1, 4], strides = [1, 1]} : vector<7x4xf32> to vector<1x4xf32>
    %164 = arith.addf %162, %163 : vector<1x4xf32>
    %cst_85 = arith.constant 0.000000e+00 : f32
    %165 = vector.broadcast %cst_85 : f32 to vector<1x4xf32>
    %166 = arith.maximumf %164, %165 : vector<1x4xf32>
    %167 = arith.truncf %166 : vector<1x4xf32> to vector<1x4xbf16>
    %c0_86 = arith.constant 0 : index
    %c0_87 = arith.constant 0 : index
    %168 = vector.load %arg8[%c0_86, %c0_87] : memref<4x4xbf16, #tpu.memory_space<vmem>>, vector<4x4xbf16>
    %cst_88 = arith.constant dense<0.000000e+00> : vector<1x4xf32>
    %169 = tpu.matmul %167, %168, %cst_88 {dimension_numbers = #tpu.dot_dimension_numbers<[1], [0], [0], [1], [0, 0, 1, 1], [], []>} : vector<1x4xbf16>, vector<4x4xbf16>, vector<1x4xf32> -> vector<1x4xf32>
    %170 = vector.broadcast %169 : vector<1x4xf32> to vector<256x4xf32>
    %171 = arith.addf %153, %170 : vector<256x4xf32>
    %172 = vector.extract_strided_slice %0 {offsets = [5, 0], sizes = [1, 4], strides = [1, 1]} : vector<7x4xf32> to vector<1x4xf32>
    %173 = vector.broadcast %172 : vector<1x4xf32> to vector<256x4xf32>
    %174 = arith.mulf %171, %173 : vector<256x4xf32>
    %175 = vector.extract_strided_slice %1 {offsets = [5, 0], sizes = [1, 4], strides = [1, 1]} : vector<7x4xf32> to vector<1x4xf32>
    %176 = vector.broadcast %175 : vector<1x4xf32> to vector<256x4xf32>
    %177 = arith.addf %174, %176 : vector<256x4xf32>
    %cst_89 = arith.constant 0.000000e+00 : f32
    %178 = vector.broadcast %cst_89 : f32 to vector<256x4xf32>
    %179 = arith.maximumf %177, %178 : vector<256x4xf32>
    %180 = arith.truncf %179 : vector<256x4xf32> to vector<256x4xbf16>
    %181 = vector.shape_cast %180 : vector<256x4xbf16> to vector<16x16x4xbf16>
    %cst_90 = arith.constant 0.000000e+00 : f32
    %182 = vector.broadcast %cst_90 : f32 to vector<256x4xf32>
    %cst_91 = arith.constant 0.000000e+00 : bf16
    %183 = vector.broadcast %cst_91 : bf16 to vector<1x16x4xbf16>
    %184 = vector.extract_strided_slice %181 {offsets = [0, 0, 0], sizes = [15, 16, 4], strides = [1, 1, 1]} : vector<16x16x4xbf16> to vector<15x16x4xbf16>
    %185 = tpu.concatenate %183, %184 in 0 : vector<1x16x4xbf16>, vector<15x16x4xbf16> -> vector<16x16x4xbf16>
    %cst_92 = arith.constant 0.000000e+00 : bf16
    %186 = vector.broadcast %cst_92 : bf16 to vector<16x1x4xbf16>
    %187 = vector.extract_strided_slice %185 {offsets = [0, 0, 0], sizes = [16, 15, 4], strides = [1, 1, 1]} : vector<16x16x4xbf16> to vector<16x15x4xbf16>
    %188 = tpu.concatenate %186, %187 in 1 : vector<16x1x4xbf16>, vector<16x15x4xbf16> -> vector<16x16x4xbf16>
    %189 = vector.shape_cast %188 : vector<16x16x4xbf16> to vector<256x4xbf16>
    %c0_93 = arith.constant 0 : index
    %c0_94 = arith.constant 0 : index
    %c0_95 = arith.constant 0 : index
    %190 = vector.load %arg9[%c0_93, %c0_94, %c0_95] : memref<9x4x4xbf16, #tpu.memory_space<vmem>>, vector<1x4x4xbf16>
    %191 = vector.shape_cast %190 : vector<1x4x4xbf16> to vector<4x4xbf16>
    %cst_96 = arith.constant dense<0.000000e+00> : vector<256x4xf32>
    %192 = tpu.matmul %189, %191, %cst_96 {dimension_numbers = #tpu.dot_dimension_numbers<[1], [0], [0], [1], [0, 0, 1, 1], [], []>} : vector<256x4xbf16>, vector<4x4xbf16>, vector<256x4xf32> -> vector<256x4xf32>
    %193 = arith.addf %182, %192 : vector<256x4xf32>
    %cst_97 = arith.constant 0.000000e+00 : bf16
    %194 = vector.broadcast %cst_97 : bf16 to vector<1x16x4xbf16>
    %195 = vector.extract_strided_slice %181 {offsets = [0, 0, 0], sizes = [15, 16, 4], strides = [1, 1, 1]} : vector<16x16x4xbf16> to vector<15x16x4xbf16>
    %196 = tpu.concatenate %194, %195 in 0 : vector<1x16x4xbf16>, vector<15x16x4xbf16> -> vector<16x16x4xbf16>
    %197 = vector.shape_cast %196 : vector<16x16x4xbf16> to vector<256x4xbf16>
    %c1_98 = arith.constant 1 : index
    %c0_99 = arith.constant 0 : index
    %c0_100 = arith.constant 0 : index
    %198 = vector.load %arg9[%c1_98, %c0_99, %c0_100] : memref<9x4x4xbf16, #tpu.memory_space<vmem>>, vector<1x4x4xbf16>
    %199 = vector.shape_cast %198 : vector<1x4x4xbf16> to vector<4x4xbf16>
    %cst_101 = arith.constant dense<0.000000e+00> : vector<256x4xf32>
    %200 = tpu.matmul %197, %199, %cst_101 {dimension_numbers = #tpu.dot_dimension_numbers<[1], [0], [0], [1], [0, 0, 1, 1], [], []>} : vector<256x4xbf16>, vector<4x4xbf16>, vector<256x4xf32> -> vector<256x4xf32>
    %201 = arith.addf %193, %200 : vector<256x4xf32>
    %cst_102 = arith.constant 0.000000e+00 : bf16
    %202 = vector.broadcast %cst_102 : bf16 to vector<1x16x4xbf16>
    %203 = vector.extract_strided_slice %181 {offsets = [0, 0, 0], sizes = [15, 16, 4], strides = [1, 1, 1]} : vector<16x16x4xbf16> to vector<15x16x4xbf16>
    %204 = tpu.concatenate %202, %203 in 0 : vector<1x16x4xbf16>, vector<15x16x4xbf16> -> vector<16x16x4xbf16>
    %cst_103 = arith.constant 0.000000e+00 : bf16
    %205 = vector.broadcast %cst_103 : bf16 to vector<16x1x4xbf16>
    %206 = vector.extract_strided_slice %204 {offsets = [0, 1, 0], sizes = [16, 15, 4], strides = [1, 1, 1]} : vector<16x16x4xbf16> to vector<16x15x4xbf16>
    %207 = tpu.concatenate %206, %205 in 1 : vector<16x15x4xbf16>, vector<16x1x4xbf16> -> vector<16x16x4xbf16>
    %208 = vector.shape_cast %207 : vector<16x16x4xbf16> to vector<256x4xbf16>
    %c2_104 = arith.constant 2 : index
    %c0_105 = arith.constant 0 : index
    %c0_106 = arith.constant 0 : index
    %209 = vector.load %arg9[%c2_104, %c0_105, %c0_106] : memref<9x4x4xbf16, #tpu.memory_space<vmem>>, vector<1x4x4xbf16>
    %210 = vector.shape_cast %209 : vector<1x4x4xbf16> to vector<4x4xbf16>
    %cst_107 = arith.constant dense<0.000000e+00> : vector<256x4xf32>
    %211 = tpu.matmul %208, %210, %cst_107 {dimension_numbers = #tpu.dot_dimension_numbers<[1], [0], [0], [1], [0, 0, 1, 1], [], []>} : vector<256x4xbf16>, vector<4x4xbf16>, vector<256x4xf32> -> vector<256x4xf32>
    %212 = arith.addf %201, %211 : vector<256x4xf32>
    %cst_108 = arith.constant 0.000000e+00 : bf16
    %213 = vector.broadcast %cst_108 : bf16 to vector<16x1x4xbf16>
    %214 = vector.extract_strided_slice %181 {offsets = [0, 0, 0], sizes = [16, 15, 4], strides = [1, 1, 1]} : vector<16x16x4xbf16> to vector<16x15x4xbf16>
    %215 = tpu.concatenate %213, %214 in 1 : vector<16x1x4xbf16>, vector<16x15x4xbf16> -> vector<16x16x4xbf16>
    %216 = vector.shape_cast %215 : vector<16x16x4xbf16> to vector<256x4xbf16>
    %c3_109 = arith.constant 3 : index
    %c0_110 = arith.constant 0 : index
    %c0_111 = arith.constant 0 : index
    %217 = vector.load %arg9[%c3_109, %c0_110, %c0_111] : memref<9x4x4xbf16, #tpu.memory_space<vmem>>, vector<1x4x4xbf16>
    %218 = vector.shape_cast %217 : vector<1x4x4xbf16> to vector<4x4xbf16>
    %cst_112 = arith.constant dense<0.000000e+00> : vector<256x4xf32>
    %219 = tpu.matmul %216, %218, %cst_112 {dimension_numbers = #tpu.dot_dimension_numbers<[1], [0], [0], [1], [0, 0, 1, 1], [], []>} : vector<256x4xbf16>, vector<4x4xbf16>, vector<256x4xf32> -> vector<256x4xf32>
    %220 = arith.addf %212, %219 : vector<256x4xf32>
    %221 = vector.shape_cast %181 : vector<16x16x4xbf16> to vector<256x4xbf16>
    %c4_113 = arith.constant 4 : index
    %c0_114 = arith.constant 0 : index
    %c0_115 = arith.constant 0 : index
    %222 = vector.load %arg9[%c4_113, %c0_114, %c0_115] : memref<9x4x4xbf16, #tpu.memory_space<vmem>>, vector<1x4x4xbf16>
    %223 = vector.shape_cast %222 : vector<1x4x4xbf16> to vector<4x4xbf16>
    %cst_116 = arith.constant dense<0.000000e+00> : vector<256x4xf32>
    %224 = tpu.matmul %221, %223, %cst_116 {dimension_numbers = #tpu.dot_dimension_numbers<[1], [0], [0], [1], [0, 0, 1, 1], [], []>} : vector<256x4xbf16>, vector<4x4xbf16>, vector<256x4xf32> -> vector<256x4xf32>
    %225 = arith.addf %220, %224 : vector<256x4xf32>
    %cst_117 = arith.constant 0.000000e+00 : bf16
    %226 = vector.broadcast %cst_117 : bf16 to vector<16x1x4xbf16>
    %227 = vector.extract_strided_slice %181 {offsets = [0, 1, 0], sizes = [16, 15, 4], strides = [1, 1, 1]} : vector<16x16x4xbf16> to vector<16x15x4xbf16>
    %228 = tpu.concatenate %227, %226 in 1 : vector<16x15x4xbf16>, vector<16x1x4xbf16> -> vector<16x16x4xbf16>
    %229 = vector.shape_cast %228 : vector<16x16x4xbf16> to vector<256x4xbf16>
    %c5_118 = arith.constant 5 : index
    %c0_119 = arith.constant 0 : index
    %c0_120 = arith.constant 0 : index
    %230 = vector.load %arg9[%c5_118, %c0_119, %c0_120] : memref<9x4x4xbf16, #tpu.memory_space<vmem>>, vector<1x4x4xbf16>
    %231 = vector.shape_cast %230 : vector<1x4x4xbf16> to vector<4x4xbf16>
    %cst_121 = arith.constant dense<0.000000e+00> : vector<256x4xf32>
    %232 = tpu.matmul %229, %231, %cst_121 {dimension_numbers = #tpu.dot_dimension_numbers<[1], [0], [0], [1], [0, 0, 1, 1], [], []>} : vector<256x4xbf16>, vector<4x4xbf16>, vector<256x4xf32> -> vector<256x4xf32>
    %233 = arith.addf %225, %232 : vector<256x4xf32>
    %cst_122 = arith.constant 0.000000e+00 : bf16
    %234 = vector.broadcast %cst_122 : bf16 to vector<1x16x4xbf16>
    %235 = vector.extract_strided_slice %181 {offsets = [1, 0, 0], sizes = [15, 16, 4], strides = [1, 1, 1]} : vector<16x16x4xbf16> to vector<15x16x4xbf16>
    %236 = tpu.concatenate %235, %234 in 0 : vector<15x16x4xbf16>, vector<1x16x4xbf16> -> vector<16x16x4xbf16>
    %cst_123 = arith.constant 0.000000e+00 : bf16
    %237 = vector.broadcast %cst_123 : bf16 to vector<16x1x4xbf16>
    %238 = vector.extract_strided_slice %236 {offsets = [0, 0, 0], sizes = [16, 15, 4], strides = [1, 1, 1]} : vector<16x16x4xbf16> to vector<16x15x4xbf16>
    %239 = tpu.concatenate %237, %238 in 1 : vector<16x1x4xbf16>, vector<16x15x4xbf16> -> vector<16x16x4xbf16>
    %240 = vector.shape_cast %239 : vector<16x16x4xbf16> to vector<256x4xbf16>
    %c6_124 = arith.constant 6 : index
    %c0_125 = arith.constant 0 : index
    %c0_126 = arith.constant 0 : index
    %241 = vector.load %arg9[%c6_124, %c0_125, %c0_126] : memref<9x4x4xbf16, #tpu.memory_space<vmem>>, vector<1x4x4xbf16>
    %242 = vector.shape_cast %241 : vector<1x4x4xbf16> to vector<4x4xbf16>
    %cst_127 = arith.constant dense<0.000000e+00> : vector<256x4xf32>
    %243 = tpu.matmul %240, %242, %cst_127 {dimension_numbers = #tpu.dot_dimension_numbers<[1], [0], [0], [1], [0, 0, 1, 1], [], []>} : vector<256x4xbf16>, vector<4x4xbf16>, vector<256x4xf32> -> vector<256x4xf32>
    %244 = arith.addf %233, %243 : vector<256x4xf32>
    %cst_128 = arith.constant 0.000000e+00 : bf16
    %245 = vector.broadcast %cst_128 : bf16 to vector<1x16x4xbf16>
    %246 = vector.extract_strided_slice %181 {offsets = [1, 0, 0], sizes = [15, 16, 4], strides = [1, 1, 1]} : vector<16x16x4xbf16> to vector<15x16x4xbf16>
    %247 = tpu.concatenate %246, %245 in 0 : vector<15x16x4xbf16>, vector<1x16x4xbf16> -> vector<16x16x4xbf16>
    %248 = vector.shape_cast %247 : vector<16x16x4xbf16> to vector<256x4xbf16>
    %c7_129 = arith.constant 7 : index
    %c0_130 = arith.constant 0 : index
    %c0_131 = arith.constant 0 : index
    %249 = vector.load %arg9[%c7_129, %c0_130, %c0_131] : memref<9x4x4xbf16, #tpu.memory_space<vmem>>, vector<1x4x4xbf16>
    %250 = vector.shape_cast %249 : vector<1x4x4xbf16> to vector<4x4xbf16>
    %cst_132 = arith.constant dense<0.000000e+00> : vector<256x4xf32>
    %251 = tpu.matmul %248, %250, %cst_132 {dimension_numbers = #tpu.dot_dimension_numbers<[1], [0], [0], [1], [0, 0, 1, 1], [], []>} : vector<256x4xbf16>, vector<4x4xbf16>, vector<256x4xf32> -> vector<256x4xf32>
    %252 = arith.addf %244, %251 : vector<256x4xf32>
    %cst_133 = arith.constant 0.000000e+00 : bf16
    %253 = vector.broadcast %cst_133 : bf16 to vector<1x16x4xbf16>
    %254 = vector.extract_strided_slice %181 {offsets = [1, 0, 0], sizes = [15, 16, 4], strides = [1, 1, 1]} : vector<16x16x4xbf16> to vector<15x16x4xbf16>
    %255 = tpu.concatenate %254, %253 in 0 : vector<15x16x4xbf16>, vector<1x16x4xbf16> -> vector<16x16x4xbf16>
    %cst_134 = arith.constant 0.000000e+00 : bf16
    %256 = vector.broadcast %cst_134 : bf16 to vector<16x1x4xbf16>
    %257 = vector.extract_strided_slice %255 {offsets = [0, 1, 0], sizes = [16, 15, 4], strides = [1, 1, 1]} : vector<16x16x4xbf16> to vector<16x15x4xbf16>
    %258 = tpu.concatenate %257, %256 in 1 : vector<16x15x4xbf16>, vector<16x1x4xbf16> -> vector<16x16x4xbf16>
    %259 = vector.shape_cast %258 : vector<16x16x4xbf16> to vector<256x4xbf16>
    %c8_135 = arith.constant 8 : index
    %c0_136 = arith.constant 0 : index
    %c0_137 = arith.constant 0 : index
    %260 = vector.load %arg9[%c8_135, %c0_136, %c0_137] : memref<9x4x4xbf16, #tpu.memory_space<vmem>>, vector<1x4x4xbf16>
    %261 = vector.shape_cast %260 : vector<1x4x4xbf16> to vector<4x4xbf16>
    %cst_138 = arith.constant dense<0.000000e+00> : vector<256x4xf32>
    %262 = tpu.matmul %259, %261, %cst_138 {dimension_numbers = #tpu.dot_dimension_numbers<[1], [0], [0], [1], [0, 0, 1, 1], [], []>} : vector<256x4xbf16>, vector<4x4xbf16>, vector<256x4xf32> -> vector<256x4xf32>
    %263 = arith.addf %252, %262 : vector<256x4xf32>
    %264 = vector.extract_strided_slice %0 {offsets = [6, 0], sizes = [1, 4], strides = [1, 1]} : vector<7x4xf32> to vector<1x4xf32>
    %265 = vector.broadcast %264 : vector<1x4xf32> to vector<256x4xf32>
    %266 = arith.mulf %263, %265 : vector<256x4xf32>
    %267 = vector.extract_strided_slice %1 {offsets = [6, 0], sizes = [1, 4], strides = [1, 1]} : vector<7x4xf32> to vector<1x4xf32>
    %268 = vector.broadcast %267 : vector<1x4xf32> to vector<256x4xf32>
    %269 = arith.addf %266, %268 : vector<256x4xf32>
    %cst_139 = arith.constant 0.000000e+00 : f32
    %270 = vector.broadcast %cst_139 : f32 to vector<256x4xf32>
    %271 = arith.maximumf %269, %270 : vector<256x4xf32>
    %c0_140 = arith.constant 0 : index
    %c0_141 = arith.constant 0 : index
    %272 = vector.load %arg10[%c0_140, %c0_141] : memref<5x4xbf16, #tpu.memory_space<vmem>>, vector<5x4xbf16>
    %273 = arith.truncf %271 : vector<256x4xf32> to vector<256x4xbf16>
    %cst_142 = arith.constant dense<0.000000e+00> : vector<5x256xf32>
    %274 = tpu.matmul %272, %273, %cst_142 {dimension_numbers = #tpu.dot_dimension_numbers<[1], [1], [0], [0], [0, 0, 1, 0], [], []>} : vector<5x4xbf16>, vector<256x4xbf16>, vector<5x256xf32> -> vector<5x256xf32>
    %c0_143 = arith.constant 0 : index
    %c0_144 = arith.constant 0 : index
    %275 = vector.load %arg11[%c0_143, %c0_144] : memref<5x1xf32, #tpu.memory_space<vmem>>, vector<5x1xf32>
    %276 = vector.broadcast %275 : vector<5x1xf32> to vector<5x256xf32>
    %277 = arith.addf %274, %276 : vector<5x256xf32>
    %278 = vector.shape_cast %277 : vector<5x256xf32> to vector<1x5x256xf32>
    %c0_145 = arith.constant 0 : index
    %c0_146 = arith.constant 0 : index
    %c0_147 = arith.constant 0 : index
    %279 = vector.load %arg14[%c0_145, %c0_146, %c0_147] : memref<1x5x256xf32, #tpu.memory_space<vmem>>, vector<1x5x256xf32>
    tpu.vector_store %arg14[%c0_145, %c0_146, %c0_147], %278 {strides = array<i32>} : memref<1x5x256xf32, #tpu.memory_space<vmem>>, vector<1x5x256xf32>,
    return
  }
  func.func @transform_0(%arg0: i32) -> (i32, i32, i32) {
    %c0_i32 = arith.constant 0 : i32
    %c0_i32_0 = arith.constant 0 : i32
    %c0_i32_1 = arith.constant 0 : i32
    return %arg0, %c0_i32, %c0_i32_0 : i32, i32, i32
  }
  func.func @transform_1(%arg0: i32) -> (i32, i32) {
    %c0_i32 = arith.constant 0 : i32
    %c0_i32_0 = arith.constant 0 : i32
    %c0_i32_1 = arith.constant 0 : i32
    return %c0_i32, %c0_i32_0 : i32, i32
  }
  func.func @transform_2(%arg0: i32) -> (i32, i32, i32) {
    %c0_i32 = arith.constant 0 : i32
    %c0_i32_0 = arith.constant 0 : i32
    %c0_i32_1 = arith.constant 0 : i32
    %c0_i32_2 = arith.constant 0 : i32
    return %c0_i32, %c0_i32_0, %c0_i32_1 : i32, i32, i32
  }
  func.func @transform_3(%arg0: i32) -> (i32, i32, i32) {
    %c0_i32 = arith.constant 0 : i32
    %c0_i32_0 = arith.constant 0 : i32
    %c0_i32_1 = arith.constant 0 : i32
    %c0_i32_2 = arith.constant 0 : i32
    return %c0_i32, %c0_i32_0, %c0_i32_1 : i32, i32, i32
  }
  func.func @transform_4(%arg0: i32) -> (i32, i32, i32) {
    %c0_i32 = arith.constant 0 : i32
    %c0_i32_0 = arith.constant 0 : i32
    %c0_i32_1 = arith.constant 0 : i32
    %c0_i32_2 = arith.constant 0 : i32
    return %c0_i32, %c0_i32_0, %c0_i32_1 : i32, i32, i32
  }
  func.func @transform_5(%arg0: i32) -> (i32, i32) {
    %c0_i32 = arith.constant 0 : i32
    %c0_i32_0 = arith.constant 0 : i32
    %c0_i32_1 = arith.constant 0 : i32
    return %c0_i32, %c0_i32_0 : i32, i32
  }
  func.func @transform_6(%arg0: i32) -> (i32, i32, i32) {
    %c0_i32 = arith.constant 0 : i32
    %c0_i32_0 = arith.constant 0 : i32
    %c0_i32_1 = arith.constant 0 : i32
    %c0_i32_2 = arith.constant 0 : i32
    return %c0_i32, %c0_i32_0, %c0_i32_1 : i32, i32, i32
  }
  func.func @transform_7(%arg0: i32) -> (i32, i32) {
    %c0_i32 = arith.constant 0 : i32
    %c0_i32_0 = arith.constant 0 : i32
    %c0_i32_1 = arith.constant 0 : i32
    return %c0_i32, %c0_i32_0 : i32, i32
  }
  func.func @transform_8(%arg0: i32) -> (i32, i32, i32) {
    %c0_i32 = arith.constant 0 : i32
    %c0_i32_0 = arith.constant 0 : i32
    %c0_i32_1 = arith.constant 0 : i32
    %c0_i32_2 = arith.constant 0 : i32
    return %c0_i32, %c0_i32_0, %c0_i32_1 : i32, i32, i32
  }
  func.func @transform_9(%arg0: i32) -> (i32, i32) {
    %c0_i32 = arith.constant 0 : i32
    %c0_i32_0 = arith.constant 0 : i32
    %c0_i32_1 = arith.constant 0 : i32
    return %c0_i32, %c0_i32_0 : i32, i32
  }
  func.func @transform_10(%arg0: i32) -> (i32, i32) {
    %c0_i32 = arith.constant 0 : i32
    %c0_i32_0 = arith.constant 0 : i32
    %c0_i32_1 = arith.constant 0 : i32
    return %c0_i32, %c0_i32_0 : i32, i32
  }
  func.func @transform_11(%arg0: i32) -> (i32, i32) {
    %c0_i32 = arith.constant 0 : i32
    %c0_i32_0 = arith.constant 0 : i32
    %c0_i32_1 = arith.constant 0 : i32
    return %c0_i32, %c0_i32_0 : i32, i32
  }
  func.func @transform_12(%arg0: i32) -> (i32, i32) {
    %c0_i32 = arith.constant 0 : i32
    %c0_i32_0 = arith.constant 0 : i32
    %c0_i32_1 = arith.constant 0 : i32
    return %c0_i32, %c0_i32_0 : i32, i32
  }
  func.func @transform_13(%arg0: i32) -> (i32, i32, i32) {
    %c0_i32 = arith.constant 0 : i32
    %c0_i32_0 = arith.constant 0 : i32
    %c0_i32_1 = arith.constant 0 : i32
    return %arg0, %c0_i32, %c0_i32_0 : i32, i32, i32
  }
}

</mosaic_0001>

<bundles_post_ra>
// kernel: tpu_custom_call.1
= control target key start
LH: loop header
LB: loop body
LE: loop exit
PB: predicated region body
PF: predicated region fallthrough
CT: control target
= control target key end

     0   :  { %s9795_s25 = smov 0   ;;  %s11916_s0 = inlined_call_operand.vmem [shape: f32[2,32,256], index: 0, kind: input, shape index: {}]   ;;  %s11917_s1 = inlined_call_operand.vmem [shape: bf16[32,4], index: 1, kind: input, shape index: {}]   ;;  %s11918_s2 = inlined_call_operand.vmem [shape: bf16[9,32,4], index: 2, kind: input, shape index: {}]   ;;  %s11919_s3 = inlined_call_operand.vmem [shape: bf16[9,32,4], index: 3, kind: input, shape index: {}]   ;;  %s11920_s4 = inlined_call_operand.vmem [shape: bf16[9,32,4], index: 4, kind: input, shape index: {}]   ;;  %s11921_s5 = inlined_call_operand.vmem [shape: bf16[32,4], index: 5, kind: input, shape index: {}]   ;;  %s11922_s6 = inlined_call_operand.vmem [shape: bf16[4,4,4], index: 6, kind: input, shape index: {}]   ;;  %s11923_s7 = inlined_call_operand.vmem [shape: bf16[4,4], index: 7, kind: input, shape index: {}]   ;;  %s11924_s8 = inlined_call_operand.vmem [shape: bf16[9,4,4], index: 8, kind: input, shape index: {}]   ;;  %s11925_s9 = inlined_call_operand.vmem [shape: bf16[5,4], index: 9, kind: input, shape index: {}]   ;;  %s11926_s10 = inlined_call_operand.vmem [shape: f32[5,1], index: 10, kind: input, shape index: {}]   ;;  %s11927_s11 = inlined_call_operand.vmem [shape: f32[7,4], index: 11, kind: input, shape index: {}]   ;;  %s11928_s12 = inlined_call_operand.vmem [shape: f32[7,4], index: 12, kind: input, shape index: {}]   ;;  %s11929_s13 = inlined_call_operand.vmem [shape: f32[2,5,256], index: 13, kind: output, shape index: {}]  }
   0x1 LB: > { %s7201_s26 = sadd.s32 4294967295, %s9719_s25   ;;  %p7205_p0 = scmp.ge.s32.totalorder %s9719_s25, 1  ;;  %s9719_s25 = sphi %s9795_s25, %s23_s25  }
   0x2   : > { %p387_p1 = scmp.lt.s32.totalorder %s9719_s25, 3 }
   0x4   : > { %p388_p2 = pnand %p7205_p0, %p387_p1 }
   0x6   : > { %391 = sbr.rel (%p388_p2) target bundleno = 3392 (0xd40), region = 72 }
   0xd   : > { %p431_p3 = scmp.lt.s32.totalorder %s7201_s26, 1  ;;  %v9683_v6 = vld [vmem:[%s11917_s1] sm:$0xff]   ;;  %v9684_v9 = vld [vmem:[%s11917_s1 + $0x8] sm:$0xff]   ;;  %v9685_v10 = vld [vmem:[%s11918_s2 + $0x10] sm:$0xff]   ;;  %v11930_v11 = vmov 0   ;;  %vm549_vm0 = vcmask 261120  }
   0xe   : > { %8150 = vmatprep.subr.bf16.mxu1 %v9683_v6  ;;  %v9686_v21 = vld [vmem:[%s11918_s2 + $0x18] sm:$0xff]   ;;  %v9687_v23 = vld [vmem:[%s11918_s2] sm:$0xff]   ;;  %v9688_v62 = vld [vmem:[%s11918_s2 + $0x8] sm:$0xff]   ;;  %vm1274_vm1 = vcmask 1041408   ;;  %vm890_vm2 = vcmask 1045504   ;;  %vm3019_vm3 = vcmask 31744  }
   0xf   : > { %s11985_s26 = smov (!%p431_p3, %s7201_s26), 1  ;;  %8151 = vmatpush3.bf16.msra.mxu1 %v9683_v6  ;;  %v9689_v63 = vld [vmem:[%s11918_s2 + $0x20] sm:$0xff]   ;;  %vm9724_vm4 = vmmov 0   ;;  %vm5451_vm5 = vcmask 1047552   ;;  %vm5452_vm6 = vsmask.f32 7424 }
  0x10   : > { %s7666_s27 = sshll.u32 %s11985_s26, 6  ;;  %8152 = vmatprep.subr.bf16.mxu1 %v9684_v9  ;;  %vm11184_vm7 = vmand %vm5451_vm5, %vm5452_vm6  ;;  %vm4973_vm8 = vcmask 1040384   ;;  %vm4974_vm9 = vsmask.f32 256  ;;  %s7667_s20 = sshll.u32 %s11985_s26, 4 }
  0x11   : > { %s435_s30 = scalar_lea.vmem %s11916_s0, %s7666_s27  ;;  %vm11205_vm10 = vmand %vm4973_vm8, %vm4974_vm9  ;;  %s440_s23 = scalar_lea.vmem %s11929_s13, %s7667_s20 }
  0x12   : > { %v445_v0 = vld [vmem:[%s435_s30] sm:$0xff]  ;;  %v446_v1 = vld [vmem:[%s435_s30 + $0x8] sm:$0xff]  ;;  %v447_v2 = vld [vmem:[%s435_s30 + $0x10] sm:$0xff] }
  0x13   : > { %453 = vxpose.xlu0.b32.start [1/4] (short) %v445_v0, 128  ;;  %485 = vxpose.xlu1.b32.start [1/4] (short) %v446_v1, 128  ;;  %v448_v3 = vld [vmem:[%s435_s30 + $0x18] sm:$0xff]  ;;  %v449_v4 = vld [vmem:[%s435_s30 + $0x20] sm:$0xff]  ;;  %v450_v5 = vld [vmem:[%s435_s30 + $0x28] sm:$0xff] }
  0x14   : > { %v451_v7 = vld [vmem:[%s435_s30 + $0x30] sm:$0xff]  ;;  %v452_v8 = vld [vmem:[%s435_s30 + $0x38] sm:$0xff]  ;;  %8153 = vmatpush3.bf16.msra.mxu1 %v9684_v9  ;;  %v9901_v0 = vld [vmem:[%s11922_s6] sm:$0x3] }
  0x15   : > { %8186 = vmatprep.subr.bf16.mxu1 %v9685_v10  ;;  %9649 = vmatprep.subr.msk.bf16.mxu0 %vm1274_vm1, %v9901_v0  ;;  %v9907_v1 = vsel %vm1274_vm1, %v9901_v0, 0 }
  0x16   : > { %8545 = vmatpush3.bf16.msra.mxu0 %v9907_v1 }
  0x17   : > { %454 = vxpose.xlu0.b32.cont [2/4] (short) %v447_v2, 128  ;;  %486 = vxpose.xlu1.b32.cont [2/4] (short) %v448_v3, 128  ;;  %v885_v2 = vrot.slane %v11930_v11, 2 }
  0x19   : > { %v9927_v3 = vsel %vm890_vm2, 0, %v885_v2 }
  0x1b   : > { %455 = vxpose.xlu0.b32.cont [3/4] (short) %v449_v4, 128  ;;  %487 = vxpose.xlu1.b32.cont [3/4] (short) %v450_v5, 128  ;;  %v9690_v4 = vld [vmem:[%s11918_s2 + $0x28] sm:$0xff]   ;;  %v9691_v5 = vld [vmem:[%s11918_s2 + $0x30] sm:$0xff]  }
  0x1f   : > { %456 = vxpose.xlu0.b32.end [4/4] (short) %v451_v7, 128  ;;  %488 = vxpose.xlu1.b32.end [4/4] (short) %v452_v8, 128 }
  0x48   : > { %9682 = vset.pattern.permute.xlu0 %v11930_v11 }
  0x93   : > { %v469_v12 = vpop.trf.xlu0  ;;  %v501_v13 = vpop.trf.xlu1 }
  0x97   : > { %v470_v14 = vpop.trf.xlu0  ;;  %v502_v16 = vpop.trf.xlu1 }
  0x98   : > { %v9819_v15 = vpack.c.bf16 %v470_v14, %v469_v12  ;;  %v9855_v49 = vpack.c.bf16 %v502_v16, %v501_v13  ;;  %v1269_v16 = vrot.slane %v11930_v11, 6 }
  0x9a   : > { %8154 = vmatprep.mubr.msk.bf16.mxu1 %vm549_vm0, %v9819_v15  ;;  %v886_v6 = vrot.slane %v9819_v15, 2 }
  0x9b   : > { %v471_v17 = vpop.trf.xlu0  ;;  %v503_v19 = vpop.trf.xlu1 }
  0x9c   : > { %v9963_v7 = vsel %vm890_vm2, 0, %v886_v6 }
  0x9f   : > { %v472_v18 = vpop.trf.xlu0  ;;  %v504_v24 = vpop.trf.xlu1 }
  0xa0   : > { %v9823_v20 = vpack.c.bf16 %v472_v18, %v471_v17  ;;  %v9861_v51 = vpack.c.bf16 %v504_v24, %v503_v19  ;;  %v9989_v19 = vld [vmem:[%s11927_s11] sm:$0x7f] }
  0xa2   : > { %8155 = vmatmul.mubr.msk.bf16.vlgmr.msra.gmra.mrb[0].mxu1 %vm549_vm0, %v9823_v20  ;;  %v887_v8 = vrot.slane %v9823_v20, 2 }
  0xa3   : > { %v473_v22 = vpop.trf.xlu0  ;;  %8187 = vmatpush3.bf16.msra.mxu1 %v9685_v10  ;;  %v505_v28 = vpop.trf.xlu1  ;;  %v759_v10 = vlaneseq }
  0xa4   : > { %8188 = vmatprep.subr.bf16.mxu1 %v9686_v21  ;;  %v9970_v12 = vsel %vm890_vm2, 0, %v887_v8 }
  0xa5   : > { %v9977_v14 = vshrl.u32 %v759_v10, 7 }
  0xa7   : > { %v474_v25 = vpop.trf.xlu0  ;;  %8189 = vmatpush3.bf16.msra.mxu1 %v9686_v21  ;;  %v506_v31 = vpop.trf.xlu1  ;;  %v9984_v18 = vsub.s32 0, %v9977_v14  ;;  %v9992_v21 = vsel %vm1274_vm1, %v1269_v16, 0 }
  0xa8   : > { %v9833_v26 = vpack.c.bf16 %v474_v25, %v473_v22  ;;  %8222 = vmatprep.subr.bf16.mxu1 %v9687_v23  ;;  %v9863_v52 = vpack.c.bf16 %v506_v31, %v505_v28 }
  0xa9   : > { %11946 = vst [vmem:[#allocation2_spill] sm:$0xff] %v9984_v18  ;;  %v10006_v24 = vrot.slane %v9989_v19, %v9984_v18 }
  0xaa   : > { %8158 = vmatprep.mubr.msk.bf16.mxu1 %vm549_vm0, %v9833_v26  ;;  %v888_v9 = vrot.slane %v9833_v26, 2 }
  0xab   : > { %v475_v27 = vpop.trf.xlu0  ;;  %v507_v34 = vpop.trf.xlu1 }
  0xac   : > { %v9975_v13 = vsel %vm890_vm2, 0, %v888_v9 }
  0xaf   : > { %v476_v29 = vpop.trf.xlu0  ;;  %v508_v37 = vpop.trf.xlu1 }
  0xb0   : > { %v9837_v30 = vpack.c.bf16 %v476_v29, %v475_v27  ;;  %v9869_v54 = vpack.c.bf16 %v508_v37, %v507_v34  ;;  %v9692_v37 = vld [vmem:[%s11918_s2 + $0x38] sm:$0xff]  }
  0xb2   : > { %8159 = vmatmul.mubr.msk.bf16.gmra.mrb[4].mxu1 %vm549_vm0, %v9837_v30  ;;  %v889_v17 = vrot.slane %v9837_v30, 2 }
  0xb3   : > { %v477_v32 = vpop.trf.xlu0  ;;  %v509_v41 = vpop.trf.xlu1 }
  0xb4   : > { %v9995_v22 = vsel %vm890_vm2, 0, %v889_v17 }
  0xb7   : > { %v478_v33 = vpop.trf.xlu0  ;;  %v510_v44 = vpop.trf.xlu1 }
  0xb8   : > { %v9841_v35 = vpack.c.bf16 %v478_v33, %v477_v32  ;;  %v9871_v55 = vpack.c.bf16 %v510_v44, %v509_v41 }
  0xba   : > { %8162 = vmatprep.mubr.msk.bf16.mxu1 %vm549_vm0, %v9841_v35 }
  0xbb   : > { %v479_v36 = vpop.trf.xlu0  ;;  %v511_v47 = vpop.trf.xlu1 }
  0xbf   : > { %v480_v38 = vpop.trf.xlu0  ;;  %v512_v50 = vpop.trf.xlu1 }
  0xc0   : > { %v9845_v39 = vpack.c.bf16 %v480_v38, %v479_v36  ;;  %v9877_v58 = vpack.c.bf16 %v512_v50, %v511_v47 }
  0xc2   : > { %8163 = vmatmul.mubr.msk.bf16.gmra.mrb[8].mxu1 %vm549_vm0, %v9845_v39 }
  0xc3   : > { %v481_v40 = vpop.trf.xlu0  ;;  %v513_v53 = vpop.trf.xlu1 }
  0xc7   : > { %v482_v42 = vpop.trf.xlu0  ;;  %v514_v56 = vpop.trf.xlu1 }
  0xc8   : > { %v9849_v43 = vpack.c.bf16 %v482_v42, %v481_v40  ;;  %v9879_v59 = vpack.c.bf16 %v514_v56, %v513_v53 }
  0xca   : > { %8166 = vmatprep.mubr.msk.bf16.mxu1 %vm549_vm0, %v9849_v43 }
  0xcb   : > { %v483_v45 = vpop.trf.xlu0  ;;  %v515_v57 = vpop.trf.xlu1 }
  0xcf   : > { %v484_v46 = vpop.trf.xlu0  ;;  %v516_v60 = vpop.trf.xlu1 }
  0xd0   : > { %v9853_v48 = vpack.c.bf16 %v484_v46, %v483_v45  ;;  %v9885_v61 = vpack.c.bf16 %v516_v60, %v515_v57  ;;  %v10032_v46 = vld [vmem:[%s11918_s2 + $0x40] sm:$0xff]  }
  0xd2   : > { %8167 = vmatmul.mubr.msk.bf16.gmra.mrb[12].mxu1 %vm549_vm0, %v9853_v48 }
  0xd3   : > { %8170 = vmatprep.mubr.msk.bf16.mxu1 %vm549_vm0, %v9855_v49 }
  0xda   : > { %8171 = vmatmul.mubr.msk.bf16.gmra.mrb[16].mxu1 %vm549_vm0, %v9861_v51 }
  0xdb   : > { %8174 = vmatprep.mubr.msk.bf16.mxu1 %vm549_vm0, %v9863_v52 }
  0xe2   : > { %8175 = vmatmul.mubr.msk.bf16.gmra.mrb[20].mxu1 %vm549_vm0, %v9869_v54 }
  0xe3   : > { %8178 = vmatprep.mubr.msk.bf16.mxu1 %vm549_vm0, %v9871_v55 }
  0xea   : > { %8179 = vmatmul.mubr.msk.bf16.gmra.mrb[24].mxu1 %vm549_vm0, %v9877_v58 }
  0xeb   : > { %8182 = vmatprep.mubr.msk.bf16.mxu1 %vm549_vm0, %v9879_v59 }
  0xf2   : > { %8183 = vmatmul.mubr.msk.bf16.gmra.mrb[28].mxu1 %vm549_vm0, %v9885_v61 }
  0xf3   : > { %8190 = vmatprep.mubr.bf16.mxu1 %v11930_v11 }
  0xfa   : > { %8191 = vmatmul.mubr.bf16.vlgmr.msra.gmra.mrb[32].mxu1 %v11930_v11 }
  0xfb   : > { %8223 = vmatpush3.bf16.msra.mxu1 %v9687_v23  ;;  %8194 = vmatprep.mubr.bf16.mxu1 %v11930_v11  ;;  %v10000_v23 = vld [vmem:[%s11928_s12] sm:$0x7f] }
  0xfc   : > { %8224 = vmatprep.subr.bf16.mxu1 %v9688_v62  ;;  %v10012_v25 = vrot.slane %v10000_v23, %v9984_v18 }
  0xff   : > { %8225 = vmatpush3.bf16.msra.mxu1 %v9688_v62 }
 0x100   : > { %8258 = vmatprep.subr.bf16.mxu1 %v9689_v63 }
 0x102   : > { %8195 = vmatmul.mubr.bf16.gmra.mrb[36].mxu1 %v11930_v11 }
 0x103   : > { %8198 = vmatprep.mubr.bf16.mxu1 %v11930_v11 }
 0x10a   : > { %8199 = vmatmul.mubr.bf16.gmra.mrb[40].mxu1 %v11930_v11 }
 0x10b   : > { %8202 = vmatprep.mubr.bf16.mxu1 %v11930_v11 }
 0x112   : > { %8203 = vmatmul.mubr.bf16.gmra.mrb[44].mxu1 %v11930_v11 }
 0x113   : > { %8206 = vmatprep.mubr.bf16.mxu1 %v11930_v11 }
 0x11a   : > { %8207 = vmatmul.mubr.bf16.gmra.mrb[48].mxu1 %v11930_v11 }
 0x11b   : > { %8210 = vmatprep.mubr.bf16.mxu1 %v11930_v11 }
 0x122   : > { %8211 = vmatmul.mubr.bf16.gmra.mrb[52].mxu1 %v11930_v11 }
 0x123   : > { %8214 = vmatprep.mubr.msk.bf16.mxu1 %vm549_vm0, %v9819_v15 }
 0x12a   : > { %8215 = vmatmul.mubr.msk.bf16.gmra.mrb[56].mxu1 %vm549_vm0, %v9823_v20 }
 0x12b   : > { %8218 = vmatprep.mubr.msk.bf16.mxu1 %vm549_vm0, %v9833_v26 }
 0x132   : > { %8219 = vmatmul.mubr.msk.bf16.gmra.mrb[60].mxu1 %vm549_vm0, %v9837_v30 }
 0x133   : > { %8226 = vmatprep.mubr.msk.bf16.mxu1 %vm549_vm0, %v9927_v3 }
 0x13a   : > { %8227 = vmatmul.mubr.msk.bf16.vlgmr.msra.gmra.mrb[32].mxu1 %vm549_vm0, %v9927_v3 }
 0x13b   : > { %8259 = vmatpush3.bf16.msra.mxu1 %v9689_v63  ;;  %8230 = vmatprep.mubr.msk.bf16.mxu1 %vm549_vm0, %v9927_v3 }
 0x13c   : > { %8260 = vmatprep.subr.bf16.mxu1 %v9690_v4 }
 0x13f   : > { %8261 = vmatpush3.bf16.msra.mxu1 %v9690_v4 }
 0x140   : > { %8294 = vmatprep.subr.bf16.mxu1 %v9691_v5 }
 0x142   : > { %8231 = vmatmul.mubr.msk.bf16.gmra.mrb[36].mxu1 %vm549_vm0, %v9927_v3 }
 0x143   : > { %8234 = vmatprep.mubr.msk.bf16.mxu1 %vm549_vm0, %v9927_v3 }
 0x14a   : > { %8235 = vmatmul.mubr.msk.bf16.gmra.mrb[40].mxu1 %vm549_vm0, %v9927_v3 }
 0x14b   : > { %8238 = vmatprep.mubr.msk.bf16.mxu1 %vm549_vm0, %v9927_v3 }
 0x152   : > { %8239 = vmatmul.mubr.msk.bf16.gmra.mrb[44].mxu1 %vm549_vm0, %v9927_v3 }
 0x153   : > { %8242 = vmatprep.mubr.msk.bf16.mxu1 %vm549_vm0, %v9927_v3 }
 0x15a   : > { %8243 = vmatmul.mubr.msk.bf16.gmra.mrb[48].mxu1 %vm549_vm0, %v9927_v3 }
 0x15b   : > { %8246 = vmatprep.mubr.msk.bf16.mxu1 %vm549_vm0, %v9927_v3 }
 0x162   : > { %8247 = vmatmul.mubr.msk.bf16.gmra.mrb[52].mxu1 %vm549_vm0, %v9927_v3 }
 0x163   : > { %8250 = vmatprep.mubr.msk.bf16.mxu1 %vm549_vm0, %v9963_v7 }
 0x16a   : > { %8251 = vmatmul.mubr.msk.bf16.gmra.mrb[56].mxu1 %vm549_vm0, %v9970_v12 }
 0x16b   : > { %8254 = vmatprep.mubr.msk.bf16.mxu1 %vm549_vm0, %v9975_v13 }
 0x172   : > { %8255 = vmatmul.mubr.msk.bf16.gmra.mrb[60].mxu1 %vm549_vm0, %v9995_v22 }
 0x173   : > { %8262 = vmatprep.mubr.msk.bf16.mxu1 %vm549_vm0, %v9992_v21 }
 0x175   : > { %v8156_v27 = vpop.f32.mrb[0].mxu1 }
 0x176   : > { %v765_v28 = vmul.f32 %v8156_v27, %v10006_v24  ;;  %v632_v29 = vpop.f32.mrb[1].mxu1 }
 0x177   : > { %v763_v31 = vmul.f32 %v10006_v24, %v632_v29  ;;  %v8157_v32 = vpop.f32.mrb[2].mxu1 }
 0x178   : > { %v801_v33 = vadd.f32 %v10012_v25, %v765_v28  ;;  %v766_v34 = vmul.f32 %v8157_v32, %v10006_v24  ;;  %v635_v36 = vpop.f32.mrb[3].mxu1 }
 0x179   : > { %v799_v38 = vadd.f32 %v10012_v25, %v763_v31  ;;  %v764_v40 = vmul.f32 %v10006_v24, %v635_v36 }
 0x17a   : > { %v802_v41 = vadd.f32 %v10012_v25, %v766_v34  ;;  %8263 = vmatmul.mubr.msk.bf16.vlgmr.msra.gmra.mrb[32].mxu1 %vm549_vm0, %v9992_v21  ;;  %v833_v44 = vmax.f32 %v801_v33, 0.0 }
 0x17b   : > { %v800_v42 = vadd.f32 %v10012_v25, %v764_v40  ;;  %8295 = vmatpush3.bf16.msra.mxu1 %v9691_v5  ;;  %8266 = vmatprep.mubr.msk.bf16.mxu1 %vm549_vm0, %v9992_v21  ;;  %v831_v47 = vmax.f32 %v799_v38, 0.0 }
 0x17c   : > { %v834_v45 = vmax.f32 %v802_v41, 0.0  ;;  %8296 = vmatprep.subr.bf16.mxu1 %v9692_v37 }
 0x17d   : > { %v832_v50 = vmax.f32 %v800_v42, 0.0 }
 0x17e   : > { %v864_v53 = vpack.c.bf16 %v834_v45, %v833_v44 }
 0x17f   : > { %v863_v56 = vpack.c.bf16 %v832_v50, %v831_v47  ;;  %8297 = vmatpush3.bf16.msra.mxu1 %v9692_v37 }
 0x180   : > { %8330 = vmatprep.subr.bf16.mxu1 %v10032_v46 }
 0x181   : > { %8546 = vmatprep.mubr.msk.bf16.mxu0 %vm3019_vm3, %v863_v56 }
 0x182   : > { %8267 = vmatmul.mubr.msk.bf16.gmra.mrb[36].mxu1 %vm549_vm0, %v9992_v21  ;;  %8547 = vmatmul.mubr.msk.bf16.vlgmr.msra.gmra.mrb[0].mxu0 %vm3019_vm3, %v864_v53 }
 0x183   : > { %8270 = vmatprep.mubr.msk.bf16.mxu1 %vm549_vm0, %v9992_v21 }
 0x185   : > { %v8160_v57 = vpop.f32.mrb[4].mxu1 }
 0x186   : > { %v769_v60 = vmul.f32 %v8160_v57, %v10006_v24  ;;  %v648_v62 = vpop.f32.mrb[5].mxu1 }
 0x187   : > { %v767_v63 = vmul.f32 %v10006_v24, %v648_v62  ;;  %v8161_v2 = vpop.f32.mrb[6].mxu1 }
 0x188   : > { %v805_v4 = vadd.f32 %v10012_v25, %v769_v60  ;;  %v770_v5 = vmul.f32 %v8161_v2, %v10006_v24  ;;  %v651_v6 = vpop.f32.mrb[7].mxu1 }
 0x189   : > { %v803_v8 = vadd.f32 %v10012_v25, %v767_v63  ;;  %v768_v9 = vmul.f32 %v10006_v24, %v651_v6  ;;  %v1270_v63 = vrot.slane %v9819_v15, 6  ;;  %v1271_v6 = vrot.slane %v9823_v20, 6 }
 0x18a   : > { %v806_v10 = vadd.f32 %v10012_v25, %v770_v5  ;;  %8271 = vmatmul.mubr.msk.bf16.gmra.mrb[40].mxu1 %vm549_vm0, %v9992_v21  ;;  %v837_v17 = vmax.f32 %v805_v4, 0.0 }
 0x18b   : > { %v804_v16 = vadd.f32 %v10012_v25, %v768_v9  ;;  %8274 = vmatprep.mubr.msk.bf16.mxu1 %vm549_vm0, %v9992_v21  ;;  %v835_v28 = vmax.f32 %v803_v8, 0.0  ;;  %v10077_v4 = vsel %vm1274_vm1, %v1270_v63, 0 }
 0x18c   : > { %v838_v27 = vmax.f32 %v806_v10, 0.0  ;;  %v1272_v10 = vrot.slane %v9833_v26, 6 }
 0x18d   : > { %v836_v29 = vmax.f32 %v804_v16, 0.0 }
 0x18e   : > { %v866_v31 = vpack.c.bf16 %v838_v27, %v837_v17 }
 0x18f   : > { %v865_v32 = vpack.c.bf16 %v836_v29, %v835_v28 }
 0x191   : > { %8550 = vmatprep.mubr.msk.bf16.mxu0 %vm3019_vm3, %v865_v32 }
 0x192   : > { %8275 = vmatmul.mubr.msk.bf16.gmra.mrb[44].mxu1 %vm549_vm0, %v9992_v21  ;;  %8551 = vmatmul.mubr.msk.bf16.gmra.mrb[4].mxu0 %vm3019_vm3, %v866_v31 }
 0x193   : > { %8278 = vmatprep.mubr.msk.bf16.mxu1 %vm549_vm0, %v9992_v21 }
 0x195   : > { %v8164_v33 = vpop.f32.mrb[8].mxu1 }
 0x196   : > { %v773_v34 = vmul.f32 %v8164_v33, %v10006_v24  ;;  %v664_v36 = vpop.f32.mrb[9].mxu1  ;;  %v10090_v33 = vsel %vm1274_vm1, %v1271_v6, 0 }
 0x197   : > { %v771_v37 = vmul.f32 %v10006_v24, %v664_v36  ;;  %v8165_v38 = vpop.f32.mrb[10].mxu1  ;;  %v10096_v36 = vsel %vm1274_vm1, %v1272_v10, 0 }
 0x198   : > { %v809_v40 = vadd.f32 %v10012_v25, %v773_v34  ;;  %v774_v41 = vmul.f32 %v8165_v38, %v10006_v24  ;;  %v667_v42 = vpop.f32.mrb[11].mxu1 }
 0x199   : > { %v807_v44 = vadd.f32 %v10012_v25, %v771_v37  ;;  %v772_v45 = vmul.f32 %v10006_v24, %v667_v42 }
 0x19a   : > { %v810_v47 = vadd.f32 %v10012_v25, %v774_v41  ;;  %8279 = vmatmul.mubr.msk.bf16.gmra.mrb[48].mxu1 %vm549_vm0, %v9992_v21  ;;  %v841_v53 = vmax.f32 %v809_v40, 0.0 }
 0x19b   : > { %v808_v50 = vadd.f32 %v10012_v25, %v772_v45  ;;  %8282 = vmatprep.mubr.msk.bf16.mxu1 %vm549_vm0, %v9992_v21  ;;  %v839_v57 = vmax.f32 %v807_v44, 0.0  ;;  %v1273_v45 = vrot.slane %v9837_v30, 6 }
 0x19c   : > { %v842_v56 = vmax.f32 %v810_v47, 0.0 }
 0x19d   : > { %v840_v60 = vmax.f32 %v808_v50, 0.0 }
 0x19e   : > { %v868_v62 = vpack.c.bf16 %v842_v56, %v841_v53 }
 0x19f   : > { %v867_v2 = vpack.c.bf16 %v840_v60, %v839_v57 }
 0x1a1   : > { %8554 = vmatprep.mubr.msk.bf16.mxu0 %vm3019_vm3, %v867_v2 }
 0x1a2   : > { %8283 = vmatmul.mubr.msk.bf16.gmra.mrb[52].mxu1 %vm549_vm0, %v9992_v21  ;;  %8555 = vmatmul.mubr.msk.bf16.gmra.mrb[8].mxu0 %vm3019_vm3, %v868_v62 }
 0x1a3   : > { %8286 = vmatprep.mubr.msk.bf16.mxu1 %vm549_vm0, %v10077_v4 }
 0x1a5   : > { %v8168_v5 = vpop.f32.mrb[12].mxu1 }
 0x1a6   : > { %v777_v8 = vmul.f32 %v8168_v5, %v10006_v24  ;;  %v680_v9 = vpop.f32.mrb[13].mxu1 }
 0x1a7   : > { %v775_v16 = vmul.f32 %v10006_v24, %v680_v9  ;;  %v8169_v17 = vpop.f32.mrb[14].mxu1 }
 0x1a8   : > { %v813_v27 = vadd.f32 %v10012_v25, %v777_v8  ;;  %v778_v28 = vmul.f32 %v8169_v17, %v10006_v24  ;;  %v683_v29 = vpop.f32.mrb[15].mxu1  ;;  %v10110_v8 = vsel %vm1274_vm1, %v1273_v45, 0 }
 0x1a9   : > { %v811_v31 = vadd.f32 %v10012_v25, %v775_v16  ;;  %v776_v32 = vmul.f32 %v10006_v24, %v683_v29 }
 0x1aa   : > { %v814_v34 = vadd.f32 %v10012_v25, %v778_v28  ;;  %8287 = vmatmul.mubr.msk.bf16.gmra.mrb[56].mxu1 %vm549_vm0, %v10090_v33  ;;  %v845_v38 = vmax.f32 %v813_v27, 0.0 }
 0x1ab   : > { %v812_v37 = vadd.f32 %v10012_v25, %v776_v32  ;;  %8290 = vmatprep.mubr.msk.bf16.mxu1 %vm549_vm0, %v10096_v36  ;;  %v843_v41 = vmax.f32 %v811_v31, 0.0 }
 0x1ac   : > { %v846_v40 = vmax.f32 %v814_v34, 0.0 }
 0x1ad   : > { %v844_v42 = vmax.f32 %v812_v37, 0.0  ;;  %v8172_v44 = vpop.f32.mrb[16].mxu1 }
 0x1ae   : > { %v870_v47 = vpack.c.bf16 %v846_v40, %v845_v38  ;;  %v781_v50 = vmul.f32 %v8172_v44, %v10006_v24  ;;  %v696_v53 = vpop.f32.mrb[17].mxu1  ;;  %v9694_v44 = vld [vmem:[%s11918_s2 + $0x48] sm:$0xff]  }
 0x1af   : > { %v869_v56 = vpack.c.bf16 %v844_v42, %v843_v41  ;;  %v779_v57 = vmul.f32 %v10006_v24, %v696_v53  ;;  %v8173_v60 = vpop.f32.mrb[18].mxu1 }
 0x1b0   : > { %v817_v62 = vadd.f32 %v10012_v25, %v781_v50  ;;  %v782_v63 = vmul.f32 %v8173_v60, %v10006_v24  ;;  %v699_v2 = vpop.f32.mrb[19].mxu1  ;;  %v10142_v60 = vld [vmem:[%s11918_s2 + $0x50] sm:$0xff]  }
 0x1b1   : > { %v815_v5 = vadd.f32 %v10012_v25, %v779_v57  ;;  %v780_v6 = vmul.f32 %v10006_v24, %v699_v2  ;;  %8558 = vmatprep.mubr.msk.bf16.mxu0 %vm3019_vm3, %v869_v56 }
 0x1b2   : > { %v818_v9 = vadd.f32 %v10012_v25, %v782_v63  ;;  %8291 = vmatmul.mubr.msk.bf16.gmra.mrb[60].mxu1 %vm549_vm0, %v10110_v8  ;;  %8559 = vmatmul.mubr.msk.bf16.gmra.mrb[12].mxu0 %vm3019_vm3, %v870_v47  ;;  %v849_v16 = vmax.f32 %v817_v62, 0.0 }
 0x1b3   : > { %v816_v10 = vadd.f32 %v10012_v25, %v780_v6  ;;  %8298 = vmatprep.mubr.msk.bf16.mxu1 %vm549_vm0, %v9963_v7  ;;  %v847_v27 = vmax.f32 %v815_v5, 0.0 }
 0x1b4   : > { %v850_v17 = vmax.f32 %v818_v9, 0.0 }
 0x1b5   : > { %v848_v28 = vmax.f32 %v816_v10, 0.0  ;;  %v8176_v29 = vpop.f32.mrb[20].mxu1 }
 0x1b6   : > { %v10119_v31 = vpack.c.bf16 %v850_v17, %v849_v16  ;;  %v785_v32 = vmul.f32 %v8176_v29, %v10006_v24  ;;  %v712_v34 = vpop.f32.mrb[21].mxu1 }
 0x1b7   : > { %v10122_v37 = vpack.c.bf16 %v848_v28, %v847_v27  ;;  %v783_v38 = vmul.f32 %v10006_v24, %v712_v34  ;;  %v8177_v40 = vpop.f32.mrb[22].mxu1 }
 0x1b8   : > { %v821_v41 = vadd.f32 %v10012_v25, %v785_v32  ;;  %v786_v42 = vmul.f32 %v8177_v40, %v10006_v24  ;;  %v715_v7 = vpop.f32.mrb[23].mxu1 }
 0x1b9   : > { %v819_v45 = vadd.f32 %v10012_v25, %v783_v38  ;;  %v784_v47 = vmul.f32 %v10006_v24, %v715_v7 }
 0x1ba   : > { %v822_v50 = vadd.f32 %v10012_v25, %v786_v42  ;;  %8299 = vmatmul.mubr.msk.bf16.vlgmr.msra.gmra.mrb[32].mxu1 %vm549_vm0, %v9970_v12  ;;  %v853_v56 = vmax.f32 %v821_v41, 0.0 }
 0x1bb   : > { %v820_v53 = vadd.f32 %v10012_v25, %v784_v47  ;;  %8302 = vmatprep.mubr.msk.bf16.mxu1 %vm549_vm0, %v9975_v13  ;;  %8331 = vmatpush3.bf16.msra.mxu1 %v10032_v46  ;;  %v851_v62 = vmax.f32 %v819_v45, 0.0  ;;  %v1517_v13 = vrot.slane %v9841_v35, 2  ;;  %v1518_v45 = vrot.slane %v9845_v39, 2 }
 0x1bc   : > { %v854_v57 = vmax.f32 %v822_v50, 0.0  ;;  %8332 = vmatprep.subr.bf16.mxu1 %v9694_v44 }
 0x1bd   : > { %v852_v63 = vmax.f32 %v820_v53, 0.0  ;;  %v8180_v2 = vpop.f32.mrb[24].mxu1  ;;  %v1530_v34 = vsel %vm890_vm2, 0, %v1517_v13 }
 0x1be   : > { %v10144_v5 = vpack.c.bf16 %v854_v57, %v853_v56  ;;  %v789_v12 = vmul.f32 %v8180_v2, %v10006_v24  ;;  %v728_v6 = vpop.f32.mrb[25].mxu1 }
 0x1bf   : > { %v10148_v9 = vpack.c.bf16 %v852_v63, %v851_v62  ;;  %v787_v46 = vmul.f32 %v10006_v24, %v728_v6  ;;  %v8181_v10 = vpop.f32.mrb[26].mxu1  ;;  %8333 = vmatpush3.bf16.msra.mxu1 %v9694_v44 }
 0x1c0   : > { %v825_v16 = vadd.f32 %v10012_v25, %v789_v12  ;;  %v790_v17 = vmul.f32 %v8181_v10, %v10006_v24  ;;  %v731_v27 = vpop.f32.mrb[27].mxu1  ;;  %8366 = vmatprep.subr.bf16.mxu1 %v10142_v60 }
 0x1c1   : > { %v823_v28 = vadd.f32 %v10012_v25, %v787_v46  ;;  %v788_v29 = vmul.f32 %v10006_v24, %v731_v27  ;;  %v1532_v46 = vsel %vm890_vm2, 0, %v1518_v45 }
 0x1c2   : > { %v826_v32 = vadd.f32 %v10012_v25, %v790_v17  ;;  %8303 = vmatmul.mubr.msk.bf16.gmra.mrb[36].mxu1 %vm549_vm0, %v9995_v22  ;;  %v857_v40 = vmax.f32 %v825_v16, 0.0  ;;  %v1519_v22 = vrot.slane %v9849_v43, 2 }
 0x1c3   : > { %v824_v38 = vadd.f32 %v10012_v25, %v788_v29  ;;  %8306 = vmatprep.mubr.msk.bf16.mxu1 %vm549_vm0, %v1530_v34  ;;  %v855_v42 = vmax.f32 %v823_v28, 0.0  ;;  %v1520_v34 = vrot.slane %v9853_v48, 2 }
 0x1c4   : > { %v858_v41 = vmax.f32 %v826_v32, 0.0  ;;  %v1534_v16 = vsel %vm890_vm2, 0, %v1519_v22 }
 0x1c5   : > { %v856_v7 = vmax.f32 %v824_v38, 0.0  ;;  %v8184_v44 = vpop.f32.mrb[28].mxu1 }
 0x1c6   : > { %v10163_v47 = vpack.c.bf16 %v858_v41, %v857_v40  ;;  %v793_v50 = vmul.f32 %v8184_v44, %v10006_v24  ;;  %v744_v53 = vpop.f32.mrb[29].mxu1  ;;  %v1536_v41 = vsel %vm890_vm2, 0, %v1520_v34 }
 0x1c7   : > { %v10167_v56 = vpack.c.bf16 %v856_v7, %v855_v42  ;;  %v791_v57 = vmul.f32 %v10006_v24, %v744_v53  ;;  %v8185_v62 = vpop.f32.mrb[30].mxu1  ;;  %v1522_v42 = vrot.slane %v9861_v51, 2  ;;  %v1523_v7 = vrot.slane %v9863_v52, 2 }
 0x1c8   : > { %v829_v63 = vadd.f32 %v10012_v25, %v793_v50  ;;  %v794_v2 = vmul.f32 %v8185_v62, %v10006_v24  ;;  %v747_v12 = vpop.f32.mrb[31].mxu1  ;;  %v1524_v50 = vrot.slane %v9869_v54, 2  ;;  %v1525_v53 = vrot.slane %v9871_v55, 2 }
 0x1c9   : > { %v827_v6 = vadd.f32 %v10012_v25, %v791_v57  ;;  %v792_v13 = vmul.f32 %v10006_v24, %v747_v12  ;;  %v1521_v24 = vrot.slane %v9855_v49, 2  ;;  %v1540_v44 = vsel %vm890_vm2, 0, %v1522_v42 }
 0x1ca   : > { %v830_v10 = vadd.f32 %v10012_v25, %v794_v2  ;;  %8307 = vmatmul.mubr.msk.bf16.gmra.mrb[40].mxu1 %vm549_vm0, %v1532_v46  ;;  %v861_v27 = vmax.f32 %v829_v63, 0.0  ;;  %v1542_v45 = vsel %vm890_vm2, 0, %v1523_v7  ;;  %v1544_v22 = vsel %vm890_vm2, 0, %v1524_v50  ;;  %v9696_v46 = vld [vmem:[%s11918_s2 + $0x58] sm:$0xff]  }
 0x1cb   : > { %v828_v17 = vadd.f32 %v10012_v25, %v792_v13  ;;  %8310 = vmatprep.mubr.msk.bf16.mxu1 %vm549_vm0, %v1534_v16  ;;  %v859_v29 = vmax.f32 %v827_v6, 0.0  ;;  %v1538_v25 = vsel %vm890_vm2, 0, %v1521_v24  ;;  %v10201_v57 = vsel %vm890_vm2, 0, %v1525_v53  ;;  %v9699_v16 = vld [vmem:[%s11918_s2 + $0x70] sm:$0xff]  }
 0x1cc   : > { %v862_v28 = vmax.f32 %v830_v10, 0.0  ;;  %v1526_v62 = vrot.slane %v9877_v58, 2  ;;  %v1527_v63 = vrot.slane %v9879_v59, 2  ;;  %v1528_v6 = vrot.slane %v9885_v61, 2  ;;  %v9697_v10 = vld [vmem:[%s11918_s2 + $0x60] sm:$0xff]  }
 0x1cd   : > { %v860_v32 = vmax.f32 %v828_v17, 0.0  ;;  %v1997_v17 = vrot.slane %v9841_v35, 6  ;;  %v2002_v24 = vrot.slane %v9861_v51, 6  ;;  %v2004_v7 = vrot.slane %v9869_v54, 6 }
 0x1ce   : > { %v10181_v38 = vpack.c.bf16 %v862_v28, %v861_v27  ;;  %v10208_v2 = vsel %vm890_vm2, 0, %v1526_v62  ;;  %v10213_v12 = vsel %vm890_vm2, 0, %v1527_v63  ;;  %v10219_v13 = vsel %vm890_vm2, 0, %v1528_v6 }
 0x1cf   : > { %v10184_v40 = vpack.c.bf16 %v860_v32, %v859_v29  ;;  %v2000_v29 = vrot.slane %v9853_v48, 6  ;;  %v2006_v53 = vrot.slane %v9877_v58, 6  ;;  %v2008_v6 = vrot.slane %v9885_v61, 6 }
 0x1d1   : > { %v2016_v32 = vsel %vm1274_vm1, %v2000_v29, 0  ;;  %v2028_v62 = vsel %vm1274_vm1, %v2006_v53, 0 }
 0x1d2   : > { %8311 = vmatmul.mubr.msk.bf16.gmra.mrb[44].mxu1 %vm549_vm0, %v1536_v41  ;;  %v2003_v41 = vrot.slane %v9863_v52, 6 }
 0x1d3   : > { %8314 = vmatprep.mubr.msk.bf16.mxu1 %vm549_vm0, %v1538_v25  ;;  %v2020_v25 = vsel %vm1274_vm1, %v2002_v24, 0 }
 0x1d4   : > { %v2022_v42 = vsel %vm1274_vm1, %v2003_v41, 0 }
 0x1da   : > { %8315 = vmatmul.mubr.msk.bf16.gmra.mrb[48].mxu1 %vm549_vm0, %v1540_v44  ;;  %v2005_v44 = vrot.slane %v9871_v55, 6 }
 0x1db   : > { %8318 = vmatprep.mubr.msk.bf16.mxu1 %vm549_vm0, %v1542_v45  ;;  %v2024_v45 = vsel %vm1274_vm1, %v2004_v7, 0 }
 0x1dc   : > { %v2026_v50 = vsel %vm1274_vm1, %v2005_v44, 0 }
 0x1e2   : > { %8319 = vmatmul.mubr.msk.bf16.gmra.mrb[52].mxu1 %vm549_vm0, %v1544_v22  ;;  %v2007_v22 = vrot.slane %v9879_v59, 6 }
 0x1e3   : > { %8322 = vmatprep.mubr.msk.bf16.mxu1 %vm549_vm0, %v10201_v57 }
 0x1e4   : > { %v2030_v63 = vsel %vm1274_vm1, %v2007_v22, 0 }
 0x1ea   : > { %8323 = vmatmul.mubr.msk.bf16.gmra.mrb[56].mxu1 %vm549_vm0, %v10208_v2 }
 0x1eb   : > { %8326 = vmatprep.mubr.msk.bf16.mxu1 %vm549_vm0, %v10213_v12 }
 0x1f2   : > { %8327 = vmatmul.mubr.msk.bf16.gmra.mrb[60].mxu1 %vm549_vm0, %v10219_v13 }
 0x1f3   : > { %8334 = vmatprep.mubr.msk.bf16.mxu1 %vm549_vm0, %v9819_v15 }
 0x1fa   : > { %8335 = vmatmul.mubr.msk.bf16.vlgmr.msra.gmra.mrb[32].mxu1 %vm549_vm0, %v9823_v20 }
 0x1fb   : > { %8338 = vmatprep.mubr.msk.bf16.mxu1 %vm549_vm0, %v9833_v26  ;;  %8367 = vmatpush3.bf16.msra.mxu1 %v10142_v60  ;;  %v9698_v60 = vld [vmem:[%s11918_s2 + $0x68] sm:$0xff]  }
 0x1fc   : > { %8368 = vmatprep.subr.bf16.mxu1 %v9696_v46 }
 0x1ff   : > { %8369 = vmatpush3.bf16.msra.mxu1 %v9696_v46  ;;  %v2032_v46 = vsel %vm1274_vm1, %v2008_v6, 0  ;;  %v10430_v6 = vld [vmem:[%s11919_s3 + $0x40] sm:$0xff]  }
 0x200   : > { %8402 = vmatprep.subr.bf16.mxu1 %v9697_v10 }
 0x202   : > { %8339 = vmatmul.mubr.msk.bf16.gmra.mrb[36].mxu1 %vm549_vm0, %v9837_v30 }
 0x203   : > { %8342 = vmatprep.mubr.msk.bf16.mxu1 %vm549_vm0, %v9841_v35 }
 0x20a   : > { %8343 = vmatmul.mubr.msk.bf16.gmra.mrb[40].mxu1 %vm549_vm0, %v9845_v39 }
 0x20b   : > { %8346 = vmatprep.mubr.msk.bf16.mxu1 %vm549_vm0, %v9849_v43 }
 0x212   : > { %8347 = vmatmul.mubr.msk.bf16.gmra.mrb[44].mxu1 %vm549_vm0, %v9853_v48 }
 0x213   : > { %8350 = vmatprep.mubr.msk.bf16.mxu1 %vm549_vm0, %v9855_v49 }
 0x21a   : > { %8351 = vmatmul.mubr.msk.bf16.gmra.mrb[48].mxu1 %vm549_vm0, %v9861_v51 }
 0x21b   : > { %8354 = vmatprep.mubr.msk.bf16.mxu1 %vm549_vm0, %v9863_v52 }
 0x222   : > { %8355 = vmatmul.mubr.msk.bf16.gmra.mrb[52].mxu1 %vm549_vm0, %v9869_v54 }
 0x223   : > { %8358 = vmatprep.mubr.msk.bf16.mxu1 %vm549_vm0, %v9871_v55 }
 0x22a   : > { %8359 = vmatmul.mubr.msk.bf16.gmra.mrb[56].mxu1 %vm549_vm0, %v9877_v58 }
 0x22b   : > { %8362 = vmatprep.mubr.msk.bf16.mxu1 %vm549_vm0, %v9879_v59 }
 0x232   : > { %8363 = vmatmul.mubr.msk.bf16.gmra.mrb[60].mxu1 %vm549_vm0, %v9885_v61 }
 0x233   : > { %8370 = vmatprep.mubr.msk.bf16.mxu1 %vm549_vm0, %v10077_v4  ;;  %v2010_v4 = vsel %vm1274_vm1, %v1997_v17, 0 }
 0x23a   : > { %8371 = vmatmul.mubr.msk.bf16.vlgmr.msra.gmra.mrb[32].mxu1 %vm549_vm0, %v10090_v33  ;;  %v1998_v33 = vrot.slane %v9845_v39, 6 }
 0x23b   : > { %8374 = vmatprep.mubr.msk.bf16.mxu1 %vm549_vm0, %v10096_v36  ;;  %8403 = vmatpush3.bf16.msra.mxu1 %v9697_v10  ;;  %v1999_v36 = vrot.slane %v9849_v43, 6  ;;  %v9700_v10 = vld [vmem:[%s11918_s2 + $0x78] sm:$0xff]  }
 0x23c   : > { %8404 = vmatprep.subr.bf16.mxu1 %v9698_v60  ;;  %v2012_v27 = vsel %vm1274_vm1, %v1998_v33, 0 }
 0x23d   : > { %v2014_v28 = vsel %vm1274_vm1, %v1999_v36, 0 }
 0x23f   : > { %8405 = vmatpush3.bf16.msra.mxu1 %v9698_v60  ;;  %v9701_v60 = vld [vmem:[%s11918_s2 + $0x80] sm:$0xff]  }
 0x240   : > { %8438 = vmatprep.subr.bf16.mxu1 %v9699_v16 }
 0x242   : > { %8375 = vmatmul.mubr.msk.bf16.gmra.mrb[36].mxu1 %vm549_vm0, %v10110_v8  ;;  %v2001_v8 = vrot.slane %v9855_v49, 6 }
 0x243   : > { %8378 = vmatprep.mubr.msk.bf16.mxu1 %vm549_vm0, %v2010_v4 }
 0x244   : > { %v2018_v34 = vsel %vm1274_vm1, %v2001_v8, 0 }
 0x24a   : > { %8379 = vmatmul.mubr.msk.bf16.gmra.mrb[40].mxu1 %vm549_vm0, %v2012_v27 }
 0x24b   : > { %8382 = vmatprep.mubr.msk.bf16.mxu1 %vm549_vm0, %v2014_v28 }
 0x252   : > { %8383 = vmatmul.mubr.msk.bf16.gmra.mrb[44].mxu1 %vm549_vm0, %v2016_v32 }
 0x253   : > { %8386 = vmatprep.mubr.msk.bf16.mxu1 %vm549_vm0, %v2018_v34 }
 0x25a   : > { %8387 = vmatmul.mubr.msk.bf16.gmra.mrb[48].mxu1 %vm549_vm0, %v2020_v25 }
 0x25b   : > { %8390 = vmatprep.mubr.msk.bf16.mxu1 %vm549_vm0, %v2022_v42 }
 0x262   : > { %8391 = vmatmul.mubr.msk.bf16.gmra.mrb[52].mxu1 %vm549_vm0, %v2024_v45 }
 0x263   : > { %8394 = vmatprep.mubr.msk.bf16.mxu1 %vm549_vm0, %v2026_v50 }
 0x26a   : > { %8395 = vmatmul.mubr.msk.bf16.gmra.mrb[56].mxu1 %vm549_vm0, %v2028_v62 }
 0x26b   : > { %8398 = vmatprep.mubr.msk.bf16.mxu1 %vm549_vm0, %v2030_v63 }
 0x272   : > { %8399 = vmatmul.mubr.msk.bf16.gmra.mrb[60].mxu1 %vm549_vm0, %v2032_v46 }
 0x273   : > { %8406 = vmatprep.mubr.msk.bf16.mxu1 %vm549_vm0, %v10201_v57  ;;  %v9702_v57 = vld [vmem:[%s11918_s2 + $0x88] sm:$0xff]  }
 0x27a   : > { %8407 = vmatmul.mubr.msk.bf16.vlgmr.msra.gmra.mrb[32].mxu1 %vm549_vm0, %v10208_v2  ;;  %v7398_v2 = vld [vmem:[%s11922_s6 + $0x2] sm:$0x3] }
 0x27b   : > { %8410 = vmatprep.mubr.msk.bf16.mxu1 %vm549_vm0, %v10213_v12  ;;  %8439 = vmatpush3.bf16.msra.mxu1 %v9699_v16 }
 0x27c   : > { %8440 = vmatprep.subr.bf16.mxu1 %v9700_v10 }
 0x27f   : > { %8441 = vmatpush3.bf16.msra.mxu1 %v9700_v10 }
 0x280   : > { %8474 = vmatprep.subr.bf16.mxu1 %v9701_v60 }
 0x282   : > { %8411 = vmatmul.mubr.msk.bf16.gmra.mrb[36].mxu1 %vm549_vm0, %v10219_v13 }
 0x283   : > { %8414 = vmatprep.mubr.msk.bf16.mxu1 %vm549_vm0, %v9927_v3 }
 0x28a   : > { %8415 = vmatmul.mubr.msk.bf16.gmra.mrb[40].mxu1 %vm549_vm0, %v9927_v3 }
 0x28b   : > { %8418 = vmatprep.mubr.msk.bf16.mxu1 %vm549_vm0, %v9927_v3 }
 0x292   : > { %8419 = vmatmul.mubr.msk.bf16.gmra.mrb[44].mxu1 %vm549_vm0, %v9927_v3 }
 0x293   : > { %8422 = vmatprep.mubr.msk.bf16.mxu1 %vm549_vm0, %v9927_v3 }
 0x29a   : > { %8423 = vmatmul.mubr.msk.bf16.gmra.mrb[48].mxu1 %vm549_vm0, %v9927_v3 }
 0x29b   : > { %8426 = vmatprep.mubr.msk.bf16.mxu1 %vm549_vm0, %v9927_v3 }
 0x2a2   : > { %8427 = vmatmul.mubr.msk.bf16.gmra.mrb[52].mxu1 %vm549_vm0, %v9927_v3 }
 0x2a3   : > { %8430 = vmatprep.mubr.msk.bf16.mxu1 %vm549_vm0, %v9927_v3 }
 0x2aa   : > { %8431 = vmatmul.mubr.msk.bf16.gmra.mrb[56].mxu1 %vm549_vm0, %v9927_v3 }
 0x2ab   : > { %8434 = vmatprep.mubr.msk.bf16.mxu1 %vm549_vm0, %v9927_v3 }
 0x2b2   : > { %8435 = vmatmul.mubr.msk.bf16.gmra.mrb[60].mxu1 %vm549_vm0, %v9927_v3  ;;  %v3069_v3 = vsel %vm1274_vm1, %v7398_v2, 0 }
 0x2b3   : > { %8442 = vmatprep.mubr.msk.bf16.mxu1 %vm549_vm0, %v9871_v55 }
 0x2ba   : > { %8443 = vmatmul.mubr.msk.bf16.vlgmr.msra.gmra.mrb[32].mxu1 %vm549_vm0, %v9877_v58 }
 0x2bb   : > { %8446 = vmatprep.mubr.msk.bf16.mxu1 %vm549_vm0, %v9879_v59  ;;  %8475 = vmatpush3.bf16.msra.mxu1 %v9701_v60 }
 0x2bc   : > { %8476 = vmatprep.subr.bf16.mxu1 %v9702_v57 }
 0x2bf   : > { %8477 = vmatpush3.bf16.msra.mxu1 %v9702_v57 }
 0x2c0   : > { %9648 = vmatprep.subr.msk.bf16.mxu1 %vm1274_vm1, %v7398_v2 }
 0x2c2   : > { %8447 = vmatmul.mubr.msk.bf16.gmra.mrb[36].mxu1 %vm549_vm0, %v9885_v61 }
 0x2c3   : > { %8450 = vmatprep.mubr.bf16.mxu1 %v11930_v11 }
 0x2ca   : > { %8451 = vmatmul.mubr.bf16.gmra.mrb[40].mxu1 %v11930_v11 }
 0x2cb   : > { %8454 = vmatprep.mubr.bf16.mxu1 %v11930_v11 }
 0x2d2   : > { %8455 = vmatmul.mubr.bf16.gmra.mrb[44].mxu1 %v11930_v11 }
 0x2d3   : > { %8458 = vmatprep.mubr.bf16.mxu1 %v11930_v11 }
 0x2da   : > { %8459 = vmatmul.mubr.bf16.gmra.mrb[48].mxu1 %v11930_v11 }
 0x2db   : > { %8462 = vmatprep.mubr.bf16.mxu1 %v11930_v11 }
 0x2e2   : > { %8463 = vmatmul.mubr.bf16.gmra.mrb[52].mxu1 %v11930_v11 }
 0x2e3   : > { %8466 = vmatprep.mubr.bf16.mxu1 %v11930_v11 }
 0x2ea   : > { %8467 = vmatmul.mubr.bf16.gmra.mrb[56].mxu1 %v11930_v11 }
 0x2eb   : > { %8470 = vmatprep.mubr.bf16.mxu1 %v11930_v11 }
 0x2f2   : > { %8471 = vmatmul.mubr.bf16.gmra.mrb[60].mxu1 %v11930_v11 }
 0x2f3   : > { %8478 = vmatprep.mubr.msk.bf16.mxu1 %vm549_vm0, %v2026_v50 }
 0x2fa   : > { %8479 = vmatmul.mubr.msk.bf16.vlgmr.msra.gmra.mrb[32].mxu1 %vm549_vm0, %v2028_v62 }
 0x2fb   : > { %8482 = vmatprep.mubr.msk.bf16.mxu1 %vm549_vm0, %v2030_v63  ;;  %8511 = vmatpush3.bf16.msra.mxu1 %v3069_v3 }
 0x2fc   : > { %9650 = vmatprep.subr.msk.bf16.mxu1 %vm1274_vm1, %v9901_v0  ;;  %v2899_v0 = vsub.s32 1, %v9977_v14 }
 0x2fe   : > { %v10410_v12 = vrot.slane %v9989_v19, %v2899_v0  ;;  %v10413_v13 = vrot.slane %v10000_v23, %v2899_v0 }
 0x302   : > { %8483 = vmatmul.mubr.msk.bf16.gmra.mrb[36].mxu1 %vm549_vm0, %v2032_v46 }
 0x303   : > { %8486 = vmatprep.mubr.msk.bf16.mxu1 %vm549_vm0, %v9992_v21 }
 0x30a   : > { %8487 = vmatmul.mubr.msk.bf16.gmra.mrb[40].mxu1 %vm549_vm0, %v9992_v21 }
 0x30b   : > { %8490 = vmatprep.mubr.msk.bf16.mxu1 %vm549_vm0, %v9992_v21 }
 0x312   : > { %8491 = vmatmul.mubr.msk.bf16.gmra.mrb[44].mxu1 %vm549_vm0, %v9992_v21 }
 0x313   : > { %8494 = vmatprep.mubr.msk.bf16.mxu1 %vm549_vm0, %v9992_v21 }
 0x31a   : > { %8495 = vmatmul.mubr.msk.bf16.gmra.mrb[48].mxu1 %vm549_vm0, %v9992_v21 }
 0x31b   : > { %8498 = vmatprep.mubr.msk.bf16.mxu1 %vm549_vm0, %v9992_v21 }
 0x322   : > { %8499 = vmatmul.mubr.msk.bf16.gmra.mrb[52].mxu1 %vm549_vm0, %v9992_v21 }
 0x323   : > { %8502 = vmatprep.mubr.msk.bf16.mxu1 %vm549_vm0, %v9992_v21 }
 0x32a   : > { %8503 = vmatmul.mubr.msk.bf16.gmra.mrb[56].mxu1 %vm549_vm0, %v9992_v21 }
 0x32b   : > { %8506 = vmatprep.mubr.msk.bf16.mxu1 %vm549_vm0, %v9992_v21 }
 0x332   : > { %8507 = vmatmul.mubr.msk.bf16.gmra.mrb[60].mxu1 %vm549_vm0, %v9992_v21 }
 0x3cd   : > { %v8480_v16 = vpop.f32.mrb[32].mxu1 }
 0x3ce   : > { %v2903_v17 = vmul.f32 %v8480_v16, %v10410_v12  ;;  %v2738_v4 = vpop.f32.mrb[33].mxu1 }
 0x3cf   : > { %v2901_v33 = vmul.f32 %v10410_v12, %v2738_v4  ;;  %v8481_v36 = vpop.f32.mrb[34].mxu1 }
 0x3d0   : > { %v2939_v27 = vadd.f32 %v10413_v13, %v2903_v17  ;;  %v2904_v28 = vmul.f32 %v8481_v36, %v10410_v12  ;;  %v2741_v21 = vpop.f32.mrb[35].mxu1 }
 0x3d1   : > { %v2937_v29 = vadd.f32 %v10413_v13, %v2901_v33  ;;  %v2902_v19 = vmul.f32 %v10410_v12, %v2741_v21 }
 0x3d2   : > { %v2940_v8 = vadd.f32 %v10413_v13, %v2904_v28  ;;  %v2971_v32 = vmax.f32 %v2939_v27, 0.0 }
 0x3d3   : > { %v2938_v23 = vadd.f32 %v10413_v13, %v2902_v19  ;;  %v2969_v24 = vmax.f32 %v2937_v29, 0.0 }
 0x3d4   : > { %v2972_v34 = vmax.f32 %v2940_v8, 0.0 }
 0x3d5   : > { %v2970_v41 = vmax.f32 %v2938_v23, 0.0  ;;  %v8484_v25 = vpop.f32.mrb[36].mxu1 }
 0x3d6   : > { %v3002_v42 = vpack.c.bf16 %v2972_v34, %v2971_v32  ;;  %v2907_v7 = vmul.f32 %v8484_v25, %v10410_v12  ;;  %v2754_v44 = vpop.f32.mrb[37].mxu1 }
 0x3d7   : > { %v3001_v45 = vpack.c.bf16 %v2970_v41, %v2969_v24  ;;  %v2905_v50 = vmul.f32 %v10410_v12, %v2754_v44  ;;  %v8485_v53 = vpop.f32.mrb[38].mxu1 }
 0x3d8   : > { %v2943_v22 = vadd.f32 %v10413_v13, %v2907_v7  ;;  %v2908_v62 = vmul.f32 %v8485_v53, %v10410_v12  ;;  %v2757_v63 = vpop.f32.mrb[39].mxu1 }
 0x3d9   : > { %v2941_v46 = vadd.f32 %v10413_v13, %v2905_v50  ;;  %v2906_v10 = vmul.f32 %v10410_v12, %v2757_v63  ;;  %8512 = vmatprep.mubr.msk.bf16.mxu1 %vm3019_vm3, %v3001_v45 }
 0x3da   : > { %v2944_v60 = vadd.f32 %v10413_v13, %v2908_v62  ;;  %8513 = vmatmul.mubr.msk.bf16.vlgmr.msra.gmra.mrb[64].mxu1 %vm3019_vm3, %v3002_v42  ;;  %v2975_v2 = vmax.f32 %v2943_v22, 0.0 }
 0x3db   : > { %v2942_v57 = vadd.f32 %v10413_v13, %v2906_v10  ;;  %9039 = vmatpush3.bf16.msra.mxu1 %v9907_v1  ;;  %v2973_v0 = vmax.f32 %v2941_v46, 0.0 }
 0x3dc   : > { %v2976_v3 = vmax.f32 %v2944_v60, 0.0  ;;  %8578 = vmatprep.subr.bf16.mxu1 %v10430_v6 }
 0x3dd   : > { %v2974_v16 = vmax.f32 %v2942_v57, 0.0  ;;  %v8488_v17 = vpop.f32.mrb[40].mxu1 }
 0x3de   : > { %v3004_v4 = vpack.c.bf16 %v2976_v3, %v2975_v2  ;;  %v2911_v33 = vmul.f32 %v8488_v17, %v10410_v12  ;;  %v2770_v36 = vpop.f32.mrb[41].mxu1 }
 0x3df   : > { %v3003_v27 = vpack.c.bf16 %v2974_v16, %v2973_v0  ;;  %v2909_v28 = vmul.f32 %v10410_v12, %v2770_v36  ;;  %v8489_v21 = vpop.f32.mrb[42].mxu1 }
 0x3e0   : > { %v2947_v29 = vadd.f32 %v10413_v13, %v2911_v33  ;;  %v2912_v19 = vmul.f32 %v8489_v21, %v10410_v12  ;;  %v2773_v1 = vpop.f32.mrb[43].mxu1 }
 0x3e1   : > { %v2945_v8 = vadd.f32 %v10413_v13, %v2909_v28  ;;  %v2910_v23 = vmul.f32 %v10410_v12, %v2773_v1  ;;  %8516 = vmatprep.mubr.msk.bf16.mxu1 %vm3019_vm3, %v3003_v27 }
 0x3e2   : > { %v2948_v32 = vadd.f32 %v10413_v13, %v2912_v19  ;;  %8517 = vmatmul.mubr.msk.bf16.gmra.mrb[68].mxu1 %vm3019_vm3, %v3004_v4  ;;  %v2979_v24 = vmax.f32 %v2947_v29, 0.0 }
 0x3e3   : > { %v2946_v34 = vadd.f32 %v10413_v13, %v2910_v23  ;;  %v2977_v25 = vmax.f32 %v2945_v8, 0.0 }
 0x3e4   : > { %v2980_v41 = vmax.f32 %v2948_v32, 0.0 }
 0x3e5   : > { %v2978_v42 = vmax.f32 %v2946_v34, 0.0  ;;  %v8492_v7 = vpop.f32.mrb[44].mxu1 }
 0x3e6   : > { %v3006_v44 = vpack.c.bf16 %v2980_v41, %v2979_v24  ;;  %v2915_v45 = vmul.f32 %v8492_v7, %v10410_v12  ;;  %v2786_v50 = vpop.f32.mrb[45].mxu1 }
 0x3e7   : > { %v3005_v53 = vpack.c.bf16 %v2978_v42, %v2977_v25  ;;  %v2913_v22 = vmul.f32 %v10410_v12, %v2786_v50  ;;  %v8493_v62 = vpop.f32.mrb[46].mxu1 }
 0x3e8   : > { %v2951_v63 = vadd.f32 %v10413_v13, %v2915_v45  ;;  %v2916_v46 = vmul.f32 %v8493_v62, %v10410_v12  ;;  %v2789_v10 = vpop.f32.mrb[47].mxu1 }
 0x3e9   : > { %v2949_v60 = vadd.f32 %v10413_v13, %v2913_v22  ;;  %v2914_v57 = vmul.f32 %v10410_v12, %v2789_v10  ;;  %8520 = vmatprep.mubr.msk.bf16.mxu1 %vm3019_vm3, %v3005_v53 }
 0x3ea   : > { %v2952_v2 = vadd.f32 %v10413_v13, %v2916_v46  ;;  %8521 = vmatmul.mubr.msk.bf16.gmra.mrb[72].mxu1 %vm3019_vm3, %v3006_v44  ;;  %v2983_v0 = vmax.f32 %v2951_v63, 0.0 }
 0x3eb   : > { %v2950_v3 = vadd.f32 %v10413_v13, %v2914_v57  ;;  %v2981_v17 = vmax.f32 %v2949_v60, 0.0 }
 0x3ec   : > { %v2984_v16 = vmax.f32 %v2952_v2, 0.0 }
 0x3ed   : > { %v2982_v4 = vmax.f32 %v2950_v3, 0.0  ;;  %v8496_v33 = vpop.f32.mrb[48].mxu1 }
 0x3ee   : > { %v3008_v36 = vpack.c.bf16 %v2984_v16, %v2983_v0  ;;  %v2919_v27 = vmul.f32 %v8496_v33, %v10410_v12  ;;  %v2802_v28 = vpop.f32.mrb[49].mxu1 }
 0x3ef   : > { %v3007_v21 = vpack.c.bf16 %v2982_v4, %v2981_v17  ;;  %v2917_v29 = vmul.f32 %v10410_v12, %v2802_v28  ;;  %v8497_v19 = vpop.f32.mrb[50].mxu1 }
 0x3f0   : > { %v2955_v1 = vadd.f32 %v10413_v13, %v2919_v27  ;;  %v2920_v8 = vmul.f32 %v8497_v19, %v10410_v12  ;;  %v2805_v23 = vpop.f32.mrb[51].mxu1 }
 0x3f1   : > { %v2953_v32 = vadd.f32 %v10413_v13, %v2917_v29  ;;  %v2918_v34 = vmul.f32 %v10410_v12, %v2805_v23  ;;  %8524 = vmatprep.mubr.msk.bf16.mxu1 %vm3019_vm3, %v3007_v21 }
 0x3f2   : > { %v2956_v24 = vadd.f32 %v10413_v13, %v2920_v8  ;;  %8525 = vmatmul.mubr.msk.bf16.gmra.mrb[76].mxu1 %vm3019_vm3, %v3008_v36  ;;  %v2987_v25 = vmax.f32 %v2955_v1, 0.0 }
 0x3f3   : > { %v2954_v41 = vadd.f32 %v10413_v13, %v2918_v34  ;;  %v2985_v7 = vmax.f32 %v2953_v32, 0.0 }
 0x3f4   : > { %v2988_v42 = vmax.f32 %v2956_v24, 0.0 }
 0x3f5   : > { %v2986_v44 = vmax.f32 %v2954_v41, 0.0  ;;  %v8500_v45 = vpop.f32.mrb[52].mxu1 }
 0x3f6   : > { %v3010_v50 = vpack.c.bf16 %v2988_v42, %v2987_v25  ;;  %v2923_v53 = vmul.f32 %v8500_v45, %v10410_v12  ;;  %v2818_v22 = vpop.f32.mrb[53].mxu1 }
 0x3f7   : > { %v3009_v62 = vpack.c.bf16 %v2986_v44, %v2985_v7  ;;  %v2921_v63 = vmul.f32 %v10410_v12, %v2818_v22  ;;  %v8501_v46 = vpop.f32.mrb[54].mxu1 }
 0x3f8   : > { %v2959_v10 = vadd.f32 %v10413_v13, %v2923_v53  ;;  %v2924_v60 = vmul.f32 %v8501_v46, %v10410_v12  ;;  %v2821_v57 = vpop.f32.mrb[55].mxu1 }
 0x3f9   : > { %v2957_v2 = vadd.f32 %v10413_v13, %v2921_v63  ;;  %v2922_v3 = vmul.f32 %v10410_v12, %v2821_v57  ;;  %8528 = vmatprep.mubr.msk.bf16.mxu1 %vm3019_vm3, %v3009_v62 }
 0x3fa   : > { %v2960_v0 = vadd.f32 %v10413_v13, %v2924_v60  ;;  %8529 = vmatmul.mubr.msk.bf16.gmra.mrb[80].mxu1 %vm3019_vm3, %v3010_v50  ;;  %v2991_v17 = vmax.f32 %v2959_v10, 0.0 }
 0x3fb   : > { %v2958_v16 = vadd.f32 %v10413_v13, %v2922_v3  ;;  %v2989_v33 = vmax.f32 %v2957_v2, 0.0 }
 0x3fc   : > { %v2992_v4 = vmax.f32 %v2960_v0, 0.0 }
 0x3fd   : > { %v2990_v36 = vmax.f32 %v2958_v16, 0.0  ;;  %v8504_v27 = vpop.f32.mrb[56].mxu1 }
 0x3fe   : > { %v3012_v28 = vpack.c.bf16 %v2992_v4, %v2991_v17  ;;  %v2927_v21 = vmul.f32 %v8504_v27, %v10410_v12  ;;  %v2834_v29 = vpop.f32.mrb[57].mxu1 }
 0x3ff   : > { %v3011_v19 = vpack.c.bf16 %v2990_v36, %v2989_v33  ;;  %v2925_v1 = vmul.f32 %v10410_v12, %v2834_v29  ;;  %v8505_v8 = vpop.f32.mrb[58].mxu1 }
 0x400   : > { %v2963_v23 = vadd.f32 %v10413_v13, %v2927_v21  ;;  %v2928_v32 = vmul.f32 %v8505_v8, %v10410_v12  ;;  %v2837_v34 = vpop.f32.mrb[59].mxu1 }
 0x401   : > { %v2961_v24 = vadd.f32 %v10413_v13, %v2925_v1  ;;  %v2926_v41 = vmul.f32 %v10410_v12, %v2837_v34  ;;  %8532 = vmatprep.mubr.msk.bf16.mxu1 %vm3019_vm3, %v3011_v19 }
 0x402   : > { %v2964_v25 = vadd.f32 %v10413_v13, %v2928_v32  ;;  %8533 = vmatmul.mubr.msk.bf16.gmra.mrb[84].mxu1 %vm3019_vm3, %v3012_v28  ;;  %v2995_v7 = vmax.f32 %v2963_v23, 0.0 }
 0x403   : > { %v2962_v42 = vadd.f32 %v10413_v13, %v2926_v41  ;;  %v2993_v45 = vmax.f32 %v2961_v24, 0.0 }
 0x404   : > { %v2996_v44 = vmax.f32 %v2964_v25, 0.0 }
 0x405   : > { %v2994_v50 = vmax.f32 %v2962_v42, 0.0  ;;  %v8508_v53 = vpop.f32.mrb[60].mxu1 }
 0x406   : > { %v3014_v22 = vpack.c.bf16 %v2996_v44, %v2995_v7  ;;  %v2931_v62 = vmul.f32 %v8508_v53, %v10410_v12  ;;  %v2850_v63 = vpop.f32.mrb[61].mxu1 }
 0x407   : > { %v3013_v46 = vpack.c.bf16 %v2994_v50, %v2993_v45  ;;  %v2929_v10 = vmul.f32 %v10410_v12, %v2850_v63  ;;  %v8509_v60 = vpop.f32.mrb[62].mxu1 }
 0x408   : > { %v2967_v57 = vadd.f32 %v10413_v13, %v2931_v62  ;;  %v2932_v2 = vmul.f32 %v8509_v60, %v10410_v12  ;;  %v2853_v3 = vpop.f32.mrb[63].mxu1 }
 0x409   : > { %v2965_v0 = vadd.f32 %v10413_v13, %v2929_v10  ;;  %v2930_v16 = vmul.f32 %v10410_v12, %v2853_v3  ;;  %8536 = vmatprep.mubr.msk.bf16.mxu1 %vm3019_vm3, %v3013_v46  ;;  %v9704_v12 = vld [vmem:[%s11919_s3 + $0x48] sm:$0xff]   ;;  %v3624_v3 = vsub.s32 2, %v9977_v14 }
 0x40a   : > { %v2968_v17 = vadd.f32 %v10413_v13, %v2932_v2  ;;  %8537 = vmatmul.mubr.msk.bf16.gmra.mrb[88].mxu1 %vm3019_vm3, %v3014_v22  ;;  %v2999_v33 = vmax.f32 %v2967_v57, 0.0 }
 0x40b   : > { %v2966_v4 = vadd.f32 %v10413_v13, %v2930_v16  ;;  %v2997_v27 = vmax.f32 %v2965_v0, 0.0 }
 0x40c   : > { %v3000_v36 = vmax.f32 %v2968_v17, 0.0  ;;  %v10633_v17 = vld [vmem:[%s11927_s11] sm:$0x7f] }
 0x40d   : > { %v2998_v28 = vmax.f32 %v2966_v4, 0.0  ;;  %v10636_v4 = vrot.slane %v10633_v17, %v3624_v3 }
 0x40e   : > { %v3016_v21 = vpack.c.bf16 %v3000_v36, %v2999_v33  ;;  %v10641_v33 = vld [vmem:[%s11928_s12] sm:$0x7f] }
 0x40f   : > { %v3015_v29 = vpack.c.bf16 %v2998_v28, %v2997_v27  ;;  %v10644_v36 = vrot.slane %v10641_v33, %v3624_v3 }
 0x411   : > { %8540 = vmatprep.mubr.msk.bf16.mxu1 %vm3019_vm3, %v3015_v29 }
 0x412   : > { %8541 = vmatmul.mubr.msk.bf16.gmra.mrb[92].mxu1 %vm3019_vm3, %v3016_v21 }
 0x413   : > { %8562 = vmatprep.mubr.msk.bf16.mxu1 %vm3019_vm3, %v10122_v37 }
 0x41a   : > { %8563 = vmatmul.mubr.msk.bf16.vlgmr.msra.gmra.mrb[80].mxu1 %vm3019_vm3, %v10119_v31  ;;  %v7453_v31 = vld [vmem:[%s11922_s6 + $0x4] sm:$0x3] }
 0x41b   : > { %8566 = vmatprep.mubr.msk.bf16.mxu1 %vm3019_vm3, %v10148_v9  ;;  %8579 = vmatpush3.bf16.msra.mxu1 %v10430_v6  ;;  %v3793_v37 = vsel %vm1274_vm1, %v7453_v31, 0 }
 0x41c   : > { %8580 = vmatprep.subr.bf16.mxu1 %v9704_v12  ;;  %9651 = vmatprep.subr.msk.bf16.mxu0 %vm1274_vm1, %v7453_v31 }
 0x41d   : > { %8615 = vmatpush3.bf16.msra.mxu0 %v3793_v37 }
 0x41f   : > { %8581 = vmatpush3.bf16.msra.mxu1 %v9704_v12 }
 0x422   : > { %8567 = vmatmul.mubr.msk.bf16.gmra.mrb[84].mxu1 %vm3019_vm3, %v10144_v5  ;;  %v10562_v5 = vld [vmem:[%s11920_s4 + $0x40] sm:$0xff]  }
 0x423   : > { %8570 = vmatprep.mubr.msk.bf16.mxu1 %vm3019_vm3, %v10167_v56  ;;  %8648 = vmatprep.subr.bf16.mxu0 %v10562_v5 }
 0x42a   : > { %8571 = vmatmul.mubr.msk.bf16.gmra.mrb[88].mxu1 %vm3019_vm3, %v10163_v47 }
 0x42b   : > { %8574 = vmatprep.mubr.msk.bf16.mxu1 %vm3019_vm3, %v10184_v40 }
 0x432   : > { %8575 = vmatmul.mubr.msk.bf16.gmra.mrb[92].mxu1 %vm3019_vm3, %v10181_v38 }
 0x433   : > { %8582 = vmatprep.mubr.msk.bf16.mxu1 %vm549_vm0, %v9819_v15 }
 0x43a   : > { %8583 = vmatmul.mubr.msk.bf16.vlgmr.msra.gmra.mrb[96].mxu1 %vm549_vm0, %v9823_v20 }
 0x43b   : > { %8586 = vmatprep.mubr.msk.bf16.mxu1 %vm549_vm0, %v9833_v26 }
 0x442   : > { %8587 = vmatmul.mubr.msk.bf16.gmra.mrb[100].mxu1 %vm549_vm0, %v9837_v30 }
 0x443   : > { %8590 = vmatprep.mubr.msk.bf16.mxu1 %vm549_vm0, %v9841_v35 }
 0x44a   : > { %8591 = vmatmul.mubr.msk.bf16.gmra.mrb[104].mxu1 %vm549_vm0, %v9845_v39 }
 0x44b   : > { %8594 = vmatprep.mubr.msk.bf16.mxu1 %vm549_vm0, %v9849_v43 }
 0x452   : > { %8595 = vmatmul.mubr.msk.bf16.gmra.mrb[108].mxu1 %vm549_vm0, %v9853_v48 }
 0x453   : > { %8598 = vmatprep.mubr.msk.bf16.mxu1 %vm549_vm0, %v9855_v49 }
 0x45a   : > { %8599 = vmatmul.mubr.msk.bf16.gmra.mrb[112].mxu1 %vm549_vm0, %v9861_v51 }
 0x45b   : > { %8602 = vmatprep.mubr.msk.bf16.mxu1 %vm549_vm0, %v9863_v52 }
 0x462   : > { %8603 = vmatmul.mubr.msk.bf16.gmra.mrb[116].mxu1 %vm549_vm0, %v9869_v54 }
 0x463   : > { %8606 = vmatprep.mubr.msk.bf16.mxu1 %vm549_vm0, %v9871_v55 }
 0x46a   : > { %8607 = vmatmul.mubr.msk.bf16.gmra.mrb[120].mxu1 %vm549_vm0, %v9877_v58 }
 0x46b   : > { %8610 = vmatprep.mubr.msk.bf16.mxu1 %vm549_vm0, %v9879_v59 }
 0x472   : > { %8611 = vmatmul.mubr.msk.bf16.gmra.mrb[124].mxu1 %vm549_vm0, %v9885_v61 }
 0x4ad   : > { %v10565_v9 = vpop.f32.mrb[64].mxu1 }
 0x4ae   : > { %v10567_v47 = vpop.f32.mrb[65].mxu1 }
 0x4af   : > { %v10569_v56 = vpop.f32.mrb[66].mxu1 }
 0x4b0   : > { %v10571_v38 = vpop.f32.mrb[67].mxu1 }
 0x4b5   : > { %v10573_v40 = vpop.f32.mrb[68].mxu1 }
 0x4b6   : > { %v10575_v13 = vpop.f32.mrb[69].mxu1 }
 0x4b7   : > { %v10577_v6 = vpop.f32.mrb[70].mxu1 }
 0x4b8   : > { %v10579_v19 = vpop.f32.mrb[71].mxu1 }
 0x4bd   : > { %v10581_v1 = vpop.f32.mrb[72].mxu1 }
 0x4be   : > { %v10583_v8 = vpop.f32.mrb[73].mxu1 }
 0x4bf   : > { %v10585_v23 = vpop.f32.mrb[74].mxu1 }
 0x4c0   : > { %v10587_v32 = vpop.f32.mrb[75].mxu1 }
 0x4c5   : > { %v10589_v34 = vpop.f32.mrb[76].mxu1 }
 0x4c6   : > { %v10591_v24 = vpop.f32.mrb[77].mxu1 }
 0x4c7   : > { %v10593_v41 = vpop.f32.mrb[78].mxu1 }
 0x4c8   : > { %v10595_v25 = vpop.f32.mrb[79].mxu1 }
 0x4ed   : > { %v10597_v42 = vpop.f32.mrb[80].mxu1 }
 0x4ee   : > { %v10599_v7 = vpop.f32.mrb[81].mxu1 }
 0x4ef   : > { %v10601_v44 = vpop.f32.mrb[82].mxu1 }
 0x4f0   : > { %v10603_v45 = vpop.f32.mrb[83].mxu1 }
 0x4f5   : > { %v10605_v50 = vpop.f32.mrb[84].mxu1 }
 0x4f6   : > { %v10607_v53 = vpop.f32.mrb[85].mxu1 }
 0x4f7   : > { %v10609_v22 = vpop.f32.mrb[86].mxu1 }
 0x4f8   : > { %v10611_v62 = vpop.f32.mrb[87].mxu1 }
 0x4f9   : > { %11947 = vst [vmem:[#allocation3_spill] sm:$0xff] %v10611_v62 }
 0x4fd   : > { %v10613_v63 = vpop.f32.mrb[88].mxu1 }
 0x4fe   : > { %11948 = vst [vmem:[#allocation4_spill] sm:$0xff] %v10613_v63  ;;  %v10615_v46 = vpop.f32.mrb[89].mxu1 }
 0x4ff   : > { %11949 = vst [vmem:[#allocation5_spill] sm:$0xff] %v10615_v46  ;;  %v10617_v10 = vpop.f32.mrb[90].mxu1 }
 0x500   : > { %11950 = vst [vmem:[#allocation6_spill] sm:$0xff] %v10617_v10  ;;  %v10619_v60 = vpop.f32.mrb[91].mxu1 }
 0x501   : > { %11951 = vst [vmem:[#allocation7_spill] sm:$0xff] %v10619_v60 }
 0x505   : > { %v10621_v57 = vpop.f32.mrb[92].mxu1 }
 0x506   : > { %11952 = vst [vmem:[#allocation8_spill] sm:$0xff] %v10621_v57  ;;  %v10623_v2 = vpop.f32.mrb[93].mxu1 }
 0x507   : > { %11953 = vst [vmem:[#allocation9_spill] sm:$0xff] %v10623_v2  ;;  %v10626_v0 = vpop.f32.mrb[94].mxu1 }
 0x508   : > { %11954 = vst [vmem:[#allocation10_spill] sm:$0xff] %v10626_v0  ;;  %v10628_v16 = vpop.f32.mrb[95].mxu1 }
 0x509   : > { %11955 = vst [vmem:[#allocation11_spill] sm:$0xff] %v10628_v16 }
 0x50d   : > { %v8584_v27 = vpop.f32.mrb[96].mxu1 }
 0x50e   : > { %v3628_v28 = vmul.f32 %v8584_v27, %v10636_v4  ;;  %v3495_v21 = vpop.f32.mrb[97].mxu1 }
 0x50f   : > { %v3626_v29 = vmul.f32 %v10636_v4, %v3495_v21  ;;  %v8585_v12 = vpop.f32.mrb[98].mxu1 }
 0x510   : > { %v3664_v31 = vadd.f32 %v10644_v36, %v3628_v28  ;;  %v3629_v37 = vmul.f32 %v8585_v12, %v10636_v4  ;;  %v3498_v11 = vpop.f32.mrb[99].mxu1 }
 0x511   : > { %v3662_v18 = vadd.f32 %v10644_v36, %v3626_v29  ;;  %v3627_v16 = vmul.f32 %v10636_v4, %v3498_v11 }
 0x512   : > { %v3665_v0 = vadd.f32 %v10644_v36, %v3629_v37  ;;  %v3696_v2 = vmax.f32 %v3664_v31, 0.0 }
 0x513   : > { %v3663_v3 = vadd.f32 %v10644_v36, %v3627_v16  ;;  %v3694_v27 = vmax.f32 %v3662_v18, 0.0 }
 0x514   : > { %v3697_v57 = vmax.f32 %v3665_v0, 0.0  ;;  %v9706_v0 = vld [vmem:[%s11920_s4 + $0x48] sm:$0xff]  }
 0x515   : > { %v3695_v60 = vmax.f32 %v3663_v3, 0.0  ;;  %v8588_v10 = vpop.f32.mrb[100].mxu1  ;;  %v10671_v3 = vld [vmem:[%s11922_s6 + $0x6] sm:$0x3] }
 0x516   : > { %v3727_v21 = vpack.c.bf16 %v3697_v57, %v3696_v2  ;;  %v3632_v46 = vmul.f32 %v8588_v10, %v10636_v4  ;;  %v3511_v28 = vpop.f32.mrb[101].mxu1 }
 0x517   : > { %v3726_v63 = vpack.c.bf16 %v3695_v60, %v3694_v27  ;;  %v3630_v12 = vmul.f32 %v10636_v4, %v3511_v28  ;;  %v8589_v62 = vpop.f32.mrb[102].mxu1 }
 0x518   : > { %v3668_v29 = vadd.f32 %v10644_v36, %v3632_v46  ;;  %v3633_v11 = vmul.f32 %v8589_v62, %v10636_v4  ;;  %v3514_v37 = vpop.f32.mrb[103].mxu1 }
 0x519   : > { %v3666_v18 = vadd.f32 %v10644_v36, %v3630_v12  ;;  %v3631_v57 = vmul.f32 %v10636_v4, %v3514_v37  ;;  %8616 = vmatprep.mubr.msk.bf16.mxu0 %vm3019_vm3, %v3726_v63 }
 0x51a   : > { %v3669_v10 = vadd.f32 %v10644_v36, %v3633_v11  ;;  %8617 = vmatmul.mubr.msk.bf16.vlgmr.msra.gmra.mrb[0].mxu0 %vm3019_vm3, %v3727_v21  ;;  %v3700_v62 = vmax.f32 %v3668_v29, 0.0 }
 0x51b   : > { %v3667_v60 = vadd.f32 %v10644_v36, %v3631_v57  ;;  %8649 = vmatpush3.bf16.msra.mxu0 %v10562_v5  ;;  %v3698_v2 = vmax.f32 %v3666_v18, 0.0 }
 0x51c   : > { %v3701_v46 = vmax.f32 %v3669_v10, 0.0  ;;  %8650 = vmatprep.subr.bf16.mxu0 %v9706_v0 }
 0x51d   : > { %v3699_v16 = vmax.f32 %v3667_v60, 0.0  ;;  %v8592_v31 = vpop.f32.mrb[104].mxu1 }
 0x51e   : > { %v3729_v63 = vpack.c.bf16 %v3701_v46, %v3700_v62  ;;  %v3636_v27 = vmul.f32 %v8592_v31, %v10636_v4  ;;  %v3527_v28 = vpop.f32.mrb[105].mxu1 }
 0x51f   : > { %v3728_v21 = vpack.c.bf16 %v3699_v16, %v3698_v2  ;;  %v3634_v12 = vmul.f32 %v10636_v4, %v3527_v28  ;;  %v8593_v11 = vpop.f32.mrb[106].mxu1  ;;  %8651 = vmatpush3.bf16.msra.mxu0 %v9706_v0 }
 0x520   : > { %v3672_v5 = vadd.f32 %v10644_v36, %v3636_v27  ;;  %v3637_v29 = vmul.f32 %v8593_v11, %v10636_v4  ;;  %v3530_v37 = vpop.f32.mrb[107].mxu1  ;;  %9652 = vmatprep.subr.msk.bf16.mxu0 %vm1274_vm1, %v10671_v3 }
 0x521   : > { %v3670_v18 = vadd.f32 %v10644_v36, %v3634_v12  ;;  %v3635_v57 = vmul.f32 %v10636_v4, %v3530_v37  ;;  %8620 = vmatprep.mubr.msk.bf16.mxu0 %vm3019_vm3, %v3728_v21 }
 0x522   : > { %v3673_v10 = vadd.f32 %v10644_v36, %v3637_v29  ;;  %8621 = vmatmul.mubr.msk.bf16.gmra.mrb[4].mxu0 %vm3019_vm3, %v3729_v63  ;;  %v3704_v60 = vmax.f32 %v3672_v5, 0.0 }
 0x523   : > { %v3671_v0 = vadd.f32 %v10644_v36, %v3635_v57  ;;  %v3702_v46 = vmax.f32 %v3670_v18, 0.0 }
 0x524   : > { %v3705_v62 = vmax.f32 %v3673_v10, 0.0 }
 0x525   : > { %v3703_v2 = vmax.f32 %v3671_v0, 0.0  ;;  %v8596_v16 = vpop.f32.mrb[108].mxu1 }
 0x526   : > { %v3731_v31 = vpack.c.bf16 %v3705_v62, %v3704_v60  ;;  %v3640_v27 = vmul.f32 %v8596_v16, %v10636_v4  ;;  %v3543_v28 = vpop.f32.mrb[109].mxu1 }
 0x527   : > { %v3730_v12 = vpack.c.bf16 %v3703_v2, %v3702_v46  ;;  %v3638_v11 = vmul.f32 %v10636_v4, %v3543_v28  ;;  %v8597_v37 = vpop.f32.mrb[110].mxu1 }
 0x528   : > { %v3676_v21 = vadd.f32 %v10644_v36, %v3640_v27  ;;  %v3641_v29 = vmul.f32 %v8597_v37, %v10636_v4  ;;  %v3546_v63 = vpop.f32.mrb[111].mxu1 }
 0x529   : > { %v3674_v57 = vadd.f32 %v10644_v36, %v3638_v11  ;;  %v3639_v5 = vmul.f32 %v10636_v4, %v3546_v63  ;;  %8624 = vmatprep.mubr.msk.bf16.mxu0 %vm3019_vm3, %v3730_v12 }
 0x52a   : > { %v3677_v18 = vadd.f32 %v10644_v36, %v3641_v29  ;;  %8625 = vmatmul.mubr.msk.bf16.gmra.mrb[8].mxu0 %vm3019_vm3, %v3731_v31  ;;  %v3708_v0 = vmax.f32 %v3676_v21, 0.0 }
 0x52b   : > { %v3675_v10 = vadd.f32 %v10644_v36, %v3639_v5  ;;  %v3706_v62 = vmax.f32 %v3674_v57, 0.0 }
 0x52c   : > { %v3709_v60 = vmax.f32 %v3677_v18, 0.0 }
 0x52d   : > { %v3707_v46 = vmax.f32 %v3675_v10, 0.0  ;;  %v8600_v2 = vpop.f32.mrb[112].mxu1 }
 0x52e   : > { %v3733_v16 = vpack.c.bf16 %v3709_v60, %v3708_v0  ;;  %v3644_v27 = vmul.f32 %v8600_v2, %v10636_v4  ;;  %v3559_v28 = vpop.f32.mrb[113].mxu1 }
 0x52f   : > { %v3732_v11 = vpack.c.bf16 %v3707_v46, %v3706_v62  ;;  %v3642_v37 = vmul.f32 %v10636_v4, %v3559_v28  ;;  %v8601_v63 = vpop.f32.mrb[114].mxu1 }
 0x530   : > { %v3680_v12 = vadd.f32 %v10644_v36, %v3644_v27  ;;  %v3645_v29 = vmul.f32 %v8601_v63, %v10636_v4  ;;  %v3562_v31 = vpop.f32.mrb[115].mxu1 }
 0x531   : > { %v3678_v5 = vadd.f32 %v10644_v36, %v3642_v37  ;;  %v3643_v21 = vmul.f32 %v10636_v4, %v3562_v31  ;;  %8628 = vmatprep.mubr.msk.bf16.mxu0 %vm3019_vm3, %v3732_v11 }
 0x532   : > { %v3681_v57 = vadd.f32 %v10644_v36, %v3645_v29  ;;  %8629 = vmatmul.mubr.msk.bf16.gmra.mrb[12].mxu0 %vm3019_vm3, %v3733_v16  ;;  %v3712_v10 = vmax.f32 %v3680_v12, 0.0 }
 0x533   : > { %v3679_v18 = vadd.f32 %v10644_v36, %v3643_v21  ;;  %v3710_v60 = vmax.f32 %v3678_v5, 0.0 }
 0x534   : > { %v3713_v0 = vmax.f32 %v3681_v57, 0.0 }
 0x535   : > { %v3711_v62 = vmax.f32 %v3679_v18, 0.0  ;;  %v8604_v46 = vpop.f32.mrb[116].mxu1 }
 0x536   : > { %v3735_v2 = vpack.c.bf16 %v3713_v0, %v3712_v10  ;;  %v3648_v27 = vmul.f32 %v8604_v46, %v10636_v4  ;;  %v3575_v28 = vpop.f32.mrb[117].mxu1 }
 0x537   : > { %v3734_v37 = vpack.c.bf16 %v3711_v62, %v3710_v60  ;;  %v3646_v63 = vmul.f32 %v10636_v4, %v3575_v28  ;;  %v8605_v31 = vpop.f32.mrb[118].mxu1 }
 0x538   : > { %v3684_v11 = vadd.f32 %v10644_v36, %v3648_v27  ;;  %v3649_v29 = vmul.f32 %v8605_v31, %v10636_v4  ;;  %v3578_v16 = vpop.f32.mrb[119].mxu1 }
 0x539   : > { %v3682_v21 = vadd.f32 %v10644_v36, %v3646_v63  ;;  %v3647_v12 = vmul.f32 %v10636_v4, %v3578_v16  ;;  %8632 = vmatprep.mubr.msk.bf16.mxu0 %vm3019_vm3, %v3734_v37 }
 0x53a   : > { %v3685_v5 = vadd.f32 %v10644_v36, %v3649_v29  ;;  %8633 = vmatmul.mubr.msk.bf16.gmra.mrb[16].mxu0 %vm3019_vm3, %v3735_v2  ;;  %v3716_v18 = vmax.f32 %v3684_v11, 0.0 }
 0x53b   : > { %v3683_v57 = vadd.f32 %v10644_v36, %v3647_v12  ;;  %v3714_v0 = vmax.f32 %v3682_v21, 0.0 }
 0x53c   : > { %v3717_v10 = vmax.f32 %v3685_v5, 0.0 }
 0x53d   : > { %v3715_v60 = vmax.f32 %v3683_v57, 0.0  ;;  %v8608_v62 = vpop.f32.mrb[120].mxu1 }
 0x53e   : > { %v3737_v46 = vpack.c.bf16 %v3717_v10, %v3716_v18  ;;  %v3652_v27 = vmul.f32 %v8608_v62, %v10636_v4  ;;  %v3591_v28 = vpop.f32.mrb[121].mxu1 }
 0x53f   : > { %v3736_v63 = vpack.c.bf16 %v3715_v60, %v3714_v0  ;;  %v3650_v31 = vmul.f32 %v10636_v4, %v3591_v28  ;;  %v8609_v16 = vpop.f32.mrb[122].mxu1 }
 0x540   : > { %v3688_v37 = vadd.f32 %v10644_v36, %v3652_v27  ;;  %v3653_v29 = vmul.f32 %v8609_v16, %v10636_v4  ;;  %v3594_v2 = vpop.f32.mrb[123].mxu1 }
 0x541   : > { %v3686_v12 = vadd.f32 %v10644_v36, %v3650_v31  ;;  %v3651_v11 = vmul.f32 %v10636_v4, %v3594_v2  ;;  %8636 = vmatprep.mubr.msk.bf16.mxu0 %vm3019_vm3, %v3736_v63 }
 0x542   : > { %v3689_v21 = vadd.f32 %v10644_v36, %v3653_v29  ;;  %8637 = vmatmul.mubr.msk.bf16.gmra.mrb[20].mxu0 %vm3019_vm3, %v3737_v46  ;;  %v3720_v57 = vmax.f32 %v3688_v37, 0.0 }
 0x543   : > { %v3687_v5 = vadd.f32 %v10644_v36, %v3651_v11  ;;  %v3718_v10 = vmax.f32 %v3686_v12, 0.0 }
 0x544   : > { %v3721_v18 = vmax.f32 %v3689_v21, 0.0 }
 0x545   : > { %v3719_v0 = vmax.f32 %v3687_v5, 0.0  ;;  %v8612_v60 = vpop.f32.mrb[124].mxu1 }
 0x546   : > { %v3739_v62 = vpack.c.bf16 %v3721_v18, %v3720_v57  ;;  %v3656_v27 = vmul.f32 %v8612_v60, %v10636_v4  ;;  %v3607_v28 = vpop.f32.mrb[125].mxu1 }
 0x547   : > { %v3738_v31 = vpack.c.bf16 %v3719_v0, %v3718_v10  ;;  %v3654_v16 = vmul.f32 %v10636_v4, %v3607_v28  ;;  %v8613_v2 = vpop.f32.mrb[126].mxu1 }
 0x548   : > { %v3692_v63 = vadd.f32 %v10644_v36, %v3656_v27  ;;  %v3657_v29 = vmul.f32 %v8613_v2, %v10636_v4  ;;  %v3610_v46 = vpop.f32.mrb[127].mxu1 }
 0x549   : > { %v3690_v11 = vadd.f32 %v10644_v36, %v3654_v16  ;;  %v3655_v37 = vmul.f32 %v10636_v4, %v3610_v46  ;;  %8640 = vmatprep.mubr.msk.bf16.mxu0 %vm3019_vm3, %v3738_v31  ;;  %v4337_v4 = vsel %vm1274_vm1, %v10671_v3, 0 }
 0x54a   : > { %v3693_v12 = vadd.f32 %v10644_v36, %v3657_v29  ;;  %8641 = vmatmul.mubr.msk.bf16.gmra.mrb[24].mxu0 %vm3019_vm3, %v3739_v62  ;;  %v3724_v5 = vmax.f32 %v3692_v63, 0.0 }
 0x54b   : > { %v3691_v21 = vadd.f32 %v10644_v36, %v3655_v37  ;;  %v3722_v18 = vmax.f32 %v3690_v11, 0.0 }
 0x54c   : > { %v3725_v57 = vmax.f32 %v3693_v12, 0.0 }
 0x54d   : > { %v3723_v10 = vmax.f32 %v3691_v21, 0.0 }
 0x54e   : > { %v3741_v0 = vpack.c.bf16 %v3725_v57, %v3724_v5 }
 0x54f   : > { %v3740_v60 = vpack.c.bf16 %v3723_v10, %v3722_v18 }
 0x551   : > { %8644 = vmatprep.mubr.msk.bf16.mxu0 %vm3019_vm3, %v3740_v60 }
 0x552   : > { %8645 = vmatmul.mubr.msk.bf16.gmra.mrb[28].mxu0 %vm3019_vm3, %v3741_v0 }
 0x553   : > { %8652 = vmatprep.mubr.msk.bf16.mxu0 %vm549_vm0, %v9819_v15 }
 0x55a   : > { %8653 = vmatmul.mubr.msk.bf16.vlgmr.msra.gmra.mrb[32].mxu0 %vm549_vm0, %v9823_v20 }
 0x55b   : > { %8685 = vmatpush3.bf16.msra.mxu0 %v4337_v4  ;;  %8656 = vmatprep.mubr.msk.bf16.mxu0 %vm549_vm0, %v9833_v26 }
 0x55c   : > { %7952 = vmatprep.subr.bf16.mxu0 %v9855_v49 }
 0x562   : > { %8657 = vmatmul.mubr.msk.bf16.gmra.mrb[36].mxu0 %vm549_vm0, %v9837_v30 }
 0x563   : > { %8660 = vmatprep.mubr.msk.bf16.mxu0 %vm549_vm0, %v9841_v35 }
 0x56a   : > { %8661 = vmatmul.mubr.msk.bf16.gmra.mrb[40].mxu0 %vm549_vm0, %v9845_v39 }
 0x56b   : > { %8664 = vmatprep.mubr.msk.bf16.mxu0 %vm549_vm0, %v9849_v43 }
 0x572   : > { %8665 = vmatmul.mubr.msk.bf16.gmra.mrb[44].mxu0 %vm549_vm0, %v9853_v48 }
 0x573   : > { %8668 = vmatprep.mubr.msk.bf16.mxu0 %vm549_vm0, %v9855_v49  ;;  %v4168_v49 = vsub.s32 3, %v9977_v14 }
 0x575   : > { %v10774_v36 = vrot.slane %v10633_v17, %v4168_v49  ;;  %v10777_v3 = vrot.slane %v10641_v33, %v4168_v49 }
 0x57a   : > { %8669 = vmatmul.mubr.msk.bf16.gmra.mrb[48].mxu0 %vm549_vm0, %v9861_v51 }
 0x57b   : > { %8672 = vmatprep.mubr.msk.bf16.mxu0 %vm549_vm0, %v9863_v52 }
 0x582   : > { %8673 = vmatmul.mubr.msk.bf16.gmra.mrb[52].mxu0 %vm549_vm0, %v9869_v54 }
 0x583   : > { %8676 = vmatprep.mubr.msk.bf16.mxu0 %vm549_vm0, %v9871_v55 }
 0x58a   : > { %8677 = vmatmul.mubr.msk.bf16.gmra.mrb[56].mxu0 %vm549_vm0, %v9877_v58 }
 0x58b   : > { %8680 = vmatprep.mubr.msk.bf16.mxu0 %vm549_vm0, %v9879_v59 }
 0x592   : > { %8681 = vmatmul.mubr.msk.bf16.gmra.mrb[60].mxu0 %vm549_vm0, %v9885_v61 }
 0x62d   : > { %v8654_v62 = vpop.f32.mrb[32].mxu0 }
 0x62e   : > { %v4172_v27 = vmul.f32 %v8654_v62, %v10774_v36  ;;  %v4039_v28 = vpop.f32.mrb[33].mxu0 }
 0x62f   : > { %v4170_v31 = vmul.f32 %v10774_v36, %v4039_v28  ;;  %v8655_v16 = vpop.f32.mrb[34].mxu0 }
 0x630   : > { %v4208_v2 = vadd.f32 %v10777_v3, %v4172_v27  ;;  %v4173_v63 = vmul.f32 %v8655_v16, %v10774_v36  ;;  %v4042_v29 = vpop.f32.mrb[35].mxu0 }
 0x631   : > { %v4206_v46 = vadd.f32 %v10777_v3, %v4170_v31  ;;  %v4171_v11 = vmul.f32 %v10774_v36, %v4042_v29 }
 0x632   : > { %v4209_v37 = vadd.f32 %v10777_v3, %v4173_v63  ;;  %v4240_v21 = vmax.f32 %v4208_v2, 0.0 }
 0x633   : > { %v4207_v12 = vadd.f32 %v10777_v3, %v4171_v11  ;;  %v4238_v57 = vmax.f32 %v4206_v46, 0.0 }
 0x634   : > { %v4241_v5 = vmax.f32 %v4209_v37, 0.0 }
 0x635   : > { %v4239_v18 = vmax.f32 %v4207_v12, 0.0  ;;  %v8658_v10 = vpop.f32.mrb[36].mxu0 }
 0x636   : > { %v4271_v0 = vpack.c.bf16 %v4241_v5, %v4240_v21  ;;  %v4176_v60 = vmul.f32 %v8658_v10, %v10774_v36  ;;  %v4055_v4 = vpop.f32.mrb[37].mxu0 }
 0x637   : > { %v4270_v49 = vpack.c.bf16 %v4239_v18, %v4238_v57  ;;  %v4174_v62 = vmul.f32 %v10774_v36, %v4055_v4  ;;  %v8659_v27 = vpop.f32.mrb[38].mxu0 }
 0x638   : > { %v4212_v28 = vadd.f32 %v10777_v3, %v4176_v60  ;;  %v4177_v31 = vmul.f32 %v8659_v27, %v10774_v36  ;;  %v4058_v16 = vpop.f32.mrb[39].mxu0 }
 0x639   : > { %v4210_v63 = vadd.f32 %v10777_v3, %v4174_v62  ;;  %v4175_v2 = vmul.f32 %v10774_v36, %v4058_v16  ;;  %8686 = vmatprep.mubr.msk.bf16.mxu0 %vm3019_vm3, %v4270_v49 }
 0x63a   : > { %v4213_v29 = vadd.f32 %v10777_v3, %v4177_v31  ;;  %8687 = vmatmul.mubr.msk.bf16.vlgmr.msra.gmra.mrb[0].mxu0 %vm3019_vm3, %v4271_v0  ;;  %v4244_v11 = vmax.f32 %v4212_v28, 0.0 }
 0x63b   : > { %v4211_v46 = vadd.f32 %v10777_v3, %v4175_v2  ;;  %7953 = vmatpush3.bf16.msra.mxu0 %v9819_v15  ;;  %v4242_v12 = vmax.f32 %v4210_v63, 0.0 }
 0x63c   : > { %v4245_v37 = vmax.f32 %v4213_v29, 0.0  ;;  %7954 = vmatprep.subr.bf16.mxu0 %v9861_v51 }
 0x63d   : > { %v4243_v21 = vmax.f32 %v4211_v46, 0.0  ;;  %v8662_v5 = vpop.f32.mrb[40].mxu0 }
 0x63e   : > { %v4273_v57 = vpack.c.bf16 %v4245_v37, %v4244_v11  ;;  %v4180_v18 = vmul.f32 %v8662_v5, %v10774_v36  ;;  %v4071_v10 = vpop.f32.mrb[41].mxu0 }
 0x63f   : > { %v4272_v60 = vpack.c.bf16 %v4243_v21, %v4242_v12  ;;  %v4178_v4 = vmul.f32 %v10774_v36, %v4071_v10  ;;  %7955 = vmatpush3.bf16.msra.mxu0 %v9823_v20  ;;  %v8663_v0 = vpop.f32.mrb[42].mxu0 }
 0x640   : > { %v4216_v49 = vadd.f32 %v10777_v3, %v4180_v18  ;;  %v4181_v15 = vmul.f32 %v8663_v0, %v10774_v36  ;;  %7956 = vmatprep.subr.bf16.mxu0 %v9863_v52  ;;  %v4074_v51 = vpop.f32.mrb[43].mxu0 }
 0x641   : > { %v4214_v62 = vadd.f32 %v10777_v3, %v4178_v4  ;;  %v4179_v27 = vmul.f32 %v10774_v36, %v4074_v51  ;;  %8690 = vmatprep.mubr.msk.bf16.mxu0 %vm3019_vm3, %v4272_v60 }
 0x642   : > { %v4217_v28 = vadd.f32 %v10777_v3, %v4181_v15  ;;  %8691 = vmatmul.mubr.msk.bf16.gmra.mrb[4].mxu0 %vm3019_vm3, %v4273_v57  ;;  %v4248_v31 = vmax.f32 %v4216_v49, 0.0 }
 0x643   : > { %v4215_v20 = vadd.f32 %v10777_v3, %v4179_v27  ;;  %7957 = vmatpush3.bf16.msra.mxu0 %v9833_v26  ;;  %v4246_v52 = vmax.f32 %v4214_v62, 0.0 }
 0x644   : > { %v4249_v16 = vmax.f32 %v4217_v28, 0.0  ;;  %7958 = vmatprep.subr.bf16.mxu0 %v9869_v54 }
 0x645   : > { %v4247_v63 = vmax.f32 %v4215_v20, 0.0  ;;  %v8666_v2 = vpop.f32.mrb[44].mxu0 }
 0x646   : > { %v4275_v29 = vpack.c.bf16 %v4249_v16, %v4248_v31  ;;  %v4184_v46 = vmul.f32 %v8666_v2, %v10774_v36  ;;  %v4087_v11 = vpop.f32.mrb[45].mxu0 }
 0x647   : > { %v4274_v37 = vpack.c.bf16 %v4247_v63, %v4246_v52  ;;  %v4182_v12 = vmul.f32 %v10774_v36, %v4087_v11  ;;  %7959 = vmatpush3.bf16.msra.mxu0 %v9837_v30  ;;  %v8667_v21 = vpop.f32.mrb[46].mxu0 }
 0x648   : > { %v4220_v5 = vadd.f32 %v10777_v3, %v4184_v46  ;;  %v4185_v26 = vmul.f32 %v8667_v21, %v10774_v36  ;;  %7960 = vmatprep.subr.bf16.mxu0 %v9871_v55  ;;  %v4090_v54 = vpop.f32.mrb[47].mxu0 }
 0x649   : > { %v4218_v57 = vadd.f32 %v10777_v3, %v4182_v12  ;;  %v4183_v18 = vmul.f32 %v10774_v36, %v4090_v54  ;;  %8694 = vmatprep.mubr.msk.bf16.mxu0 %vm3019_vm3, %v4274_v37 }
 0x64a   : > { %v4221_v10 = vadd.f32 %v10777_v3, %v4185_v26  ;;  %8695 = vmatmul.mubr.msk.bf16.gmra.mrb[8].mxu0 %vm3019_vm3, %v4275_v29  ;;  %v4252_v60 = vmax.f32 %v4220_v5, 0.0 }
 0x64b   : > { %v4219_v30 = vadd.f32 %v10777_v3, %v4183_v18  ;;  %7961 = vmatpush3.bf16.msra.mxu0 %v9841_v35  ;;  %v4250_v55 = vmax.f32 %v4218_v57, 0.0 }
 0x64c   : > { %v4253_v4 = vmax.f32 %v4221_v10, 0.0  ;;  %7962 = vmatprep.subr.bf16.mxu0 %v9877_v58 }
 0x64d   : > { %v4251_v0 = vmax.f32 %v4219_v30, 0.0  ;;  %v8670_v49 = vpop.f32.mrb[48].mxu0 }
 0x64e   : > { %v4277_v15 = vpack.c.bf16 %v4253_v4, %v4252_v60  ;;  %v4188_v51 = vmul.f32 %v8670_v49, %v10774_v36  ;;  %v4103_v62 = vpop.f32.mrb[49].mxu0 }
 0x64f   : > { %v4276_v27 = vpack.c.bf16 %v4251_v0, %v4250_v55  ;;  %v4186_v28 = vmul.f32 %v10774_v36, %v4103_v62  ;;  %7963 = vmatpush3.bf16.msra.mxu0 %v9845_v39  ;;  %v8671_v20 = vpop.f32.mrb[50].mxu0 }
 0x650   : > { %v4224_v31 = vadd.f32 %v10777_v3, %v4188_v51  ;;  %v4189_v35 = vmul.f32 %v8671_v20, %v10774_v36  ;;  %7964 = vmatprep.subr.bf16.mxu0 %v9879_v59  ;;  %v4106_v58 = vpop.f32.mrb[51].mxu0 }
 0x651   : > { %v4222_v16 = vadd.f32 %v10777_v3, %v4186_v28  ;;  %v4187_v52 = vmul.f32 %v10774_v36, %v4106_v58  ;;  %8698 = vmatprep.mubr.msk.bf16.mxu0 %vm3019_vm3, %v4276_v27 }
 0x652   : > { %v4225_v63 = vadd.f32 %v10777_v3, %v4189_v35  ;;  %8699 = vmatmul.mubr.msk.bf16.gmra.mrb[12].mxu0 %vm3019_vm3, %v4277_v15  ;;  %v4256_v2 = vmax.f32 %v4224_v31, 0.0 }
 0x653   : > { %v4223_v39 = vadd.f32 %v10777_v3, %v4187_v52  ;;  %7965 = vmatpush3.bf16.msra.mxu0 %v9849_v43  ;;  %v4254_v59 = vmax.f32 %v4222_v16, 0.0 }
 0x654   : > { %v4257_v29 = vmax.f32 %v4225_v63, 0.0  ;;  %7966 = vmatprep.subr.bf16.mxu0 %v9885_v61 }
 0x655   : > { %v4255_v46 = vmax.f32 %v4223_v39, 0.0  ;;  %v8674_v11 = vpop.f32.mrb[52].mxu0 }
 0x656   : > { %v4279_v37 = vpack.c.bf16 %v4257_v29, %v4256_v2  ;;  %v4192_v12 = vmul.f32 %v8674_v11, %v10774_v36  ;;  %v4119_v21 = vpop.f32.mrb[53].mxu0 }
 0x657   : > { %v4278_v5 = vpack.c.bf16 %v4255_v46, %v4254_v59  ;;  %v4190_v26 = vmul.f32 %v10774_v36, %v4119_v21  ;;  %7967 = vmatpush3.bf16.msra.mxu0 %v9853_v48  ;;  %v8675_v54 = vpop.f32.mrb[54].mxu0 }
 0x658   : > { %v4228_v57 = vadd.f32 %v10777_v3, %v4192_v12  ;;  %v4193_v43 = vmul.f32 %v8675_v54, %v10774_v36  ;;  %v4122_v18 = vpop.f32.mrb[55].mxu0 }
 0x659   : > { %v4226_v61 = vadd.f32 %v10777_v3, %v4190_v26  ;;  %v4191_v10 = vmul.f32 %v10774_v36, %v4122_v18  ;;  %8702 = vmatprep.mubr.msk.bf16.mxu0 %vm3019_vm3, %v4278_v5 }
 0x65a   : > { %v4229_v30 = vadd.f32 %v10777_v3, %v4193_v43  ;;  %8703 = vmatmul.mubr.msk.bf16.gmra.mrb[16].mxu0 %vm3019_vm3, %v4279_v37  ;;  %v4260_v4 = vmax.f32 %v4228_v57, 0.0 }
 0x65b   : > { %v4227_v60 = vadd.f32 %v10777_v3, %v4191_v10  ;;  %v4258_v55 = vmax.f32 %v4226_v61, 0.0 }
 0x65c   : > { %v4261_v48 = vmax.f32 %v4229_v30, 0.0 }
 0x65d   : > { %v4259_v0 = vmax.f32 %v4227_v60, 0.0  ;;  %v8678_v49 = vpop.f32.mrb[56].mxu0 }
 0x65e   : > { %v4281_v15 = vpack.c.bf16 %v4261_v48, %v4260_v4  ;;  %v4196_v51 = vmul.f32 %v8678_v49, %v10774_v36  ;;  %v4135_v62 = vpop.f32.mrb[57].mxu0 }
 0x65f   : > { %v4280_v27 = vpack.c.bf16 %v4259_v0, %v4258_v55  ;;  %v4194_v28 = vmul.f32 %v10774_v36, %v4135_v62  ;;  %v8679_v20 = vpop.f32.mrb[58].mxu0  ;;  %v9723_v62 = vmov 0.0  }
 0x660   : > { %v4232_v31 = vadd.f32 %v10777_v3, %v4196_v51  ;;  %v4197_v35 = vmul.f32 %v8679_v20, %v10774_v36  ;;  %v4138_v58 = vpop.f32.mrb[59].mxu0  ;;  %v9722_v51 = vmov 1065369472   ;;  %8718 = vmatprep.subr.bf16.mxu0 %v9723_v62 }
 0x661   : > { %v4230_v16 = vadd.f32 %v10777_v3, %v4194_v28  ;;  %v4195_v52 = vmul.f32 %v10774_v36, %v4138_v58  ;;  %8706 = vmatprep.mubr.msk.bf16.mxu0 %vm3019_vm3, %v4280_v27 }
 0x662   : > { %v4233_v63 = vadd.f32 %v10777_v3, %v4197_v35  ;;  %8707 = vmatmul.mubr.msk.bf16.gmra.mrb[20].mxu0 %vm3019_vm3, %v4281_v15  ;;  %v4264_v2 = vmax.f32 %v4232_v31, 0.0 }
 0x663   : > { %v4231_v39 = vadd.f32 %v10777_v3, %v4195_v52  ;;  %v4262_v59 = vmax.f32 %v4230_v16, 0.0 }
 0x664   : > { %v4265_v29 = vmax.f32 %v4233_v63, 0.0 }
 0x665   : > { %v4263_v46 = vmax.f32 %v4231_v39, 0.0  ;;  %v8682_v11 = vpop.f32.mrb[60].mxu0 }
 0x666   : > { %v4283_v37 = vpack.c.bf16 %v4265_v29, %v4264_v2  ;;  %v4200_v12 = vmul.f32 %v8682_v11, %v10774_v36  ;;  %v4151_v21 = vpop.f32.mrb[61].mxu0 }
 0x667   : > { %v4282_v5 = vpack.c.bf16 %v4263_v46, %v4262_v59  ;;  %v4198_v26 = vmul.f32 %v10774_v36, %v4151_v21  ;;  %v8683_v54 = vpop.f32.mrb[62].mxu0 }
 0x668   : > { %v4236_v57 = vadd.f32 %v10777_v3, %v4200_v12  ;;  %v4201_v43 = vmul.f32 %v8683_v54, %v10774_v36  ;;  %v4154_v18 = vpop.f32.mrb[63].mxu0 }
 0x669   : > { %v4234_v61 = vadd.f32 %v10777_v3, %v4198_v26  ;;  %v4199_v10 = vmul.f32 %v10774_v36, %v4154_v18  ;;  %8710 = vmatprep.mubr.msk.bf16.mxu0 %vm3019_vm3, %v4282_v5  ;;  %v9707_v36 = vld [vmem:[%s11921_s5] sm:$0xff]  }
 0x66a   : > { %v4237_v30 = vadd.f32 %v10777_v3, %v4201_v43  ;;  %8711 = vmatmul.mubr.msk.bf16.gmra.mrb[24].mxu0 %vm3019_vm3, %v4283_v37  ;;  %v4268_v4 = vmax.f32 %v4236_v57, 0.0 }
 0x66b   : > { %v4235_v60 = vadd.f32 %v10777_v3, %v4199_v10  ;;  %v4266_v55 = vmax.f32 %v4234_v61, 0.0  ;;  %v9708_v3 = vld [vmem:[%s11921_s5 + $0x8] sm:$0xff]  }
 0x66c   : > { %v4269_v48 = vmax.f32 %v4237_v30, 0.0 }
 0x66d   : > { %v4267_v0 = vmax.f32 %v4235_v60, 0.0 }
 0x66e   : > { %v4285_v49 = vpack.c.bf16 %v4269_v48, %v4268_v4  ;;  %v11956_v48 = vld [vmem:[#allocation3_spill] sm:$0xff] }
 0x66f   : > { %v4284_v15 = vpack.c.bf16 %v4267_v0, %v4266_v55  ;;  %v11957_v0 = vld [vmem:[#allocation4_spill] sm:$0xff] }
 0x671   : > { %8714 = vmatprep.mubr.msk.bf16.mxu0 %vm3019_vm3, %v4284_v15  ;;  %v11958_v15 = vld [vmem:[#allocation5_spill] sm:$0xff] }
 0x672   : > { %8715 = vmatmul.mubr.msk.bf16.gmra.mrb[28].mxu0 %vm3019_vm3, %v4285_v49 }
 0x673   : > { %4564 = vmatprep.mubr.bf16.mxu0 %v9722_v51 }
 0x67a   : > { %4565 = vmatmul.mubr.bf16.vlgmr.msra.gmra.mrb[64].mxu0 %v9722_v51 }
 0x67b   : > { %8719 = vmatpush3.bf16.msra.mxu0 %v9707_v36  ;;  %8722 = vmatprep.mubr.msk.bf16.mxu0 %vm9724_vm4, %v9723_v62  ;;  %v11959_v36 = vld [vmem:[#allocation6_spill] sm:$0xff] }
 0x67c   : > { %8720 = vmatprep.subr.bf16.mxu0 %v9723_v62 }
 0x67f   : > { %8721 = vmatpush3.bf16.msra.mxu0 %v9708_v3 }
 0x680   : > { %8726 = vmatprep.subr.bf16.mxu0 %v9723_v62 }
 0x70d   : > { %v8688_v27 = vpop.f32.mrb[0].mxu0 }
 0x70e   : > { %v10886_v28 = vadd.f32 %v8688_v27, %v10565_v9  ;;  %v4373_v20 = vpop.f32.mrb[1].mxu0  ;;  %v11960_v27 = vld [vmem:[#allocation7_spill] sm:$0xff] }
 0x70f   : > { %v10889_v31 = vadd.f32 %v4373_v20, %v10567_v47  ;;  %v8689_v35 = vpop.f32.mrb[2].mxu0 }
 0x710   : > { %v10892_v58 = vadd.f32 %v8689_v35, %v10569_v56  ;;  %v4376_v16 = vpop.f32.mrb[3].mxu0  ;;  %v11961_v35 = vld [vmem:[#allocation8_spill] sm:$0xff] }
 0x711   : > { %v10895_v52 = vadd.f32 %v4376_v16, %v10571_v38 }
 0x715   : > { %v8692_v63 = vpop.f32.mrb[4].mxu0 }
 0x716   : > { %v10898_v39 = vadd.f32 %v8692_v63, %v10573_v40  ;;  %v4389_v2 = vpop.f32.mrb[5].mxu0 }
 0x717   : > { %v10901_v9 = vadd.f32 %v4389_v2, %v10575_v13  ;;  %v8693_v29 = vpop.f32.mrb[6].mxu0  ;;  %v11962_v2 = vld [vmem:[#allocation9_spill] sm:$0xff] }
 0x718   : > { %v10904_v47 = vadd.f32 %v8693_v29, %v10577_v6  ;;  %v4392_v59 = vpop.f32.mrb[7].mxu0 }
 0x719   : > { %v10907_v56 = vadd.f32 %v4392_v59, %v10579_v19 }
 0x71d   : > { %v8696_v46 = vpop.f32.mrb[8].mxu0 }
 0x71e   : > { %v10910_v38 = vadd.f32 %v8696_v46, %v10581_v1  ;;  %v4405_v11 = vpop.f32.mrb[9].mxu0  ;;  %v11963_v46 = vld [vmem:[#allocation10_spill] sm:$0xff] }
 0x71f   : > { %v10913_v40 = vadd.f32 %v4405_v11, %v10583_v8  ;;  %v8697_v37 = vpop.f32.mrb[10].mxu0 }
 0x720   : > { %v10916_v13 = vadd.f32 %v8697_v37, %v10585_v23  ;;  %v4408_v12 = vpop.f32.mrb[11].mxu0 }
 0x721   : > { %v10919_v6 = vadd.f32 %v4408_v12, %v10587_v32  ;;  %v11964_v12 = vld [vmem:[#allocation11_spill] sm:$0xff] }
 0x725   : > { %v8700_v21 = vpop.f32.mrb[12].mxu0 }
 0x726   : > { %v10922_v19 = vadd.f32 %v8700_v21, %v10589_v34  ;;  %v4421_v5 = vpop.f32.mrb[13].mxu0 }
 0x727   : > { %v10925_v1 = vadd.f32 %v4421_v5, %v10591_v24  ;;  %v8701_v26 = vpop.f32.mrb[14].mxu0 }
 0x728   : > { %v10928_v8 = vadd.f32 %v8701_v26, %v10593_v41  ;;  %v4424_v54 = vpop.f32.mrb[15].mxu0 }
 0x729   : > { %v10931_v23 = vadd.f32 %v4424_v54, %v10595_v25 }
 0x72d   : > { %v8704_v57 = vpop.f32.mrb[16].mxu0 }
 0x72e   : > { %v10934_v32 = vadd.f32 %v8704_v57, %v10597_v42  ;;  %v4437_v43 = vpop.f32.mrb[17].mxu0 }
 0x72f   : > { %v10937_v34 = vadd.f32 %v4437_v43, %v10599_v7  ;;  %v8705_v18 = vpop.f32.mrb[18].mxu0 }
 0x730   : > { %v10940_v24 = vadd.f32 %v8705_v18, %v10601_v44  ;;  %v4440_v61 = vpop.f32.mrb[19].mxu0 }
 0x731   : > { %v10943_v41 = vadd.f32 %v4440_v61, %v10603_v45 }
 0x735   : > { %v8708_v10 = vpop.f32.mrb[20].mxu0 }
 0x736   : > { %v10946_v25 = vadd.f32 %v8708_v10, %v10605_v50  ;;  %v4453_v30 = vpop.f32.mrb[21].mxu0  ;;  %v4643_v10 = vld [vmem:[%s11923_s7] sm:$0x3] }
 0x737   : > { %v10949_v42 = vadd.f32 %v4453_v30, %v10607_v53  ;;  %v8709_v60 = vpop.f32.mrb[22].mxu0  ;;  %v4648_v30 = vsel %vm1274_vm1, %v4643_v10, 0 }
 0x738   : > { %v10952_v7 = vadd.f32 %v8709_v60, %v10609_v22  ;;  %v4456_v4 = vpop.f32.mrb[23].mxu0  ;;  %v4634_v60 = vrot.slane %v10633_v17, 4 }
 0x739   : > { %v10955_v44 = vadd.f32 %v4456_v4, %v11956_v48  ;;  %v4638_v4 = vrot.slane %v10641_v33, 4 }
 0x73d   : > { %v8712_v55 = vpop.f32.mrb[24].mxu0 }
 0x73e   : > { %v10958_v45 = vadd.f32 %v8712_v55, %v11957_v0  ;;  %v4469_v49 = vpop.f32.mrb[25].mxu0 }
 0x73f   : > { %v10961_v50 = vadd.f32 %v4469_v49, %v11958_v15  ;;  %v8713_v51 = vpop.f32.mrb[26].mxu0 }
 0x740   : > { %v10964_v53 = vadd.f32 %v8713_v51, %v11959_v36  ;;  %v4472_v3 = vpop.f32.mrb[27].mxu0 }
 0x741   : > { %v10967_v22 = vadd.f32 %v4472_v3, %v11960_v27  ;;  %v7513_v27 = vld [vmem:[%s11924_s8 + $0x2] sm:$0x3] }
 0x745   : > { %v8716_v20 = vpop.f32.mrb[28].mxu0 }
 0x746   : > { %v10970_v16 = vadd.f32 %v8716_v20, %v11961_v35  ;;  %v4485_v63 = vpop.f32.mrb[29].mxu0  ;;  %v5028_v20 = vsel %vm1274_vm1, %v7513_v27, 0  ;;  %v4992_v35 = vld [vmem:[%s11924_s8] sm:$0x3] }
 0x747   : > { %v10973_v29 = vadd.f32 %v4485_v63, %v11962_v2  ;;  %v8717_v59 = vpop.f32.mrb[30].mxu0  ;;  %v4728_v63 = vsub.s32 5, %v9977_v14 }
 0x748   : > { %v10976_v11 = vadd.f32 %v8717_v59, %v11963_v46  ;;  %v4488_v37 = vpop.f32.mrb[31].mxu0  ;;  %v11966_v59 = vld [vmem:[#allocation2_spill] sm:$0xff] }
 0x749   : > { %v10979_v21 = vadd.f32 %v4488_v37, %v11964_v12  ;;  %v11004_v12 = vrot.slane %v10633_v17, %v4728_v63 }
 0x74d   : > { %v7968_v5 = vpop.f32.mrb[64].mxu0 }
 0x74e   : > { %v7969_v26 = vpop.f32.mrb[65].mxu0 }
 0x74f   : > { %v7970_v54 = vadd.f32 %v7969_v26, %v7968_v5  ;;  %v7971_v57 = vpop.f32.mrb[66].mxu0  ;;  %v11007_v5 = vrot.slane %v10641_v33, %v4728_v63 }
 0x750   : > { %v7972_v43 = vpop.f32.mrb[67].mxu0 }
 0x751   : > { %v4572_v18 = vmul.f32 0.00390625, %v7970_v54  ;;  %v11010_v54 = vsel %vm1274_vm1, %v4992_v35, 0 }
 0x753   : > { %v4573_v61 = vpack.c.bf16 %v4572_v18, %v4572_v18 }
 0x755   : > { %8723 = vmatmul.mubr.msk.bf16.vlgmr.msra.gmra.mrb[68].mxu0 %vm549_vm0, %v4573_v61 }
 0x756   : > { %8728 = vmatprep.mubr.msk.bf16.mxu0 %vm9724_vm4, %v9723_v62  ;;  %8727 = vmatpush3.bf16.msra.mxu0 %v4648_v30  ;;  %v11965_v62 = vmov 0  }
 0x757   : > { %9653 = vmatprep.subr.msk.bf16.mxu0 %vm1274_vm1, %v7513_v27 }
 0x828   : > { %v4627_v48 = vpop.f32.mrb[68].mxu0 }
 0x829   : > { %v4636_v55 = vmul.f32 %v4634_v60, %v4627_v48  ;;  %v8724_v0 = vpop.f32.mrb[69].mxu0 }
 0x82a   : > { %v4630_v49 = vpop.f32.mrb[70].mxu0 }
 0x82b   : > { %v4640_v15 = vadd.f32 %v4638_v4, %v4636_v55  ;;  %v8725_v51 = vpop.f32.mrb[71].mxu0 }
 0x82d   : > { %v4641_v36 = vmax.f32 %v4640_v15, 0.0 }
 0x82f   : > { %v4642_v3 = vpack.c.bf16 %v4641_v36, %v4641_v36 }
 0x831   : > { %8729 = vmatmul.mubr.msk.bf16.vlgmr.msra.gmra.mrb[72].mxu0 %vm3019_vm3, %v4642_v3 }
 0x832   : > { %8734 = vmatprep.mubr.bf16.mxu0 %v11965_v62  ;;  %8733 = vmatpush3.bf16.msra.mxu0 %v5028_v20 }
 0x833   : > { %9654 = vmatprep.subr.msk.bf16.mxu0 %vm1274_vm1, %v4992_v35 }
 0x904   : > { %v4684_v2 = vpop.f32.mrb[72].mxu0 }
 0x905   : > { %v4693_v46 = vrot.slane %v4684_v2, %v11966_v59  ;;  %v8730_v37 = vpop.f32.mrb[73].mxu0 }
 0x906   : > { %v4687_v26 = vpop.f32.mrb[74].mxu0 }
 0x907   : > { %v4694_v57 = vadd.f32 %v10889_v31, %v4693_v46  ;;  %v4695_v43 = vadd.f32 %v10895_v52, %v4693_v46  ;;  %v4696_v18 = vadd.f32 %v10886_v28, %v4693_v46  ;;  %v4697_v61 = vadd.f32 %v10892_v58, %v4693_v46  ;;  %v8731_v10 = vpop.f32.mrb[75].mxu0 }
 0x908   : > { %v4698_v30 = vadd.f32 %v10901_v9, %v4693_v46  ;;  %v4699_v17 = vadd.f32 %v10907_v56, %v4693_v46  ;;  %v4700_v33 = vadd.f32 %v10898_v39, %v4693_v46  ;;  %v4701_v60 = vadd.f32 %v10904_v47, %v4693_v46 }
 0x909   : > { %v4702_v4 = vadd.f32 %v10913_v40, %v4693_v46  ;;  %v4703_v48 = vadd.f32 %v10919_v6, %v4693_v46  ;;  %v4704_v31 = vadd.f32 %v10910_v38, %v4693_v46  ;;  %v4705_v52 = vadd.f32 %v10916_v13, %v4693_v46 }
 0x90a   : > { %v4706_v28 = vadd.f32 %v10925_v1, %v4693_v46  ;;  %v4707_v58 = vadd.f32 %v10931_v23, %v4693_v46  ;;  %v4708_v9 = vadd.f32 %v10922_v19, %v4693_v46  ;;  %v4709_v56 = vadd.f32 %v10928_v8, %v4693_v46 }
 0x90b   : > { %v4710_v39 = vadd.f32 %v10937_v34, %v4693_v46  ;;  %v4711_v47 = vadd.f32 %v10943_v41, %v4693_v46  ;;  %v4712_v40 = vadd.f32 %v10934_v32, %v4693_v46  ;;  %v4713_v6 = vadd.f32 %v10940_v24, %v4693_v46 }
 0x90c   : > { %v4714_v38 = vadd.f32 %v10949_v42, %v4693_v46  ;;  %v4715_v13 = vadd.f32 %v10955_v44, %v4693_v46  ;;  %v4716_v1 = vadd.f32 %v10946_v25, %v4693_v46  ;;  %v4717_v23 = vadd.f32 %v10952_v7, %v4693_v46 }
 0x90d   : > { %v4718_v19 = vadd.f32 %v10961_v50, %v4693_v46  ;;  %v4719_v8 = vadd.f32 %v10967_v22, %v4693_v46  ;;  %v4720_v34 = vadd.f32 %v10958_v45, %v4693_v46  ;;  %v4721_v41 = vadd.f32 %v10964_v53, %v4693_v46 }
 0x90e   : > { %v4722_v32 = vadd.f32 %v10973_v29, %v4693_v46  ;;  %v4723_v24 = vadd.f32 %v10979_v21, %v4693_v46  ;;  %v4724_v42 = vadd.f32 %v10970_v16, %v4693_v46  ;;  %v4725_v44 = vadd.f32 %v10976_v11, %v4693_v46 }
 0x90f   : > { %v4730_v25 = vmul.f32 %v11004_v12, %v4694_v57  ;;  %v4731_v7 = vmul.f32 %v11004_v12, %v4695_v43  ;;  %v4732_v50 = vmul.f32 %v11004_v12, %v4696_v18  ;;  %v4733_v22 = vmul.f32 %v11004_v12, %v4697_v61 }
 0x910   : > { %v4734_v45 = vmul.f32 %v11004_v12, %v4698_v30  ;;  %v4735_v53 = vmul.f32 %v11004_v12, %v4699_v17  ;;  %v4736_v29 = vmul.f32 %v11004_v12, %v4700_v33  ;;  %v4737_v21 = vmul.f32 %v11004_v12, %v4701_v60 }
 0x911   : > { %v4738_v16 = vmul.f32 %v11004_v12, %v4702_v4  ;;  %v4739_v11 = vmul.f32 %v11004_v12, %v4703_v48  ;;  %v4740_v55 = vmul.f32 %v11004_v12, %v4704_v31  ;;  %v4741_v0 = vmul.f32 %v11004_v12, %v4705_v52 }
 0x912   : > { %v4742_v49 = vmul.f32 %v11004_v12, %v4706_v28  ;;  %v4743_v15 = vmul.f32 %v11004_v12, %v4707_v58  ;;  %v4744_v51 = vmul.f32 %v11004_v12, %v4708_v9  ;;  %v4745_v36 = vmul.f32 %v11004_v12, %v4709_v56 }
 0x913   : > { %v4746_v3 = vmul.f32 %v11004_v12, %v4710_v39  ;;  %v4747_v27 = vmul.f32 %v11004_v12, %v4711_v47  ;;  %v4748_v20 = vmul.f32 %v11004_v12, %v4712_v40  ;;  %v4749_v35 = vmul.f32 %v11004_v12, %v4713_v6 }
 0x914   : > { %v4750_v63 = vmul.f32 %v11004_v12, %v4714_v38  ;;  %v4751_v2 = vmul.f32 %v11004_v12, %v4715_v13  ;;  %v4752_v59 = vmul.f32 %v11004_v12, %v4716_v1  ;;  %v4753_v46 = vmul.f32 %v11004_v12, %v4717_v23 }
 0x915   : > { %v4754_v37 = vmul.f32 %v11004_v12, %v4718_v19  ;;  %v4755_v26 = vmul.f32 %v11004_v12, %v4719_v8  ;;  %v4756_v57 = vmul.f32 %v11004_v12, %v4720_v34  ;;  %v4757_v43 = vmul.f32 %v11004_v12, %v4721_v41 }
 0x916   : > { %v4758_v18 = vmul.f32 %v11004_v12, %v4722_v32  ;;  %v4759_v61 = vmul.f32 %v11004_v12, %v4723_v24  ;;  %v4760_v10 = vmul.f32 %v11004_v12, %v4724_v42  ;;  %v4761_v30 = vmul.f32 %v11004_v12, %v4725_v44 }
 0x917   : > { %v11077_v17 = vadd.f32 %v11007_v5, %v4730_v25  ;;  %v11080_v33 = vadd.f32 %v11007_v5, %v4731_v7  ;;  %v11083_v60 = vadd.f32 %v11007_v5, %v4732_v50  ;;  %v11086_v4 = vadd.f32 %v11007_v5, %v4733_v22 }
 0x918   : > { %v11089_v48 = vadd.f32 %v11007_v5, %v4734_v45  ;;  %v4771_v31 = vadd.f32 %v11007_v5, %v4735_v53  ;;  %v4772_v52 = vadd.f32 %v11007_v5, %v4736_v29  ;;  %v4773_v12 = vadd.f32 %v11007_v5, %v4737_v21 }
 0x919   : > { %v4774_v28 = vadd.f32 %v11007_v5, %v4738_v16  ;;  %v4775_v58 = vadd.f32 %v11007_v5, %v4739_v11  ;;  %v4776_v9 = vadd.f32 %v11007_v5, %v4740_v55  ;;  %v4777_v56 = vadd.f32 %v11007_v5, %v4741_v0 }
 0x91a   : > { %v4778_v39 = vadd.f32 %v11007_v5, %v4742_v49  ;;  %v4779_v47 = vadd.f32 %v11007_v5, %v4743_v15  ;;  %v4780_v40 = vadd.f32 %v11007_v5, %v4744_v51  ;;  %v4781_v6 = vadd.f32 %v11007_v5, %v4745_v36 }
 0x91b   : > { %v4782_v38 = vadd.f32 %v11007_v5, %v4746_v3  ;;  %v4783_v13 = vadd.f32 %v11007_v5, %v4747_v27  ;;  %v4784_v1 = vadd.f32 %v11007_v5, %v4748_v20  ;;  %v4785_v23 = vadd.f32 %v11007_v5, %v4749_v35 }
 0x91c   : > { %v4786_v19 = vadd.f32 %v11007_v5, %v4750_v63  ;;  %v4787_v8 = vadd.f32 %v11007_v5, %v4751_v2  ;;  %v4788_v34 = vadd.f32 %v11007_v5, %v4752_v59  ;;  %v4789_v41 = vadd.f32 %v11007_v5, %v4753_v46 }
 0x91d   : > { %v4790_v32 = vadd.f32 %v11007_v5, %v4754_v37  ;;  %v4791_v24 = vadd.f32 %v11007_v5, %v4755_v26  ;;  %v4792_v42 = vadd.f32 %v11007_v5, %v4756_v57  ;;  %v4793_v44 = vadd.f32 %v11007_v5, %v4757_v43 }
 0x91e   : > { %v4794_v25 = vadd.f32 %v11007_v5, %v4758_v18  ;;  %v4795_v7 = vadd.f32 %v11007_v5, %v4759_v61  ;;  %v4796_v50 = vadd.f32 %v11007_v5, %v4760_v10  ;;  %v4797_v22 = vadd.f32 %v11007_v5, %v4761_v30 }
 0x91f   : > { %v4798_v45 = vmax.f32 %v11077_v17, 0.0  ;;  %v4799_v53 = vmax.f32 %v11080_v33, 0.0  ;;  %v4800_v29 = vmax.f32 %v11083_v60, 0.0  ;;  %v4801_v21 = vmax.f32 %v11086_v4, 0.0 }
 0x920   : > { %v4802_v16 = vmax.f32 %v11089_v48, 0.0  ;;  %v4803_v11 = vmax.f32 %v4771_v31, 0.0  ;;  %v4804_v55 = vmax.f32 %v4772_v52, 0.0  ;;  %v4805_v0 = vmax.f32 %v4773_v12, 0.0 }
 0x921   : > { %v4806_v49 = vmax.f32 %v4774_v28, 0.0  ;;  %v4807_v15 = vmax.f32 %v4775_v58, 0.0  ;;  %v4808_v51 = vmax.f32 %v4776_v9, 0.0  ;;  %v4809_v36 = vmax.f32 %v4777_v56, 0.0 }
 0x922   : > { %v4810_v3 = vmax.f32 %v4778_v39, 0.0  ;;  %v4811_v27 = vmax.f32 %v4779_v47, 0.0  ;;  %v4812_v5 = vmax.f32 %v4780_v40, 0.0  ;;  %v4813_v20 = vmax.f32 %v4781_v6, 0.0  ;;  %v7545_v6 = vld [vmem:[%s11924_s8 + $0x4] sm:$0x3] }
 0x923   : > { %v4814_v35 = vmax.f32 %v4782_v38, 0.0  ;;  %v4815_v63 = vmax.f32 %v4783_v13, 0.0  ;;  %v4816_v2 = vmax.f32 %v4784_v1, 0.0  ;;  %v4817_v59 = vmax.f32 %v4785_v23, 0.0 }
 0x924   : > { %v4818_v46 = vmax.f32 %v4786_v19, 0.0  ;;  %v4819_v37 = vmax.f32 %v4787_v8, 0.0  ;;  %v4820_v26 = vmax.f32 %v4788_v34, 0.0  ;;  %v4821_v57 = vmax.f32 %v4789_v41, 0.0 }
 0x925   : > { %v4822_v43 = vmax.f32 %v4790_v32, 0.0  ;;  %v4823_v18 = vmax.f32 %v4791_v24, 0.0  ;;  %v4824_v61 = vmax.f32 %v4792_v42, 0.0  ;;  %v4825_v10 = vmax.f32 %v4793_v44, 0.0 }
 0x926   : > { %v4826_v30 = vmax.f32 %v4794_v25, 0.0  ;;  %v4827_v17 = vmax.f32 %v4795_v7, 0.0  ;;  %v4828_v33 = vmax.f32 %v4796_v50, 0.0  ;;  %v4829_v60 = vmax.f32 %v4797_v22, 0.0  ;;  %v7630_v25 = vld [vmem:[%s11924_s8 + $0xe] sm:$0x3] }
 0x927   : > { %v11123_v4 = vpack.c.bf16 %v4799_v53, %v4798_v45  ;;  %v11125_v48 = vpack.c.bf16 %v4801_v21, %v4800_v29  ;;  %v11127_v31 = vpack.c.bf16 %v4803_v11, %v4802_v16  ;;  %v11129_v52 = vpack.c.bf16 %v4805_v0, %v4804_v55 }
 0x928   : > { %v11131_v12 = vpack.c.bf16 %v4807_v15, %v4806_v49  ;;  %v11133_v28 = vpack.c.bf16 %v4809_v36, %v4808_v51  ;;  %v11135_v58 = vpack.c.bf16 %v4811_v27, %v4810_v3  ;;  %v11137_v9 = vpack.c.bf16 %v4813_v20, %v4812_v5  ;;  %v11239_v15 = vld [vmem:[%s11924_s8 + $0x6] sm:$0x3] }
 0x929   : > { %v11139_v56 = vpack.c.bf16 %v4815_v63, %v4814_v35  ;;  %v11141_v39 = vpack.c.bf16 %v4817_v59, %v4816_v2  ;;  %v11143_v47 = vpack.c.bf16 %v4819_v37, %v4818_v46  ;;  %v11145_v40 = vpack.c.bf16 %v4821_v57, %v4820_v26  ;;  %8735 = vmatmul.mubr.msk.bf16.vlgmr.msra.gmra.mrb[76].mxu0 %vm3019_vm3, %v11123_v4 }
 0x92a   : > { %v11152_v38 = vpack.c.bf16 %v4823_v18, %v4822_v43  ;;  %v11154_v13 = vpack.c.bf16 %v4825_v10, %v4824_v61  ;;  %v11156_v1 = vpack.c.bf16 %v4827_v17, %v4826_v30  ;;  %v11158_v23 = vpack.c.bf16 %v4829_v60, %v4828_v33  ;;  %8738 = vmatprep.mubr.msk.bf16.mxu0 %vm3019_vm3, %v11125_v48 }
 0x92b   : > { %8767 = vmatpush3.bf16.msra.mxu0 %v11010_v54  ;;  %v4848_v24 = vrot.slane %v11965_v62, 7  ;;  %v4853_v42 = vshrl.u32 %v11123_v4, 16  ;;  %v4860_v44 = vshrl.u32 %v11125_v48, 16  ;;  %v4856_v45 = vshll.u32 %v11123_v4, 16 }
 0x92c   : > { %9655 = vmatprep.subr.msk.bf16.mxu0 %vm1274_vm1, %v7545_v6  ;;  %v11933_v54 = vshll.u32 %v11158_v23, 16  ;;  %v11934_v19 = vshrl.u32 %v11158_v23, 16  ;;  %v4863_v53 = vshll.u32 %v11125_v48, 16  ;;  %v4867_v21 = vshrl.u32 %v11127_v31, 16 }
 0x92d   : > { %v11211_v7 = vsel %vm11205_vm10, 0, %v4848_v24  ;;  %v4855_v50 = vrot.slane %v4853_v42, 7  ;;  %v4862_v22 = vrot.slane %v4860_v44, 7  ;;  %v4874_v11 = vshrl.u32 %v11129_v52, 16 }
 0x92e   : > { %v6126_v8 = vrot.slane %v11933_v54, 1  ;;  %v5521_v55 = vsel %vm1274_vm1, %v7545_v6, 0  ;;  %v4869_v49 = vrot.slane %v4867_v21, 7  ;;  %v4870_v3 = vshll.u32 %v11127_v31, 16 }
 0x92f   : > { %v4858_v29 = vor.u32 %v4856_v45, %v4855_v50  ;;  %v4865_v16 = vor.u32 %v4863_v53, %v4862_v22  ;;  %v4876_v36 = vrot.slane %v4874_v11, 7  ;;  %v4877_v27 = vshll.u32 %v11129_v52, 16 }
 0x930   : > { %v6127_v41 = vor.u32 %v6126_v8, %v11934_v19  ;;  %v4872_v5 = vor.u32 %v4870_v3, %v4869_v49  ;;  %v4881_v20 = vshrl.u32 %v11131_v12, 16  ;;  %v4888_v63 = vshrl.u32 %v11133_v28, 16 }
 0x931   : > { %8739 = vmatmul.mubr.msk.bf16.gmra.mrb[80].mxu0 %vm3019_vm3, %v11127_v31  ;;  %v11232_v0 = vsel %vm11205_vm10, 0, %v4858_v29  ;;  %v11245_v51 = vsel %vm11205_vm10, 0, %v4865_v16  ;;  %v4879_v35 = vor.u32 %v4877_v27, %v4876_v36  ;;  %v4884_v26 = vshll.u32 %v11131_v12, 16 }
 0x932   : > { %8742 = vmatprep.mubr.msk.bf16.mxu0 %vm3019_vm3, %v11129_v52  ;;  %v11192_v32 = vsel %vm11184_vm7, %v6127_v41, 0  ;;  %v11263_v2 = vsel %vm11205_vm10, 0, %v4872_v5  ;;  %v4883_v59 = vrot.slane %v4881_v20, 7  ;;  %v4890_v37 = vrot.slane %v4888_v63, 7 }
 0x933   : > { %v11271_v46 = vsel %vm11205_vm10, 0, %v4879_v35  ;;  %v4891_v57 = vshll.u32 %v11133_v28, 16  ;;  %v4895_v18 = vshrl.u32 %v11135_v58, 16  ;;  %v4902_v10 = vshrl.u32 %v11137_v9, 16 }
 0x934   : > { %v4886_v43 = vor.u32 %v4884_v26, %v4883_v59  ;;  %v4898_v6 = vshll.u32 %v11135_v58, 16  ;;  %v4905_v8 = vshll.u32 %v11137_v9, 16  ;;  %v4909_v24 = vshrl.u32 %v11139_v56, 16 }
 0x935   : > { %v4893_v61 = vor.u32 %v4891_v57, %v4890_v37  ;;  %v4897_v17 = vrot.slane %v4895_v18, 7  ;;  %v4904_v60 = vrot.slane %v4902_v10, 7  ;;  %v11941_v22 = vshrl.u32 %v11141_v39, 16 }
 0x936   : > { %v11287_v30 = vsel %vm11205_vm10, 0, %v4886_v43  ;;  %v4911_v16 = vrot.slane %v4909_v24, 7  ;;  %v4912_v36 = vshll.u32 %v11139_v56, 16  ;;  %v4919_v5 = vshll.u32 %v11141_v39, 16 }
 0x937   : > { %v11295_v33 = vsel %vm11205_vm10, 0, %v4893_v61  ;;  %v4900_v41 = vor.u32 %v4898_v6, %v4897_v17  ;;  %v4907_v50 = vor.u32 %v4905_v8, %v4904_v60  ;;  %v4918_v49 = vrot.slane %v11941_v22, 7 }
 0x938   : > { %v4914_v35 = vor.u32 %v4912_v36, %v4911_v16  ;;  %v11936_v59 = vshrl.u32 %v11143_v47, 16  ;;  %v11935_v43 = vshrl.u32 %v11145_v40, 16  ;;  %v11938_v16 = vshll.u32 %v11145_v40, 16 }
 0x939   : > { %8743 = vmatmul.mubr.msk.bf16.gmra.mrb[84].mxu0 %vm3019_vm3, %v11131_v12  ;;  %v11311_v29 = vsel %vm11205_vm10, 0, %v4900_v41  ;;  %v4921_v37 = vor.u32 %v4919_v5, %v4918_v49  ;;  %v11982_v34 = vshrl.u32 %v11158_v23, 16 }
 0x93a   : > { %8746 = vmatprep.mubr.msk.bf16.mxu0 %vm3019_vm3, %v11133_v28  ;;  %v11335_v61 = vsel %vm11205_vm10, 0, %v4914_v35  ;;  %v4925_v17 = vrot.slane %v11936_v59, 7  ;;  %v4932_v41 = vrot.slane %v11935_v43, 7  ;;  %v11937_v35 = vshrl.u32 %v11152_v38, 16 }
 0x93b   : > { %v11343_v60 = vsel %vm11205_vm10, 0, %v4921_v37  ;;  %v11940_v37 = vshrl.u32 %v11154_v13, 16 }
 0x93c   : > { %v4935_v54 = vor.u32 %v11938_v16, %v4932_v41  ;;  %v4939_v43 = vrot.slane %v11937_v35, 7  ;;  %v11944_v41 = vshll.u32 %v11152_v38, 16  ;;  %v11942_v16 = vshrl.u32 %v11156_v1, 16 }
 0x93d   : > { %v4946_v59 = vrot.slane %v11940_v37, 7 }
 0x93e   : > { %v4942_v35 = vor.u32 %v11944_v41, %v4939_v43  ;;  %v4953_v37 = vrot.slane %v11942_v16, 7  ;;  %v11945_v43 = vshll.u32 %v11156_v1, 16  ;;  %v5407_v41 = vrot.slane %v4863_v53, 1  ;;  %v7579_v53 = vld [vmem:[%s11924_s8 + $0x8] sm:$0x3] }
 0x941   : > { %8747 = vmatmul.mubr.msk.bf16.gmra.mrb[88].mxu0 %vm3019_vm3, %v11135_v58 }
 0x942   : > { %8750 = vmatprep.mubr.msk.bf16.mxu0 %vm3019_vm3, %v11137_v9 }
 0x949   : > { %8751 = vmatmul.mubr.msk.bf16.gmra.mrb[92].mxu0 %vm3019_vm3, %v11139_v56 }
 0x94a   : > { %8754 = vmatprep.mubr.msk.bf16.mxu0 %vm3019_vm3, %v11141_v39 }
 0x951   : > { %8755 = vmatmul.mubr.msk.bf16.gmra.mrb[96].mxu0 %vm3019_vm3, %v11143_v47 }
 0x952   : > { %8758 = vmatprep.mubr.msk.bf16.mxu0 %vm3019_vm3, %v11145_v40 }
 0x959   : > { %8759 = vmatmul.mubr.msk.bf16.gmra.mrb[100].mxu0 %vm3019_vm3, %v11152_v38 }
 0x95a   : > { %8762 = vmatprep.mubr.msk.bf16.mxu0 %vm3019_vm3, %v11154_v13 }
 0x961   : > { %8763 = vmatmul.mubr.msk.bf16.gmra.mrb[104].mxu0 %vm3019_vm3, %v11156_v1 }
 0x962   : > { %8768 = vmatprep.mubr.msk.bf16.mxu0 %vm3019_vm3, %v11211_v7 }
 0x969   : > { %8769 = vmatmul.mubr.msk.bf16.vlgmr.msra.gmra.mrb[76].mxu0 %vm3019_vm3, %v11232_v0 }
 0x96a   : > { %8772 = vmatprep.mubr.msk.bf16.mxu0 %vm3019_vm3, %v11245_v51  ;;  %8801 = vmatpush3.bf16.msra.mxu0 %v5521_v55  ;;  %v11319_v55 = vsel %vm11205_vm10, 0, %v4907_v50  ;;  %v11939_v50 = vshll.u32 %v11143_v47, 16 }
 0x96b   : > { %9656 = vmatprep.subr.msk.bf16.mxu0 %vm1274_vm1, %v11239_v15 }
 0x96c   : > { %v4928_v49 = vor.u32 %v11939_v50, %v4925_v17  ;;  %v11367_v17 = vsel %vm11205_vm10, 0, %v4935_v54  ;;  %v11382_v54 = vsel %vm11205_vm10, 0, %v4942_v35  ;;  %v4956_v35 = vor.u32 %v11945_v43, %v4953_v37 }
 0x96d   : > { %v5409_v43 = vrot.slane %v4870_v3, 1 }
 0x96e   : > { %v11359_v19 = vsel %vm11205_vm10, 0, %v4928_v49  ;;  %v11943_v49 = vshll.u32 %v11154_v13, 16 }
 0x970   : > { %v4949_v50 = vor.u32 %v11943_v49, %v4946_v59  ;;  %v5403_v59 = vrot.slane %v11965_v62, 1  ;;  %v11404_v49 = vsel %vm11205_vm10, 0, %v4956_v35  ;;  %v5731_v35 = vsel %vm1274_vm1, %v11239_v15, 0 }
 0x971   : > { %8773 = vmatmul.mubr.msk.bf16.gmra.mrb[80].mxu0 %vm3019_vm3, %v11263_v2  ;;  %v5410_v15 = vor.u32 %v5409_v43, %v4867_v21  ;;  %v5415_v21 = vrot.slane %v4891_v57, 1 }
 0x972   : > { %8776 = vmatprep.mubr.msk.bf16.mxu0 %vm3019_vm3, %v11271_v46  ;;  %v11390_v22 = vsel %vm11205_vm10, 0, %v4949_v50  ;;  %v11400_v16 = vsel %vm11184_vm7, %v5403_v59, 0  ;;  %v5405_v50 = vrot.slane %v4856_v45, 1  ;;  %v5408_v59 = vor.u32 %v5407_v41, %v4860_v44 }
 0x973   : > { %v5411_v44 = vrot.slane %v4877_v27, 1  ;;  %v11446_v41 = vsel %vm11184_vm7, %v5410_v15, 0  ;;  %v5416_v43 = vor.u32 %v5415_v21, %v4888_v63  ;;  %v11973_v21 = vshll.u32 %v11145_v40, 16 }
 0x974   : > { %v5406_v37 = vor.u32 %v5405_v50, %v4853_v42  ;;  %v11433_v42 = vsel %vm11184_vm7, %v5408_v59, 0  ;;  %v5413_v50 = vrot.slane %v4884_v26, 1 }
 0x975   : > { %v5412_v3 = vor.u32 %v5411_v44, %v4874_v11  ;;  %v11474_v57 = vsel %vm11184_vm7, %v5416_v43, 0  ;;  %v11971_v44 = vshrl.u32 %v11141_v39, 16 }
 0x976   : > { %v11422_v45 = vsel %vm11184_vm7, %v5406_v37, 0  ;;  %v5414_v11 = vor.u32 %v5413_v50, %v4881_v20  ;;  %v5417_v37 = vrot.slane %v4898_v6, 1  ;;  %v5419_v20 = vrot.slane %v4905_v8, 1 }
 0x977   : > { %v11454_v27 = vsel %vm11184_vm7, %v5412_v3, 0  ;;  %v11972_v3 = vshll.u32 %v11143_v47, 16 }
 0x978   : > { %v11466_v26 = vsel %vm11184_vm7, %v5414_v11, 0  ;;  %v5418_v63 = vor.u32 %v5417_v37, %v4895_v18  ;;  %v5420_v59 = vor.u32 %v5419_v20, %v4902_v10  ;;  %v5423_v18 = vrot.slane %v4919_v5, 1 }
 0x979   : > { %8777 = vmatmul.mubr.msk.bf16.gmra.mrb[84].mxu0 %vm3019_vm3, %v11287_v30  ;;  %v5425_v50 = vrot.slane %v11972_v3, 1  ;;  %v11974_v11 = vshrl.u32 %v11143_v47, 16  ;;  %v11975_v37 = vshrl.u32 %v11145_v40, 16 }
 0x97a   : > { %8780 = vmatprep.mubr.msk.bf16.mxu0 %vm3019_vm3, %v11295_v33  ;;  %v11486_v6 = vsel %vm11184_vm7, %v5418_v63, 0  ;;  %v11494_v8 = vsel %vm11184_vm7, %v5420_v59, 0  ;;  %v5424_v15 = vor.u32 %v5423_v18, %v11971_v44  ;;  %v11976_v59 = vshll.u32 %v11152_v38, 16 }
 0x97b   : > { %v5426_v43 = vor.u32 %v5425_v50, %v11974_v11  ;;  %v11979_v50 = vshrl.u32 %v11154_v13, 16  ;;  %v11980_v11 = vshll.u32 %v11156_v1, 16 }
 0x97c   : > { %v11514_v5 = vsel %vm11184_vm7, %v5424_v15, 0  ;;  %v11978_v15 = vshrl.u32 %v11152_v38, 16 }
 0x97d   : > { %v11526_v63 = vsel %vm11184_vm7, %v5426_v43, 0  ;;  %v5433_v43 = vrot.slane %v11980_v11, 1  ;;  %v7646_v11 = vld [vmem:[%s11924_s8 + $0x10] sm:$0x3] }
 0x981   : > { %8781 = vmatmul.mubr.msk.bf16.gmra.mrb[88].mxu0 %vm3019_vm3, %v11311_v29 }
 0x982   : > { %8784 = vmatprep.mubr.msk.bf16.mxu0 %vm3019_vm3, %v11319_v55 }
 0x989   : > { %8785 = vmatmul.mubr.msk.bf16.gmra.mrb[92].mxu0 %vm3019_vm3, %v11335_v61 }
 0x98a   : > { %8788 = vmatprep.mubr.msk.bf16.mxu0 %vm3019_vm3, %v11343_v60 }
 0x991   : > { %8789 = vmatmul.mubr.msk.bf16.gmra.mrb[96].mxu0 %vm3019_vm3, %v11359_v19 }
 0x992   : > { %8792 = vmatprep.mubr.msk.bf16.mxu0 %vm3019_vm3, %v11367_v17 }
 0x999   : > { %8793 = vmatmul.mubr.msk.bf16.gmra.mrb[100].mxu0 %vm3019_vm3, %v11382_v54 }
 0x99a   : > { %8796 = vmatprep.mubr.msk.bf16.mxu0 %vm3019_vm3, %v11390_v22 }
 0x9a1   : > { %8797 = vmatmul.mubr.msk.bf16.gmra.mrb[104].mxu0 %vm3019_vm3, %v11404_v49 }
 0x9a2   : > { %8802 = vmatprep.mubr.msk.bf16.mxu0 %vm3019_vm3, %v11400_v16 }
 0x9a9   : > { %8803 = vmatmul.mubr.msk.bf16.vlgmr.msra.gmra.mrb[76].mxu0 %vm3019_vm3, %v11422_v45 }
 0x9aa   : > { %8806 = vmatprep.mubr.msk.bf16.mxu0 %vm3019_vm3, %v11433_v42  ;;  %8835 = vmatpush3.bf16.msra.mxu0 %v5731_v35  ;;  %v5421_v35 = vrot.slane %v4912_v36, 1 }
 0x9ab   : > { %9657 = vmatprep.subr.msk.bf16.mxu0 %vm1274_vm1, %v7579_v53 }
 0x9ac   : > { %v5422_v10 = vor.u32 %v5421_v35, %v4909_v24  ;;  %v5427_v24 = vrot.slane %v11973_v21, 1  ;;  %v5429_v35 = vrot.slane %v11976_v59, 1 }
 0x9ae   : > { %v11506_v36 = vsel %vm11184_vm7, %v5422_v10, 0  ;;  %v5428_v20 = vor.u32 %v5427_v24, %v11975_v37  ;;  %v11977_v10 = vshll.u32 %v11154_v13, 16  ;;  %v5430_v3 = vor.u32 %v5429_v35, %v11978_v15 }
 0x9b0   : > { %v11534_v18 = vsel %vm11184_vm7, %v5428_v20, 0  ;;  %v5431_v44 = vrot.slane %v11977_v10, 1  ;;  %v11546_v24 = vsel %vm11184_vm7, %v5430_v3, 0  ;;  %v11981_v20 = vshrl.u32 %v11156_v1, 16 }
 0x9b1   : > { %8807 = vmatmul.mubr.msk.bf16.gmra.mrb[80].mxu0 %vm3019_vm3, %v11446_v41  ;;  %v5931_v10 = vsel %vm1274_vm1, %v7579_v53, 0  ;;  %v11983_v53 = vshll.u32 %v11158_v23, 16 }
 0x9b2   : > { %8810 = vmatprep.mubr.msk.bf16.mxu0 %vm3019_vm3, %v11454_v27  ;;  %v5432_v21 = vor.u32 %v5431_v44, %v11979_v50  ;;  %v5434_v59 = vor.u32 %v5433_v43, %v11981_v20  ;;  %v7596_v44 = vld [vmem:[%s11924_s8 + $0xa] sm:$0x3] }
 0x9b3   : > { %v6136_v50 = vsel %vm1274_vm1, %v7596_v44, 0 }
 0x9b4   : > { %v11554_v37 = vsel %vm11184_vm7, %v5432_v21, 0  ;;  %v11562_v35 = vsel %vm11184_vm7, %v5434_v59, 0  ;;  %v7613_v21 = vld [vmem:[%s11924_s8 + $0xc] sm:$0x3] }
 0x9b9   : > { %8811 = vmatmul.mubr.msk.bf16.gmra.mrb[84].mxu0 %vm3019_vm3, %v11466_v26 }
 0x9ba   : > { %8814 = vmatprep.mubr.msk.bf16.mxu0 %vm3019_vm3, %v11474_v57 }
 0x9c1   : > { %8815 = vmatmul.mubr.msk.bf16.gmra.mrb[88].mxu0 %vm3019_vm3, %v11486_v6 }
 0x9c2   : > { %8818 = vmatprep.mubr.msk.bf16.mxu0 %vm3019_vm3, %v11494_v8 }
 0x9c9   : > { %8819 = vmatmul.mubr.msk.bf16.gmra.mrb[92].mxu0 %vm3019_vm3, %v11506_v36 }
 0x9ca   : > { %8822 = vmatprep.mubr.msk.bf16.mxu0 %vm3019_vm3, %v11514_v5 }
 0x9d1   : > { %8823 = vmatmul.mubr.msk.bf16.gmra.mrb[96].mxu0 %vm3019_vm3, %v11526_v63 }
 0x9d2   : > { %8826 = vmatprep.mubr.msk.bf16.mxu0 %vm3019_vm3, %v11534_v18 }
 0x9d9   : > { %8827 = vmatmul.mubr.msk.bf16.gmra.mrb[100].mxu0 %vm3019_vm3, %v11546_v24 }
 0x9da   : > { %8830 = vmatprep.mubr.msk.bf16.mxu0 %vm3019_vm3, %v11554_v37 }
 0x9e1   : > { %8831 = vmatmul.mubr.msk.bf16.gmra.mrb[104].mxu0 %vm3019_vm3, %v11562_v35 }
 0x9e2   : > { %8836 = vmatprep.mubr.msk.bf16.mxu0 %vm3019_vm3, %v11232_v0  ;;  %v5719_v0 = vrot.slane %v11982_v34, 7 }
 0x9e4   : > { %v5722_v15 = vor.u32 %v11983_v53, %v5719_v0 }
 0x9e6   : > { %v5724_v3 = vsel %vm11205_vm10, 0, %v5722_v15 }
 0x9e9   : > { %8837 = vmatmul.mubr.msk.bf16.vlgmr.msra.gmra.mrb[76].mxu0 %vm3019_vm3, %v11245_v51 }
 0x9ea   : > { %8840 = vmatprep.mubr.msk.bf16.mxu0 %vm3019_vm3, %v11263_v2  ;;  %8869 = vmatpush3.bf16.msra.mxu0 %v5931_v10 }
 0x9eb   : > { %9658 = vmatprep.subr.msk.bf16.mxu0 %vm1274_vm1, %v7596_v44 }
 0x9f1   : > { %8841 = vmatmul.mubr.msk.bf16.gmra.mrb[80].mxu0 %vm3019_vm3, %v11271_v46 }
 0x9f2   : > { %8844 = vmatprep.mubr.msk.bf16.mxu0 %vm3019_vm3, %v11287_v30 }
 0x9f9   : > { %8845 = vmatmul.mubr.msk.bf16.gmra.mrb[84].mxu0 %vm3019_vm3, %v11295_v33 }
 0x9fa   : > { %8848 = vmatprep.mubr.msk.bf16.mxu0 %vm3019_vm3, %v11311_v29 }
 0xa01   : > { %8849 = vmatmul.mubr.msk.bf16.gmra.mrb[88].mxu0 %vm3019_vm3, %v11319_v55 }
 0xa02   : > { %8852 = vmatprep.mubr.msk.bf16.mxu0 %vm3019_vm3, %v11335_v61 }
 0xa09   : > { %8853 = vmatmul.mubr.msk.bf16.gmra.mrb[92].mxu0 %vm3019_vm3, %v11343_v60 }
 0xa0a   : > { %8856 = vmatprep.mubr.msk.bf16.mxu0 %vm3019_vm3, %v11359_v19 }
 0xa11   : > { %8857 = vmatmul.mubr.msk.bf16.gmra.mrb[96].mxu0 %vm3019_vm3, %v11367_v17 }
 0xa12   : > { %8860 = vmatprep.mubr.msk.bf16.mxu0 %vm3019_vm3, %v11382_v54 }
 0xa19   : > { %8861 = vmatmul.mubr.msk.bf16.gmra.mrb[100].mxu0 %vm3019_vm3, %v11390_v22 }
 0xa1a   : > { %8864 = vmatprep.mubr.msk.bf16.mxu0 %vm3019_vm3, %v11404_v49 }
 0xa21   : > { %8865 = vmatmul.mubr.msk.bf16.gmra.mrb[104].mxu0 %vm3019_vm3, %v5724_v3 }
 0xa22   : > { %8870 = vmatprep.mubr.msk.bf16.mxu0 %vm3019_vm3, %v11123_v4  ;;  %v6334_v4 = vsel %vm1274_vm1, %v7613_v21, 0 }
 0xa29   : > { %8871 = vmatmul.mubr.msk.bf16.vlgmr.msra.gmra.mrb[76].mxu0 %vm3019_vm3, %v11125_v48 }
 0xa2a   : > { %8874 = vmatprep.mubr.msk.bf16.mxu0 %vm3019_vm3, %v11127_v31  ;;  %8903 = vmatpush3.bf16.msra.mxu0 %v6136_v50 }
 0xa2b   : > { %9659 = vmatprep.subr.msk.bf16.mxu0 %vm1274_vm1, %v7613_v21 }
 0xa31   : > { %8875 = vmatmul.mubr.msk.bf16.gmra.mrb[80].mxu0 %vm3019_vm3, %v11129_v52 }
 0xa32   : > { %8878 = vmatprep.mubr.msk.bf16.mxu0 %vm3019_vm3, %v11131_v12 }
 0xa39   : > { %8879 = vmatmul.mubr.msk.bf16.gmra.mrb[84].mxu0 %vm3019_vm3, %v11133_v28 }
 0xa3a   : > { %8882 = vmatprep.mubr.msk.bf16.mxu0 %vm3019_vm3, %v11135_v58 }
 0xa41   : > { %8883 = vmatmul.mubr.msk.bf16.gmra.mrb[88].mxu0 %vm3019_vm3, %v11137_v9 }
 0xa42   : > { %8886 = vmatprep.mubr.msk.bf16.mxu0 %vm3019_vm3, %v11139_v56 }
 0xa49   : > { %8887 = vmatmul.mubr.msk.bf16.gmra.mrb[92].mxu0 %vm3019_vm3, %v11141_v39 }
 0xa4a   : > { %8890 = vmatprep.mubr.msk.bf16.mxu0 %vm3019_vm3, %v11143_v47 }
 0xa51   : > { %8891 = vmatmul.mubr.msk.bf16.gmra.mrb[96].mxu0 %vm3019_vm3, %v11145_v40 }
 0xa52   : > { %8894 = vmatprep.mubr.msk.bf16.mxu0 %vm3019_vm3, %v11152_v38 }
 0xa59   : > { %8895 = vmatmul.mubr.msk.bf16.gmra.mrb[100].mxu0 %vm3019_vm3, %v11154_v13 }
 0xa5a   : > { %8898 = vmatprep.mubr.msk.bf16.mxu0 %vm3019_vm3, %v11156_v1 }
 0xa61   : > { %8899 = vmatmul.mubr.msk.bf16.gmra.mrb[104].mxu0 %vm3019_vm3, %v11158_v23 }
 0xa62   : > { %8904 = vmatprep.mubr.msk.bf16.mxu0 %vm3019_vm3, %v11422_v45  ;;  %v6532_v45 = vsel %vm1274_vm1, %v7630_v25, 0 }
 0xa69   : > { %8905 = vmatmul.mubr.msk.bf16.vlgmr.msra.gmra.mrb[76].mxu0 %vm3019_vm3, %v11433_v42 }
 0xa6a   : > { %8908 = vmatprep.mubr.msk.bf16.mxu0 %vm3019_vm3, %v11446_v41  ;;  %8937 = vmatpush3.bf16.msra.mxu0 %v6334_v4 }
 0xa6b   : > { %9660 = vmatprep.subr.msk.bf16.mxu0 %vm1274_vm1, %v7630_v25 }
 0xa71   : > { %8909 = vmatmul.mubr.msk.bf16.gmra.mrb[80].mxu0 %vm3019_vm3, %v11454_v27 }
 0xa72   : > { %8912 = vmatprep.mubr.msk.bf16.mxu0 %vm3019_vm3, %v11466_v26 }
 0xa79   : > { %8913 = vmatmul.mubr.msk.bf16.gmra.mrb[84].mxu0 %vm3019_vm3, %v11474_v57 }
 0xa7a   : > { %8916 = vmatprep.mubr.msk.bf16.mxu0 %vm3019_vm3, %v11486_v6 }
 0xa81   : > { %8917 = vmatmul.mubr.msk.bf16.gmra.mrb[88].mxu0 %vm3019_vm3, %v11494_v8 }
 0xa82   : > { %8920 = vmatprep.mubr.msk.bf16.mxu0 %vm3019_vm3, %v11506_v36 }
 0xa89   : > { %8921 = vmatmul.mubr.msk.bf16.gmra.mrb[92].mxu0 %vm3019_vm3, %v11514_v5 }
 0xa8a   : > { %8924 = vmatprep.mubr.msk.bf16.mxu0 %vm3019_vm3, %v11526_v63 }
 0xa91   : > { %8925 = vmatmul.mubr.msk.bf16.gmra.mrb[96].mxu0 %vm3019_vm3, %v11534_v18 }
 0xa92   : > { %8928 = vmatprep.mubr.msk.bf16.mxu0 %vm3019_vm3, %v11546_v24 }
 0xa99   : > { %8929 = vmatmul.mubr.msk.bf16.gmra.mrb[100].mxu0 %vm3019_vm3, %v11554_v37 }
 0xa9a   : > { %8932 = vmatprep.mubr.msk.bf16.mxu0 %vm3019_vm3, %v11562_v35 }
 0xaa1   : > { %8933 = vmatmul.mubr.msk.bf16.gmra.mrb[104].mxu0 %vm3019_vm3, %v11192_v32 }
 0xaa2   : > { %8938 = vmatprep.mubr.msk.bf16.mxu0 %vm3019_vm3, %v11245_v51 }
 0xaa9   : > { %8939 = vmatmul.mubr.msk.bf16.vlgmr.msra.gmra.mrb[76].mxu0 %vm3019_vm3, %v11263_v2 }
 0xaaa   : > { %8942 = vmatprep.mubr.msk.bf16.mxu0 %vm3019_vm3, %v11271_v46  ;;  %8971 = vmatpush3.bf16.msra.mxu0 %v6532_v45 }
 0xaab   : > { %9661 = vmatprep.subr.msk.bf16.mxu0 %vm1274_vm1, %v7646_v11 }
 0xab1   : > { %8943 = vmatmul.mubr.msk.bf16.gmra.mrb[80].mxu0 %vm3019_vm3, %v11287_v30 }
 0xab2   : > { %8946 = vmatprep.mubr.msk.bf16.mxu0 %vm3019_vm3, %v11295_v33 }
 0xab9   : > { %8947 = vmatmul.mubr.msk.bf16.gmra.mrb[84].mxu0 %vm3019_vm3, %v11311_v29 }
 0xaba   : > { %8950 = vmatprep.mubr.msk.bf16.mxu0 %vm3019_vm3, %v11319_v55 }
 0xac1   : > { %8951 = vmatmul.mubr.msk.bf16.gmra.mrb[88].mxu0 %vm3019_vm3, %v11335_v61 }
 0xac2   : > { %8954 = vmatprep.mubr.msk.bf16.mxu0 %vm3019_vm3, %v11343_v60 }
 0xac9   : > { %8955 = vmatmul.mubr.msk.bf16.gmra.mrb[92].mxu0 %vm3019_vm3, %v11359_v19  ;;  %v6730_v19 = vsel %vm1274_vm1, %v7646_v11, 0 }
 0xaca   : > { %8958 = vmatprep.mubr.msk.bf16.mxu0 %vm3019_vm3, %v11367_v17 }
 0xad1   : > { %8959 = vmatmul.mubr.msk.bf16.gmra.mrb[96].mxu0 %vm3019_vm3, %v11382_v54 }
 0xad2   : > { %8962 = vmatprep.mubr.msk.bf16.mxu0 %vm3019_vm3, %v11390_v22 }
 0xad9   : > { %8963 = vmatmul.mubr.msk.bf16.gmra.mrb[100].mxu0 %vm3019_vm3, %v11404_v49 }
 0xada   : > { %8966 = vmatprep.mubr.msk.bf16.mxu0 %vm3019_vm3, %v5724_v3 }
 0xae1   : > { %8967 = vmatmul.mubr.msk.bf16.gmra.mrb[104].mxu0 %vm3019_vm3, %v11211_v7 }
 0xae2   : > { %8972 = vmatprep.mubr.msk.bf16.mxu0 %vm3019_vm3, %v11125_v48  ;;  %v7046_v48 = vld [vmem:[%s11926_s10] sm:$0x1f] }
 0xae3   : > { %7049 = vperm.xlu0 %9682, %v7046_v48  }
 0xae9   : > { %8973 = vmatmul.mubr.msk.bf16.vlgmr.msra.gmra.mrb[76].mxu0 %vm3019_vm3, %v11127_v31  ;;  %v6927_v31 = vsub.s32 6, %v9977_v14 }
 0xaea   : > { %8976 = vmatprep.mubr.msk.bf16.mxu0 %vm3019_vm3, %v11129_v52  ;;  %9005 = vmatpush3.bf16.msra.mxu0 %v6730_v19  ;;  %v9711_v52 = vld [vmem:[%s11927_s11] sm:$0x7f] }
 0xaf1   : > { %8977 = vmatmul.mubr.msk.bf16.gmra.mrb[80].mxu0 %vm3019_vm3, %v11131_v12  ;;  %v11796_v12 = vrot.slane %v9711_v52, %v6927_v31 }
 0xaf2   : > { %8980 = vmatprep.mubr.msk.bf16.mxu0 %vm3019_vm3, %v11133_v28  ;;  %v9712_v28 = vld [vmem:[%s11928_s12] sm:$0x7f] }
 0xaf9   : > { %8981 = vmatmul.mubr.msk.bf16.gmra.mrb[84].mxu0 %vm3019_vm3, %v11135_v58  ;;  %v11801_v58 = vrot.slane %v9712_v28, %v6927_v31 }
 0xafa   : > { %8984 = vmatprep.mubr.msk.bf16.mxu0 %vm3019_vm3, %v11137_v9 }
 0xb01   : > { %8985 = vmatmul.mubr.msk.bf16.gmra.mrb[88].mxu0 %vm3019_vm3, %v11139_v56 }
 0xb02   : > { %8988 = vmatprep.mubr.msk.bf16.mxu0 %vm3019_vm3, %v11141_v39 }
 0xb09   : > { %8989 = vmatmul.mubr.msk.bf16.gmra.mrb[92].mxu0 %vm3019_vm3, %v11143_v47 }
 0xb0a   : > { %8992 = vmatprep.mubr.msk.bf16.mxu0 %vm3019_vm3, %v11145_v40 }
 0xb11   : > { %8993 = vmatmul.mubr.msk.bf16.gmra.mrb[96].mxu0 %vm3019_vm3, %v11152_v38 }
 0xb12   : > { %8996 = vmatprep.mubr.msk.bf16.mxu0 %vm3019_vm3, %v11154_v13 }
 0xb19   : > { %8997 = vmatmul.mubr.msk.bf16.gmra.mrb[100].mxu0 %vm3019_vm3, %v11156_v1 }
 0xb1a   : > { %9000 = vmatprep.mubr.msk.bf16.mxu0 %vm3019_vm3, %v11158_v23 }
 0xb21   : > { %9001 = vmatmul.mubr.bf16.gmra.mrb[104].mxu0 %v11965_v62  ;;  %v11785_v62 = vld [vmem:[%s11925_s9] sm:$0x7] }
 0xb22   : > { %9006 = vmatprep.mubr.msk.bf16.mxu0 %vm3019_vm3, %v11433_v42  ;;  %8148 = vmatprep.mubr.msk.bf16.mxu1 %vm3019_vm3, %v11785_v62 }
 0xb29   : > { %9007 = vmatmul.mubr.msk.bf16.vlgmr.msra.gmra.mrb[76].mxu0 %vm3019_vm3, %v11446_v41 }
 0xb2a   : > { %9010 = vmatprep.mubr.msk.bf16.mxu0 %vm3019_vm3, %v11454_v27 }
 0xb31   : > { %9011 = vmatmul.mubr.msk.bf16.gmra.mrb[80].mxu0 %vm3019_vm3, %v11466_v26 }
 0xb32   : > { %9014 = vmatprep.mubr.msk.bf16.mxu0 %vm3019_vm3, %v11474_v57 }
 0xb39   : > { %9015 = vmatmul.mubr.msk.bf16.gmra.mrb[84].mxu0 %vm3019_vm3, %v11486_v6 }
 0xb3a   : > { %9018 = vmatprep.mubr.msk.bf16.mxu0 %vm3019_vm3, %v11494_v8 }
 0xb41   : > { %9019 = vmatmul.mubr.msk.bf16.gmra.mrb[88].mxu0 %vm3019_vm3, %v11506_v36 }
 0xb42   : > { %9022 = vmatprep.mubr.msk.bf16.mxu0 %vm3019_vm3, %v11514_v5 }
 0xb49   : > { %9023 = vmatmul.mubr.msk.bf16.gmra.mrb[92].mxu0 %vm3019_vm3, %v11526_v63 }
 0xb4a   : > { %9026 = vmatprep.mubr.msk.bf16.mxu0 %vm3019_vm3, %v11534_v18 }
 0xb51   : > { %9027 = vmatmul.mubr.msk.bf16.gmra.mrb[96].mxu0 %vm3019_vm3, %v11546_v24 }
 0xb52   : > { %9030 = vmatprep.mubr.msk.bf16.mxu0 %vm3019_vm3, %v11554_v37 }
 0xb59   : > { %9031 = vmatmul.mubr.msk.bf16.gmra.mrb[100].mxu0 %vm3019_vm3, %v11562_v35 }
 0xb5a   : > { %9034 = vmatprep.mubr.msk.bf16.mxu0 %vm3019_vm3, %v11192_v32 }
 0xb61   : > { %9035 = vmatmul.mubr.msk.bf16.gmra.mrb[104].mxu0 %vm3019_vm3, %v11400_v16 }
 0xbfc   : > { %v9008_v9 = vpop.f32.mrb[76].mxu0 }
 0xbfd   : > { %v6931_v56 = vmul.f32 %v9008_v9, %v11796_v12  ;;  %v6766_v39 = vpop.f32.mrb[77].mxu0 }
 0xbfe   : > { %v6929_v47 = vmul.f32 %v11796_v12, %v6766_v39  ;;  %v9009_v40 = vpop.f32.mrb[78].mxu0 }
 0xbff   : > { %v6967_v14 = vadd.f32 %v11801_v58, %v6931_v56  ;;  %v6932_v38 = vmul.f32 %v9009_v40, %v11796_v12  ;;  %v6769_v13 = vpop.f32.mrb[79].mxu0 }
 0xc00   : > { %v6965_v1 = vadd.f32 %v11801_v58, %v6929_v47  ;;  %v6930_v23 = vmul.f32 %v11796_v12, %v6769_v13 }
 0xc01   : > { %v6968_v32 = vadd.f32 %v11801_v58, %v6932_v38  ;;  %v6999_v51 = vmax.f32 %v6967_v14, 0.0 }
 0xc02   : > { %v6966_v7 = vadd.f32 %v11801_v58, %v6930_v23  ;;  %v6997_v46 = vmax.f32 %v6965_v1, 0.0 }
 0xc03   : > { %v7000_v2 = vmax.f32 %v6968_v32, 0.0 }
 0xc04   : > { %v6998_v30 = vmax.f32 %v6966_v7, 0.0  ;;  %v9012_v33 = vpop.f32.mrb[80].mxu0 }
 0xc05   : > { %v11811_v22 = vpack.c.bf16 %v7000_v2, %v6999_v51  ;;  %v6935_v29 = vmul.f32 %v9012_v33, %v11796_v12  ;;  %v6782_v55 = vpop.f32.mrb[81].mxu0 }
 0xc06   : > { %v11814_v61 = vpack.c.bf16 %v6998_v30, %v6997_v46  ;;  %v6933_v60 = vmul.f32 %v11796_v12, %v6782_v55  ;;  %v9013_v16 = vpop.f32.mrb[82].mxu0 }
 0xc07   : > { %v6971_v17 = vadd.f32 %v11801_v58, %v6935_v29  ;;  %v6936_v49 = vmul.f32 %v9013_v16, %v11796_v12  ;;  %v6785_v54 = vpop.f32.mrb[83].mxu0 }
 0xc08   : > { %v6969_v42 = vadd.f32 %v11801_v58, %v6933_v60  ;;  %v6934_v41 = vmul.f32 %v11796_v12, %v6785_v54 }
 0xc09   : > { %v6972_v27 = vadd.f32 %v11801_v58, %v6936_v49  ;;  %v7003_v57 = vmax.f32 %v6971_v17, 0.0 }
 0xc0a   : > { %v6970_v26 = vadd.f32 %v11801_v58, %v6934_v41  ;;  %v7001_v8 = vmax.f32 %v6969_v42, 0.0 }
 0xc0b   : > { %v7004_v6 = vmax.f32 %v6972_v27, 0.0 }
 0xc0c   : > { %v7002_v36 = vmax.f32 %v6970_v26, 0.0  ;;  %v9016_v5 = vpop.f32.mrb[84].mxu0 }
 0xc0d   : > { %v11823_v63 = vpack.c.bf16 %v7004_v6, %v7003_v57  ;;  %v6939_v18 = vmul.f32 %v9016_v5, %v11796_v12  ;;  %v6798_v24 = vpop.f32.mrb[85].mxu0 }
 0xc0e   : > { %v11826_v43 = vpack.c.bf16 %v7002_v36, %v7001_v8  ;;  %v6937_v37 = vmul.f32 %v11796_v12, %v6798_v24  ;;  %v9017_v20 = vpop.f32.mrb[86].mxu0 }
 0xc0f   : > { %v6975_v59 = vadd.f32 %v11801_v58, %v6939_v18  ;;  %v6940_v35 = vmul.f32 %v9017_v20, %v11796_v12  ;;  %v6801_v10 = vpop.f32.mrb[87].mxu0 }
 0xc10   : > { %v6973_v44 = vadd.f32 %v11801_v58, %v6937_v37  ;;  %v6938_v34 = vmul.f32 %v11796_v12, %v6801_v10  ;;  %v7056_v10 = vsel %vm3019_vm3, %v11814_v61, 0 }
 0xc11   : > { %v6976_v0 = vadd.f32 %v11801_v58, %v6940_v35  ;;  %v7007_v15 = vmax.f32 %v6975_v59, 0.0 }
 0xc12   : > { %v6974_v53 = vadd.f32 %v11801_v58, %v6938_v34  ;;  %v7005_v50 = vmax.f32 %v6973_v44, 0.0 }
 0xc13   : > { %v7008_v3 = vmax.f32 %v6976_v0, 0.0 }
 0xc14   : > { %v7006_v21 = vmax.f32 %v6974_v53, 0.0  ;;  %v9020_v4 = vpop.f32.mrb[88].mxu0 }
 0xc15   : > { %v11835_v25 = vpack.c.bf16 %v7008_v3, %v7007_v15  ;;  %v6943_v45 = vmul.f32 %v9020_v4, %v11796_v12  ;;  %v6814_v11 = vpop.f32.mrb[89].mxu0 }
 0xc16   : > { %v11838_v19 = vpack.c.bf16 %v7006_v21, %v7005_v50  ;;  %v6941_v48 = vmul.f32 %v11796_v12, %v6814_v11  ;;  %v9021_v31 = vpop.f32.mrb[90].mxu0 }
 0xc17   : > { %v6979_v52 = vadd.f32 %v11801_v58, %v6943_v45  ;;  %v6944_v28 = vmul.f32 %v9021_v31, %v11796_v12  ;;  %v6817_v9 = vpop.f32.mrb[91].mxu0 }
 0xc18   : > { %v6977_v56 = vadd.f32 %v11801_v58, %v6941_v48  ;;  %v6942_v39 = vmul.f32 %v11796_v12, %v6817_v9 }
 0xc19   : > { %v6980_v47 = vadd.f32 %v11801_v58, %v6944_v28  ;;  %v7011_v14 = vmax.f32 %v6979_v52, 0.0 }
 0xc1a   : > { %v6978_v40 = vadd.f32 %v11801_v58, %v6942_v39  ;;  %v7009_v13 = vmax.f32 %v6977_v56, 0.0  ;;  %v7059_v39 = vsel %vm3019_vm3, %v11811_v22, 0 }
 0xc1b   : > { %v7012_v38 = vmax.f32 %v6980_v47, 0.0 }
 0xc1c   : > { %v7010_v1 = vmax.f32 %v6978_v40, 0.0  ;;  %v9024_v23 = vpop.f32.mrb[92].mxu0 }
 0xc1d   : > { %v11847_v32 = vpack.c.bf16 %v7012_v38, %v7011_v14  ;;  %v6947_v7 = vmul.f32 %v9024_v23, %v11796_v12  ;;  %v6830_v51 = vpop.f32.mrb[93].mxu0 }
 0xc1e   : > { %v11850_v2 = vpack.c.bf16 %v7010_v1, %v7009_v13  ;;  %v6945_v46 = vmul.f32 %v11796_v12, %v6830_v51  ;;  %v9025_v30 = vpop.f32.mrb[94].mxu0 }
 0xc1f   : > { %v6983_v33 = vadd.f32 %v11801_v58, %v6947_v7  ;;  %v6948_v29 = vmul.f32 %v9025_v30, %v11796_v12  ;;  %v6833_v55 = vpop.f32.mrb[95].mxu0 }
 0xc20   : > { %v6981_v60 = vadd.f32 %v11801_v58, %v6945_v46  ;;  %v6946_v16 = vmul.f32 %v11796_v12, %v6833_v55 }
 0xc21   : > { %v6984_v17 = vadd.f32 %v11801_v58, %v6948_v29  ;;  %v7015_v54 = vmax.f32 %v6983_v33, 0.0 }
 0xc22   : > { %v6982_v49 = vadd.f32 %v11801_v58, %v6946_v16  ;;  %v7013_v41 = vmax.f32 %v6981_v60, 0.0 }
 0xc23   : > { %v7016_v42 = vmax.f32 %v6984_v17, 0.0 }
 0xc24   : > { %v7014_v27 = vmax.f32 %v6982_v49, 0.0  ;;  %v9028_v26 = vpop.f32.mrb[96].mxu0  ;;  %v7062_v49 = vsel %vm3019_vm3, %v11826_v43, 0  ;;  %v7068_v43 = vsel %vm3019_vm3, %v11838_v19, 0  ;;  %v7050_v19 = vpop.permute.xlu0 %7049 }
 0xc25   : > { %v7039_v57 = vpack.c.bf16 %v7016_v42, %v7015_v54  ;;  %v6951_v6 = vmul.f32 %v9028_v26, %v11796_v12  ;;  %v6846_v8 = vpop.f32.mrb[97].mxu0 }
 0xc26   : > { %v7038_v36 = vpack.c.bf16 %v7014_v27, %v7013_v41  ;;  %v6949_v5 = vmul.f32 %v11796_v12, %v6846_v8  ;;  %v9029_v18 = vpop.f32.mrb[98].mxu0 }
 0xc27   : > { %v6987_v24 = vadd.f32 %v11801_v58, %v6951_v6  ;;  %v6952_v37 = vmul.f32 %v9029_v18, %v11796_v12  ;;  %v6849_v20 = vpop.f32.mrb[99].mxu0 }
 0xc28   : > { %v6985_v59 = vadd.f32 %v11801_v58, %v6949_v5  ;;  %v6950_v35 = vmul.f32 %v11796_v12, %v6849_v20  ;;  %9662 = vmatprep.subr.msk.bf16.mxu1 %vm3019_vm3, %v7038_v36  ;;  %v7074_v36 = vsel %vm3019_vm3, %v11850_v2, 0 }
 0xc29   : > { %v6988_v44 = vadd.f32 %v11801_v58, %v6952_v37  ;;  %8133 = vmatpush3.bf16.xpose.msra.mxu1 %v7056_v10  ;;  %v7019_v0 = vmax.f32 %v6987_v24, 0.0 }
 0xc2a   : > { %v6986_v34 = vadd.f32 %v11801_v58, %v6950_v35  ;;  %9663 = vmatprep.subr.msk.bf16.mxu1 %vm3019_vm3, %v7039_v57  ;;  %v7017_v15 = vmax.f32 %v6985_v59, 0.0 }
 0xc2b   : > { %v7020_v53 = vmax.f32 %v6988_v44, 0.0 }
 0xc2c   : > { %v7018_v3 = vmax.f32 %v6986_v34, 0.0  ;;  %v9032_v50 = vpop.f32.mrb[100].mxu0 }
 0xc2d   : > { %v7041_v21 = vpack.c.bf16 %v7020_v53, %v7019_v0  ;;  %v6955_v4 = vmul.f32 %v9032_v50, %v11796_v12  ;;  %v6862_v45 = vpop.f32.mrb[101].mxu0 }
 0xc2e   : > { %v7040_v11 = vpack.c.bf16 %v7018_v3, %v7017_v15  ;;  %v6953_v48 = vmul.f32 %v11796_v12, %v6862_v45  ;;  %v9033_v61 = vpop.f32.mrb[102].mxu0 }
 0xc2f   : > { %v6991_v31 = vadd.f32 %v11801_v58, %v6955_v4  ;;  %v6956_v52 = vmul.f32 %v9033_v61, %v11796_v12  ;;  %v6865_v28 = vpop.f32.mrb[103].mxu0 }
 0xc30   : > { %v6989_v9 = vadd.f32 %v11801_v58, %v6953_v48  ;;  %v6954_v56 = vmul.f32 %v11796_v12, %v6865_v28 }
 0xc31   : > { %v6992_v47 = vadd.f32 %v11801_v58, %v6956_v52  ;;  %8135 = vmatpush3.bf16.xpose.msra.mxu1 %v7059_v39  ;;  %v7023_v14 = vmax.f32 %v6991_v31, 0.0 }
 0xc32   : > { %v6990_v40 = vadd.f32 %v11801_v58, %v6954_v56  ;;  %9664 = vmatprep.subr.msk.bf16.mxu1 %vm3019_vm3, %v7040_v11  ;;  %v7021_v13 = vmax.f32 %v6989_v9, 0.0 }
 0xc33   : > { %v7024_v38 = vmax.f32 %v6992_v47, 0.0 }
 0xc34   : > { %v7022_v1 = vmax.f32 %v6990_v40, 0.0  ;;  %v9036_v23 = vpop.f32.mrb[104].mxu0 }
 0xc35   : > { %v7043_v7 = vpack.c.bf16 %v7024_v38, %v7023_v14  ;;  %v6959_v51 = vmul.f32 %v9036_v23, %v11796_v12  ;;  %v6878_v46 = vpop.f32.mrb[105].mxu0 }
 0xc36   : > { %v7042_v30 = vpack.c.bf16 %v7022_v1, %v7021_v13  ;;  %v6957_v33 = vmul.f32 %v11796_v12, %v6878_v46  ;;  %v9037_v22 = vpop.f32.mrb[106].mxu0 }
 0xc37   : > { %v6995_v29 = vadd.f32 %v11801_v58, %v6959_v51  ;;  %v6960_v55 = vmul.f32 %v9037_v22, %v11796_v12  ;;  %v6881_v60 = vpop.f32.mrb[107].mxu0 }
 0xc38   : > { %v6993_v16 = vadd.f32 %v11801_v58, %v6957_v33  ;;  %v6958_v17 = vmul.f32 %v11796_v12, %v6881_v60  ;;  %v7065_v12 = vsel %vm3019_vm3, %v11823_v63, 0  ;;  %v7077_v63 = vsel %vm3019_vm3, %v11847_v32, 0 }
 0xc39   : > { %v6996_v54 = vadd.f32 %v11801_v58, %v6960_v55  ;;  %8137 = vmatpush3.bf16.xpose.msra.mxu1 %v7062_v49  ;;  %v7027_v41 = vmax.f32 %v6995_v29, 0.0 }
 0xc3a   : > { %v6994_v42 = vadd.f32 %v11801_v58, %v6958_v17  ;;  %9665 = vmatprep.subr.msk.bf16.mxu1 %vm3019_vm3, %v7041_v21  ;;  %v7025_v26 = vmax.f32 %v6993_v16, 0.0  ;;  %v7071_v58 = vsel %vm3019_vm3, %v11835_v25, 0 }
 0xc3b   : > { %v7028_v27 = vmax.f32 %v6996_v54, 0.0 }
 0xc3c   : > { %v7026_v57 = vmax.f32 %v6994_v42, 0.0 }
 0xc3d   : > { %v7045_v6 = vpack.c.bf16 %v7028_v27, %v7027_v41 }
 0xc3e   : > { %v7044_v8 = vpack.c.bf16 %v7026_v57, %v7025_v26 }
 0xc41   : > { %8139 = vmatpush3.bf16.xpose.msra.mxu1 %v7065_v12 }
 0xc42   : > { %9666 = vmatprep.subr.msk.bf16.mxu1 %vm3019_vm3, %v7042_v30 }
 0xc49   : > { %8141 = vmatpush3.bf16.xpose.msra.mxu1 %v7068_v43 }
 0xc4a   : > { %9667 = vmatprep.subr.msk.bf16.mxu1 %vm3019_vm3, %v7043_v7 }
 0xc51   : > { %8143 = vmatpush3.bf16.xpose.msra.mxu1 %v7071_v58 }
 0xc52   : > { %9668 = vmatprep.subr.msk.bf16.mxu1 %vm3019_vm3, %v7044_v8 }
 0xc59   : > { %8145 = vmatpush3.bf16.xpose.msra.mxu1 %v7074_v36 }
 0xc5a   : > { %9669 = vmatprep.subr.msk.bf16.mxu1 %vm3019_vm3, %v7045_v6 }
 0xc61   : > { %8147 = vmatpush3.bf16.xpose.msra.mxu1 %v7077_v63 }
 0xc68   : > { %8149 = vmatmul.mubr.msk.bf16.vlgmr.msra.gmra.mrb[128].mxu1 %vm3019_vm3, %v11785_v62 }
 0xd3b   : > { %v7137_v5 = vpop.f32.mrb[128].mxu1 }
 0xd3c   : > { %v7139_v25 = vpop.f32.mrb[129].mxu1  ;;  %v7138_v18 = vadd.f32 %v7137_v5, %v7050_v19 }
 0xd3d   : > { %v7140_v2 = vadd.f32 %v7139_v25, %v7050_v19  ;;  %v7141_v24 = vpop.f32.mrb[130].mxu1 }
 0xd3e   : > { %7144 = vst [vmem:[%s440_s23] sm:$0x1f] %v7138_v18  ;;  %v7142_v37 = vpop.f32.mrb[131].mxu1 }
 0xd3f   : > { %7145 = vst [vmem:[%s440_s23 + $0x8] sm:$0x1f] %v7140_v2 }
 0xd40 PF: > { %s23_s25 = sadd.s32 1, %s9719_s25  }
 0xd41   : > { %p20_p4 = scmp.ge.s32.totalorder %s23_s25, 4  }
 0xd43   :  { %22 = sbr.rel (!%p20_p4) target bundleno = 1 (0x1), region = 123 }

</bundles_post_ra>
